<compile_context>
chip_gen: v7x
topology: tpu7x:2x2x1
jax: 0.10.0
libtpu: 0.0.40
codegen_flags: <defaults>
</compile_context>

<pallas_src>
import functools

import numpy as np

import jax
import jax.numpy as jnp
from jax import lax
from jax.experimental import pallas as pl
from jax.experimental.pallas import tpu as pltpu


# --------------------------------------------------------------------------
# Kernel
# --------------------------------------------------------------------------
def _se_block_kernel(inv_hw,
                     x_ref, w1_ref, s1_ref, b1_ref,
                     w2_ref, s2_ref, b2_ref,
                     wse1_ref, wse2_ref,
                     out_ref, pad_ref):
    M, WC = x_ref.shape                    # M = Bt*H, WC = W*C (lane-dense)
    Bt, Hp2, _ = pad_ref.shape
    H = Hp2 - 2

    # Vertical zero-padding rows (horizontal padding lives in the weights).
    zrow = jnp.zeros((Bt, 1, WC), pad_ref.dtype)
    pad_ref[:, 0:1, :] = zrow
    pad_ref[:, H + 1:H + 2, :] = zrow

    x = x_ref[...]                         # (M, WC) f32; residual stays f32

    def conv(w_ref):
        # Block-Toeplitz 3x3 conv: one (M, WC) x (WC, WC) bf16 MXU matmul per
        # vertical tap ky, accumulated in f32.
        acc = None
        for ky in range(3):
            lhs = pad_ref[:, ky:ky + H, :].reshape(M, WC)
            p = jnp.dot(lhs, w_ref[ky], preferred_element_type=jnp.float32)
            acc = p if acc is None else acc + p
        return acc

    # ---- conv1 -> bn1 (folded, WC-tiled) -> relu.  One f32->bf16 cast. ----
    pad_ref[:, 1:H + 1, :] = x.reshape(Bt, H, WC).astype(pad_ref.dtype)
    out1 = jnp.maximum(conv(w1_ref) * s1_ref[...] + b1_ref[...], 0.0)

    # ---- conv2 -> bn2 (no relu yet).  Interior overwritten, one cast. -----
    pad_ref[:, 1:H + 1, :] = out1.reshape(Bt, H, WC).astype(pad_ref.dtype)
    out2 = conv(w2_ref) * s2_ref[...] + b2_ref[...]              # (M, WC) f32

    # ---- SE: avg-pool + gate broadcast folded into W-tiled FC weights. ----
    out2_b = out2.reshape(Bt, H, WC)
    pooled = jnp.sum(out2_b, axis=1) * inv_hw                    # (Bt, WC)
    hid = jnp.maximum(
        jnp.dot(pooled, wse1_ref[...], preferred_element_type=jnp.float32),
        0.0)                                                     # (Bt, Cr)
    gate = jax.nn.sigmoid(
        jnp.dot(hid, wse2_ref[...], preferred_element_type=jnp.float32))
    out_se = out2_b * gate[:, None, :]                           # (Bt, H, WC)

    # ---- residual add (identity: stride 1, inplanes == planes) + relu. ----
    y = jnp.maximum(out_se + x.reshape(Bt, H, WC), 0.0)
    out_ref[...] = y.reshape(M, WC).astype(out_ref.dtype)


# --------------------------------------------------------------------------
# Tiling heuristics / VMEM budget
# --------------------------------------------------------------------------
def _footprint_bytes(bt, H, W, C):
    WC = W * C
    cr = max(C // 16, 1)
    blk = bt * H * WC * 4                    # one f32 (bt*H, WC) block
    pad = bt * (H + 2) * WC * 2              # bf16 pad scratch
    wconv = 2 * 3 * WC * WC * 2              # two block-Toeplitz weights, bf16
    bn = 4 * WC * 4
    se = (WC * cr + cr * WC) * 4
    # x & out double-buffered; constants revisited (DMA'd once) but the
    # default pipeline still allocates 2 buffers for them; + margin.
    return 2 * blk * 2 + pad + 2 * (wconv + bn + se) + (1 << 20)


def _choose_bt(B, H, W, C, budget=24 << 20):
    """Largest batch tile that (a) keeps >= 2 grid steps when B permits, so
    the pipeline can overlap the x load / out writeback with compute, and
    (b) fits the per-step VMEM budget (conservative for v7x's 64 MiB)."""
    best = 1
    for bt in range(1, B + 1):
        if B % bt:
            continue
        if B >= 2 and B // bt < 2:
            continue
        if _footprint_bytes(bt, H, W, C) <= budget:
            best = bt
    return best


# --------------------------------------------------------------------------
# Wrapper
# --------------------------------------------------------------------------
def se_basic_block_nhwc(x_nhwc, w1, s1, b1, w2, s2, b2, wse1, wse2):
    B, H, W, C = x_nhwc.shape
    WC = W * C
    Cr = wse1.shape[1]

    bt = _choose_bt(B, H, W, C)
    grid = (B // bt,)
    need = _footprint_bytes(bt, H, W, C)
    vmem_limit = int(min(max(2 * need, 32 << 20), 64 << 20))

    # HBM-side reshape to the lane-dense (B*H, W*C) layout (free, row-major).
    x2d = x_nhwc.reshape(B * H, WC)

    kernel = functools.partial(_se_block_kernel, 1.0 / float(H * W))

    def const_spec(shape):
        nd = len(shape)
        return pl.BlockSpec(shape, lambda i, _nd=nd: (0,) * _nd)

    out2d = pl.pallas_call(
        kernel,
        out_shape=jax.ShapeDtypeStruct((B * H, WC), x_nhwc.dtype),
        grid_spec=pltpu.PrefetchScalarGridSpec(
            num_scalar_prefetch=0,
            grid=grid,
            in_specs=[
                pl.BlockSpec((bt * H, WC), lambda i: (i, 0)),    # x (lane-dense)
                const_spec((3, WC, WC)),                         # conv1 Toeplitz
                const_spec((1, WC)), const_spec((1, WC)),        # bn1 scale/bias
                const_spec((3, WC, WC)),                         # conv2 Toeplitz
                const_spec((1, WC)), const_spec((1, WC)),        # bn2 scale/bias
                const_spec((WC, Cr)),                            # SE fc1 (pool folded)
                const_spec((Cr, WC)),                            # SE fc2 (bcast folded)
            ],
            out_specs=pl.BlockSpec((bt * H, WC), lambda i: (i, 0)),
            scratch_shapes=[
                pltpu.VMEM((bt, H + 2, WC), jnp.bfloat16),       # padded activation
            ],
        ),
        compiler_params=pltpu.CompilerParams(
            dimension_semantics=("parallel",),
            vmem_limit_bytes=vmem_limit),
    )(x2d, w1, s1, b1, w2, s2, b2, wse1, wse2)

    return out2d.reshape(B, H, W, C)


# --------------------------------------------------------------------------
# One-time parameter preparation (outside the per-call hot path)
# --------------------------------------------------------------------------
def fold_bn(gamma, beta, mean, var, eps=1e-5):
    scale = gamma / jnp.sqrt(var + eps)
    bias = beta - mean * scale
    return scale, bias


def _toeplitz_conv_weight(conv_w, W):
    """OIHW 3x3 conv weight -> (3, W*Cin, W*Cout) dense block-Toeplitz, bf16.

    wd[ky, wi*Cin + ci, wo*Cout + co] = conv_w[co, ci, ky, wi - wo + 1]
    (zero where the horizontal tap falls outside [0, 2] => SAME padding).
    """
    w = np.asarray(jax.device_get(conv_w), dtype=np.float32)     # (Co, Ci, 3, 3)
    Co, Ci, KH, KW = w.shape
    assert KH == 3 and KW == 3
    wd = np.zeros((3, W * Ci, W * Co), np.float32)
    for ky in range(3):
        for kx in range(3):
            tap = w[:, :, ky, kx].T                              # (Ci, Co)
            for wo in range(W):
                wi = wo + kx - 1
                if 0 <= wi < W:
                    wd[ky, wi * Ci:(wi + 1) * Ci, wo * Co:(wo + 1) * Co] = tap
    return jnp.asarray(wd, dtype=jnp.bfloat16)


def prepare_params(params, W):
    """Convert PyTorch-layout params to the kernel's lane-dense layout."""
    conv1_w, bn1, conv2_w, bn2, fc1_w, fc2_w = params
    C = conv1_w.shape[0]
    w1 = _toeplitz_conv_weight(conv1_w, W)
    w2 = _toeplitz_conv_weight(conv2_w, W)
    s1, b1 = fold_bn(*bn1)
    s2, b2 = fold_bn(*bn2)
    tile_wc = lambda v: jnp.tile(v.reshape(1, C), (1, W))        # (1, W*C)
    wse1 = jnp.tile(fc1_w.T, (W, 1))        # (W*C, Cr): pool's over-W sum folded in
    wse2 = jnp.tile(fc2_w.T, (1, W))        # (Cr, W*C): gate broadcast over W folded in
    return (w1, tile_wc(s1), tile_wc(b1), w2, tile_wc(s2), tile_wc(b2),
            wse1, wse2)


def se_basic_block_nchw(x_nchw, prepped):
    """Forward matching the PyTorch NCHW convention (eval-mode BN)."""
    x_nhwc = jnp.transpose(x_nchw, (0, 2, 3, 1))
    y_nhwc = se_basic_block_nhwc(x_nhwc, *prepped)
    return jnp.transpose(y_nhwc, (0, 3, 1, 2))


# --------------------------------------------------------------------------
# Pure-JAX reference (mirrors the PyTorch forward, eval-mode BN)
# --------------------------------------------------------------------------
def ref_forward_nchw(x, params, eps=1e-5, mxu_dtype=None):
    """With mxu_dtype=jnp.bfloat16 the conv inputs/weights are cast exactly
    like the kernel does (f32 accumulation) for an apples-to-apples check."""
    conv1_w, bn1, conv2_w, bn2, fc1_w, fc2_w = params
    cast = (lambda a: a.astype(mxu_dtype)) if mxu_dtype is not None else (lambda a: a)

    def bn(t, p):
        g, b, m, v = p
        inv = g / jnp.sqrt(v + eps)
        return t * inv[None, :, None, None] + (b - m * inv)[None, :, None, None]

    dn = ('NCHW', 'OIHW', 'NCHW')
    out = lax.conv_general_dilated(cast(x), cast(conv1_w), (1, 1), 'SAME',
                                   dimension_numbers=dn,
                                   preferred_element_type=jnp.float32)
    out = jax.nn.relu(bn(out, bn1))
    out = lax.conv_general_dilated(cast(out), cast(conv2_w), (1, 1), 'SAME',
                                   dimension_numbers=dn,
                                   preferred_element_type=jnp.float32)
    out = bn(out, bn2)
    pooled = out.mean(axis=(2, 3))                               # (B, C)
    y = jax.nn.relu(pooled @ fc1_w.T)
    y = jax.nn.sigmoid(y @ fc2_w.T)
    out = out * y[:, :, None, None]
    return jax.nn.relu(out + x)


# --------------------------------------------------------------------------
if __name__ == "__main__":
    B, C, H, W = 2, 32, 16, 16
    reduction = 16
    Cr = C // reduction

    key = jax.random.PRNGKey(0)
    ks = jax.random.split(key, 12)

    conv1_w = 0.1 * jax.random.normal(ks[0], (C, C, 3, 3), jnp.float32)
    conv2_w = 0.1 * jax.random.normal(ks[1], (C, C, 3, 3), jnp.float32)
    bn1 = (jax.random.uniform(ks[2], (C,), jnp.float32, 0.5, 1.5),   # gamma
           0.1 * jax.random.normal(ks[3], (C,), jnp.float32),        # beta
           0.1 * jax.random.normal(ks[4], (C,), jnp.float32),        # running_mean
           jax.random.uniform(ks[5], (C,), jnp.float32, 0.5, 1.5))   # running_var
    bn2 = (jax.random.uniform(ks[6], (C,), jnp.float32, 0.5, 1.5),
           0.1 * jax.random.normal(ks[7], (C,), jnp.float32),
           0.1 * jax.random.normal(ks[8], (C,), jnp.float32),
           jax.random.uniform(ks[9], (C,), jnp.float32, 0.5, 1.5))
    fc1_w = 0.2 * jax.random.normal(ks[10], (Cr, C), jnp.float32)    # (out, in)
    fc2_w = 0.2 * jax.random.normal(ks[11], (C, Cr), jnp.float32)

    params = (conv1_w, bn1, conv2_w, bn2, fc1_w, fc2_w)
    x = jax.random.normal(jax.random.PRNGKey(2), (B, C, H, W), jnp.float32)

    prepped = prepare_params(params, W)               # hoisted out of hot path
    fwd = jax.jit(se_basic_block_nchw)

    out = jax.block_until_ready(fwd(x, prepped))

    ref_bf = jax.block_until_ready(
        ref_forward_nchw(x, params, mxu_dtype=jnp.bfloat16))
    ref_32 = jax.block_until_ready(ref_forward_nchw(x, params))

    assert out.shape == ref_32.shape
    err_bf = float(jnp.max(jnp.abs(out - ref_bf)))
    err_32 = float(jnp.max(jnp.abs(out - ref_32)))
    # Tight check vs. a reference with identical mixed-precision cast points.
    assert jnp.allclose(out, ref_bf, rtol=1e-2, atol=1e-2), err_bf
    # Looser semantic check vs. the exact f32 PyTorch-equivalent forward.
    assert jnp.allclose(out, ref_32, rtol=5e-2, atol=5e-2), err_32

    print("KERNEL_OK")
</pallas_src>

<mosaic_0001>
module attributes {stable_mosaic.version = 11 : i64} {
  func.func @_se_block_kernel(%arg0: i32, %arg1: memref<16x512xf32, #tpu.memory_space<vmem>>, %arg2: memref<3x512x512xbf16, #tpu.memory_space<vmem>>, %arg3: memref<1x512xf32, #tpu.memory_space<vmem>>, %arg4: memref<1x512xf32, #tpu.memory_space<vmem>>, %arg5: memref<3x512x512xbf16, #tpu.memory_space<vmem>>, %arg6: memref<1x512xf32, #tpu.memory_space<vmem>>, %arg7: memref<1x512xf32, #tpu.memory_space<vmem>>, %arg8: memref<512x2xf32, #tpu.memory_space<vmem>>, %arg9: memref<2x512xf32, #tpu.memory_space<vmem>>, %arg10: memref<16x512xf32, #tpu.memory_space<vmem>>, %arg11: memref<1x18x512xbf16, #tpu.memory_space<vmem>>) attributes {dimension_semantics = [#tpu.dimension_semantics<parallel>], iteration_bounds = array<i64: 2>, scalar_prefetch = 0 : i64, scratch_operands = 1 : i64, tpu.core_type = #tpu.core_type<tc>, window_params = [{transform_indices = @transform_0, window_bounds = array<i64: 16, 512>}, {pipeline_mode = #tpu.pipeline_mode<synchronous>, transform_indices = @transform_1, window_bounds = array<i64: 3, 512, 512>}, {pipeline_mode = #tpu.pipeline_mode<synchronous>, transform_indices = @transform_2, window_bounds = array<i64: 1, 512>}, {pipeline_mode = #tpu.pipeline_mode<synchronous>, transform_indices = @transform_3, window_bounds = array<i64: 1, 512>}, {pipeline_mode = #tpu.pipeline_mode<synchronous>, transform_indices = @transform_4, window_bounds = array<i64: 3, 512, 512>}, {pipeline_mode = #tpu.pipeline_mode<synchronous>, transform_indices = @transform_5, window_bounds = array<i64: 1, 512>}, {pipeline_mode = #tpu.pipeline_mode<synchronous>, transform_indices = @transform_6, window_bounds = array<i64: 1, 512>}, {pipeline_mode = #tpu.pipeline_mode<synchronous>, transform_indices = @transform_7, window_bounds = array<i64: 512, 2>}, {pipeline_mode = #tpu.pipeline_mode<synchronous>, transform_indices = @transform_8, window_bounds = array<i64: 2, 512>}, {transform_indices = @transform_9, window_bounds = array<i64: 16, 512>}]} {
    %cst = arith.constant 0.000000e+00 : bf16
    %0 = vector.broadcast %cst : bf16 to vector<1x1x512xbf16>
    %c0 = arith.constant 0 : index
    %c0_0 = arith.constant 0 : index
    %c0_1 = arith.constant 0 : index
    %1 = vector.load %arg11[%c0, %c0_0, %c0_1] : memref<1x18x512xbf16, #tpu.memory_space<vmem>>, vector<1x1x512xbf16>
    tpu.vector_store %arg11[%c0, %c0_0, %c0_1], %0 {strides = array<i32>} : memref<1x18x512xbf16, #tpu.memory_space<vmem>>, vector<1x1x512xbf16>,
    %c0_2 = arith.constant 0 : index
    %c17 = arith.constant 17 : index
    %c0_3 = arith.constant 0 : index
    %2 = vector.load %arg11[%c0_2, %c17, %c0_3] : memref<1x18x512xbf16, #tpu.memory_space<vmem>>, vector<1x1x512xbf16>
    tpu.vector_store %arg11[%c0_2, %c17, %c0_3], %0 {strides = array<i32>} : memref<1x18x512xbf16, #tpu.memory_space<vmem>>, vector<1x1x512xbf16>,
    %c0_4 = arith.constant 0 : index
    %c0_5 = arith.constant 0 : index
    %3 = vector.load %arg1[%c0_4, %c0_5] : memref<16x512xf32, #tpu.memory_space<vmem>>, vector<16x512xf32>
    %4 = vector.shape_cast %3 : vector<16x512xf32> to vector<1x16x512xf32>
    %5 = arith.truncf %4 : vector<1x16x512xf32> to vector<1x16x512xbf16>
    %c0_6 = arith.constant 0 : index
    %c1 = arith.constant 1 : index
    %c0_7 = arith.constant 0 : index
    %6 = vector.load %arg11[%c0_6, %c1, %c0_7] : memref<1x18x512xbf16, #tpu.memory_space<vmem>>, vector<1x16x512xbf16>
    tpu.vector_store %arg11[%c0_6, %c1, %c0_7], %5 {strides = array<i32>} : memref<1x18x512xbf16, #tpu.memory_space<vmem>>, vector<1x16x512xbf16>,
    %c0_8 = arith.constant 0 : index
    %c0_9 = arith.constant 0 : index
    %c0_10 = arith.constant 0 : index
    %7 = vector.load %arg11[%c0_8, %c0_9, %c0_10] : memref<1x18x512xbf16, #tpu.memory_space<vmem>>, vector<1x16x512xbf16>
    %8 = vector.shape_cast %7 : vector<1x16x512xbf16> to vector<16x512xbf16>
    %c0_11 = arith.constant 0 : index
    %c0_12 = arith.constant 0 : index
    %c0_13 = arith.constant 0 : index
    %9 = vector.load %arg2[%c0_11, %c0_12, %c0_13] : memref<3x512x512xbf16, #tpu.memory_space<vmem>>, vector<1x512x512xbf16>
    %10 = vector.shape_cast %9 : vector<1x512x512xbf16> to vector<512x512xbf16>
    %cst_14 = arith.constant dense<0.000000e+00> : vector<16x512xf32>
    %11 = tpu.matmul %8, %10, %cst_14 {dimension_numbers = #tpu.dot_dimension_numbers<[1], [0], [0], [1], [0, 0, 1, 1], [], []>} : vector<16x512xbf16>, vector<512x512xbf16>, vector<16x512xf32> -> vector<16x512xf32>
    %c0_15 = arith.constant 0 : index
    %c1_16 = arith.constant 1 : index
    %c0_17 = arith.constant 0 : index
    %12 = vector.load %arg11[%c0_15, %c1_16, %c0_17] : memref<1x18x512xbf16, #tpu.memory_space<vmem>>, vector<1x16x512xbf16>
    %13 = vector.shape_cast %12 : vector<1x16x512xbf16> to vector<16x512xbf16>
    %c1_18 = arith.constant 1 : index
    %c0_19 = arith.constant 0 : index
    %c0_20 = arith.constant 0 : index
    %14 = vector.load %arg2[%c1_18, %c0_19, %c0_20] : memref<3x512x512xbf16, #tpu.memory_space<vmem>>, vector<1x512x512xbf16>
    %15 = vector.shape_cast %14 : vector<1x512x512xbf16> to vector<512x512xbf16>
    %cst_21 = arith.constant dense<0.000000e+00> : vector<16x512xf32>
    %16 = tpu.matmul %13, %15, %cst_21 {dimension_numbers = #tpu.dot_dimension_numbers<[1], [0], [0], [1], [0, 0, 1, 1], [], []>} : vector<16x512xbf16>, vector<512x512xbf16>, vector<16x512xf32> -> vector<16x512xf32>
    %17 = arith.addf %11, %16 : vector<16x512xf32>
    %c0_22 = arith.constant 0 : index
    %c2 = arith.constant 2 : index
    %c0_23 = arith.constant 0 : index
    %18 = vector.load %arg11[%c0_22, %c2, %c0_23] : memref<1x18x512xbf16, #tpu.memory_space<vmem>>, vector<1x16x512xbf16>
    %19 = vector.shape_cast %18 : vector<1x16x512xbf16> to vector<16x512xbf16>
    %c2_24 = arith.constant 2 : index
    %c0_25 = arith.constant 0 : index
    %c0_26 = arith.constant 0 : index
    %20 = vector.load %arg2[%c2_24, %c0_25, %c0_26] : memref<3x512x512xbf16, #tpu.memory_space<vmem>>, vector<1x512x512xbf16>
    %21 = vector.shape_cast %20 : vector<1x512x512xbf16> to vector<512x512xbf16>
    %cst_27 = arith.constant dense<0.000000e+00> : vector<16x512xf32>
    %22 = tpu.matmul %19, %21, %cst_27 {dimension_numbers = #tpu.dot_dimension_numbers<[1], [0], [0], [1], [0, 0, 1, 1], [], []>} : vector<16x512xbf16>, vector<512x512xbf16>, vector<16x512xf32> -> vector<16x512xf32>
    %23 = arith.addf %17, %22 : vector<16x512xf32>
    %c0_28 = arith.constant 0 : index
    %c0_29 = arith.constant 0 : index
    %24 = vector.load %arg3[%c0_28, %c0_29] : memref<1x512xf32, #tpu.memory_space<vmem>>, vector<1x512xf32>
    %25 = vector.broadcast %24 : vector<1x512xf32> to vector<16x512xf32>
    %26 = arith.mulf %23, %25 : vector<16x512xf32>
    %c0_30 = arith.constant 0 : index
    %c0_31 = arith.constant 0 : index
    %27 = vector.load %arg4[%c0_30, %c0_31] : memref<1x512xf32, #tpu.memory_space<vmem>>, vector<1x512xf32>
    %28 = vector.broadcast %27 : vector<1x512xf32> to vector<16x512xf32>
    %29 = arith.addf %26, %28 : vector<16x512xf32>
    %cst_32 = arith.constant 0.000000e+00 : f32
    %30 = vector.broadcast %cst_32 : f32 to vector<16x512xf32>
    %31 = arith.maximumf %29, %30 : vector<16x512xf32>
    %32 = vector.shape_cast %31 : vector<16x512xf32> to vector<1x16x512xf32>
    %33 = arith.truncf %32 : vector<1x16x512xf32> to vector<1x16x512xbf16>
    %c0_33 = arith.constant 0 : index
    %c1_34 = arith.constant 1 : index
    %c0_35 = arith.constant 0 : index
    %34 = vector.load %arg11[%c0_33, %c1_34, %c0_35] : memref<1x18x512xbf16, #tpu.memory_space<vmem>>, vector<1x16x512xbf16>
    tpu.vector_store %arg11[%c0_33, %c1_34, %c0_35], %33 {strides = array<i32>} : memref<1x18x512xbf16, #tpu.memory_space<vmem>>, vector<1x16x512xbf16>,
    %c0_36 = arith.constant 0 : index
    %c0_37 = arith.constant 0 : index
    %c0_38 = arith.constant 0 : index
    %35 = vector.load %arg11[%c0_36, %c0_37, %c0_38] : memref<1x18x512xbf16, #tpu.memory_space<vmem>>, vector<1x16x512xbf16>
    %36 = vector.shape_cast %35 : vector<1x16x512xbf16> to vector<16x512xbf16>
    %c0_39 = arith.constant 0 : index
    %c0_40 = arith.constant 0 : index
    %c0_41 = arith.constant 0 : index
    %37 = vector.load %arg5[%c0_39, %c0_40, %c0_41] : memref<3x512x512xbf16, #tpu.memory_space<vmem>>, vector<1x512x512xbf16>
    %38 = vector.shape_cast %37 : vector<1x512x512xbf16> to vector<512x512xbf16>
    %cst_42 = arith.constant dense<0.000000e+00> : vector<16x512xf32>
    %39 = tpu.matmul %36, %38, %cst_42 {dimension_numbers = #tpu.dot_dimension_numbers<[1], [0], [0], [1], [0, 0, 1, 1], [], []>} : vector<16x512xbf16>, vector<512x512xbf16>, vector<16x512xf32> -> vector<16x512xf32>
    %c0_43 = arith.constant 0 : index
    %c1_44 = arith.constant 1 : index
    %c0_45 = arith.constant 0 : index
    %40 = vector.load %arg11[%c0_43, %c1_44, %c0_45] : memref<1x18x512xbf16, #tpu.memory_space<vmem>>, vector<1x16x512xbf16>
    %41 = vector.shape_cast %40 : vector<1x16x512xbf16> to vector<16x512xbf16>
    %c1_46 = arith.constant 1 : index
    %c0_47 = arith.constant 0 : index
    %c0_48 = arith.constant 0 : index
    %42 = vector.load %arg5[%c1_46, %c0_47, %c0_48] : memref<3x512x512xbf16, #tpu.memory_space<vmem>>, vector<1x512x512xbf16>
    %43 = vector.shape_cast %42 : vector<1x512x512xbf16> to vector<512x512xbf16>
    %cst_49 = arith.constant dense<0.000000e+00> : vector<16x512xf32>
    %44 = tpu.matmul %41, %43, %cst_49 {dimension_numbers = #tpu.dot_dimension_numbers<[1], [0], [0], [1], [0, 0, 1, 1], [], []>} : vector<16x512xbf16>, vector<512x512xbf16>, vector<16x512xf32> -> vector<16x512xf32>
    %45 = arith.addf %39, %44 : vector<16x512xf32>
    %c0_50 = arith.constant 0 : index
    %c2_51 = arith.constant 2 : index
    %c0_52 = arith.constant 0 : index
    %46 = vector.load %arg11[%c0_50, %c2_51, %c0_52] : memref<1x18x512xbf16, #tpu.memory_space<vmem>>, vector<1x16x512xbf16>
    %47 = vector.shape_cast %46 : vector<1x16x512xbf16> to vector<16x512xbf16>
    %c2_53 = arith.constant 2 : index
    %c0_54 = arith.constant 0 : index
    %c0_55 = arith.constant 0 : index
    %48 = vector.load %arg5[%c2_53, %c0_54, %c0_55] : memref<3x512x512xbf16, #tpu.memory_space<vmem>>, vector<1x512x512xbf16>
    %49 = vector.shape_cast %48 : vector<1x512x512xbf16> to vector<512x512xbf16>
    %cst_56 = arith.constant dense<0.000000e+00> : vector<16x512xf32>
    %50 = tpu.matmul %47, %49, %cst_56 {dimension_numbers = #tpu.dot_dimension_numbers<[1], [0], [0], [1], [0, 0, 1, 1], [], []>} : vector<16x512xbf16>, vector<512x512xbf16>, vector<16x512xf32> -> vector<16x512xf32>
    %51 = arith.addf %45, %50 : vector<16x512xf32>
    %c0_57 = arith.constant 0 : index
    %c0_58 = arith.constant 0 : index
    %52 = vector.load %arg6[%c0_57, %c0_58] : memref<1x512xf32, #tpu.memory_space<vmem>>, vector<1x512xf32>
    %53 = vector.broadcast %52 : vector<1x512xf32> to vector<16x512xf32>
    %54 = arith.mulf %51, %53 : vector<16x512xf32>
    %c0_59 = arith.constant 0 : index
    %c0_60 = arith.constant 0 : index
    %55 = vector.load %arg7[%c0_59, %c0_60] : memref<1x512xf32, #tpu.memory_space<vmem>>, vector<1x512xf32>
    %56 = vector.broadcast %55 : vector<1x512xf32> to vector<16x512xf32>
    %57 = arith.addf %54, %56 : vector<16x512xf32>
    %58 = vector.shape_cast %57 : vector<16x512xf32> to vector<1x16x512xf32>
    %cst_61 = arith.constant dense<0.000000e+00> : vector<1x512xf32>
    %59 = vector.multi_reduction <add>, %58, %cst_61 [1] : vector<1x16x512xf32> to vector<1x512xf32>
    %cst_62 = arith.constant 3.906250e-03 : f32
    %60 = vector.broadcast %cst_62 : f32 to vector<1x512xf32>
    %61 = arith.mulf %59, %60 : vector<1x512xf32>
    %c0_63 = arith.constant 0 : index
    %c0_64 = arith.constant 0 : index
    %62 = vector.load %arg8[%c0_63, %c0_64] : memref<512x2xf32, #tpu.memory_space<vmem>>, vector<512x2xf32>
    %cst_65 = arith.constant dense<0.000000e+00> : vector<1x2xf32>
    %63 = tpu.matmul %61, %62, %cst_65 {dimension_numbers = #tpu.dot_dimension_numbers<[1], [0], [0], [1], [0, 0, 1, 1], [], []>} : vector<1x512xf32>, vector<512x2xf32>, vector<1x2xf32> -> vector<1x2xf32>
    %cst_66 = arith.constant 0.000000e+00 : f32
    %64 = vector.broadcast %cst_66 : f32 to vector<1x2xf32>
    %65 = arith.maximumf %63, %64 : vector<1x2xf32>
    %c0_67 = arith.constant 0 : index
    %c0_68 = arith.constant 0 : index
    %66 = vector.load %arg9[%c0_67, %c0_68] : memref<2x512xf32, #tpu.memory_space<vmem>>, vector<2x512xf32>
    %cst_69 = arith.constant dense<0.000000e+00> : vector<1x512xf32>
    %67 = tpu.matmul %65, %66, %cst_69 {dimension_numbers = #tpu.dot_dimension_numbers<[1], [0], [0], [1], [0, 0, 1, 1], [], []>} : vector<1x2xf32>, vector<2x512xf32>, vector<1x512xf32> -> vector<1x512xf32>
    %68 = arith.negf %67 : vector<1x512xf32>
    %69 = math.exp %68 : vector<1x512xf32>
    %cst_70 = arith.constant 1.000000e+00 : f32
    %70 = vector.broadcast %cst_70 : f32 to vector<1x512xf32>
    %71 = arith.addf %70, %69 : vector<1x512xf32>
    %72 = arith.divf %70, %71 : vector<1x512xf32>
    %73 = vector.shape_cast %72 : vector<1x512xf32> to vector<1x1x512xf32>
    %74 = vector.broadcast %73 : vector<1x1x512xf32> to vector<1x16x512xf32>
    %75 = arith.mulf %58, %74 : vector<1x16x512xf32>
    %76 = vector.shape_cast %3 : vector<16x512xf32> to vector<1x16x512xf32>
    %77 = arith.addf %75, %76 : vector<1x16x512xf32>
    %cst_71 = arith.constant 0.000000e+00 : f32
    %78 = vector.broadcast %cst_71 : f32 to vector<1x16x512xf32>
    %79 = arith.maximumf %77, %78 : vector<1x16x512xf32>
    %80 = vector.shape_cast %79 : vector<1x16x512xf32> to vector<16x512xf32>
    %c0_72 = arith.constant 0 : index
    %c0_73 = arith.constant 0 : index
    %81 = vector.load %arg10[%c0_72, %c0_73] : memref<16x512xf32, #tpu.memory_space<vmem>>, vector<16x512xf32>
    tpu.vector_store %arg10[%c0_72, %c0_73], %80 {strides = array<i32>} : memref<16x512xf32, #tpu.memory_space<vmem>>, vector<16x512xf32>,
    return
  }
  func.func @transform_0(%arg0: i32) -> (i32, i32) {
    %c0_i32 = arith.constant 0 : i32
    %c0_i32_0 = arith.constant 0 : i32
    return %arg0, %c0_i32 : i32, i32
  }
  func.func @transform_1(%arg0: i32) -> (i32, i32, i32) {
    %c0_i32 = arith.constant 0 : i32
    %c0_i32_0 = arith.constant 0 : i32
    %c0_i32_1 = arith.constant 0 : i32
    %c0_i32_2 = arith.constant 0 : i32
    return %c0_i32, %c0_i32_0, %c0_i32_1 : i32, i32, i32
  }
  func.func @transform_2(%arg0: i32) -> (i32, i32) {
    %c0_i32 = arith.constant 0 : i32
    %c0_i32_0 = arith.constant 0 : i32
    %c0_i32_1 = arith.constant 0 : i32
    return %c0_i32, %c0_i32_0 : i32, i32
  }
  func.func @transform_3(%arg0: i32) -> (i32, i32) {
    %c0_i32 = arith.constant 0 : i32
    %c0_i32_0 = arith.constant 0 : i32
    %c0_i32_1 = arith.constant 0 : i32
    return %c0_i32, %c0_i32_0 : i32, i32
  }
  func.func @transform_4(%arg0: i32) -> (i32, i32, i32) {
    %c0_i32 = arith.constant 0 : i32
    %c0_i32_0 = arith.constant 0 : i32
    %c0_i32_1 = arith.constant 0 : i32
    %c0_i32_2 = arith.constant 0 : i32
    return %c0_i32, %c0_i32_0, %c0_i32_1 : i32, i32, i32
  }
  func.func @transform_5(%arg0: i32) -> (i32, i32) {
    %c0_i32 = arith.constant 0 : i32
    %c0_i32_0 = arith.constant 0 : i32
    %c0_i32_1 = arith.constant 0 : i32
    return %c0_i32, %c0_i32_0 : i32, i32
  }
  func.func @transform_6(%arg0: i32) -> (i32, i32) {
    %c0_i32 = arith.constant 0 : i32
    %c0_i32_0 = arith.constant 0 : i32
    %c0_i32_1 = arith.constant 0 : i32
    return %c0_i32, %c0_i32_0 : i32, i32
  }
  func.func @transform_7(%arg0: i32) -> (i32, i32) {
    %c0_i32 = arith.constant 0 : i32
    %c0_i32_0 = arith.constant 0 : i32
    %c0_i32_1 = arith.constant 0 : i32
    return %c0_i32, %c0_i32_0 : i32, i32
  }
  func.func @transform_8(%arg0: i32) -> (i32, i32) {
    %c0_i32 = arith.constant 0 : i32
    %c0_i32_0 = arith.constant 0 : i32
    %c0_i32_1 = arith.constant 0 : i32
    return %c0_i32, %c0_i32_0 : i32, i32
  }
  func.func @transform_9(%arg0: i32) -> (i32, i32) {
    %c0_i32 = arith.constant 0 : i32
    %c0_i32_0 = arith.constant 0 : i32
    return %arg0, %c0_i32 : i32, i32
  }
}

</mosaic_0001>

<bundles_post_ra>
// kernel: se_basic_block_nchw.1
= control target key start
LH: loop header
LB: loop body
LE: loop exit
PB: predicated region body
PF: predicated region fallthrough
CT: control target
= control target key end

     0   :  { %14 = vsyncpa [#allocation4], 0  ;;  %s10575_s0 = inlined_call_operand.vmem [shape: f32[32,512], index: 0, kind: input, shape index: {}]   ;;  %s10576_s1 = inlined_call_operand.hbm [shape: bf16[3,512,512], index: 1, kind: input, shape index: {}]   ;;  %s10577_s2 = inlined_call_operand.hbm [shape: f32[1,512], index: 2, kind: input, shape index: {}]   ;;  %s10578_s3 = inlined_call_operand.hbm [shape: f32[1,512], index: 3, kind: input, shape index: {}]   ;;  %s10579_s4 = inlined_call_operand.hbm [shape: bf16[3,512,512], index: 4, kind: input, shape index: {}]   ;;  %s10580_s5 = inlined_call_operand.hbm [shape: f32[1,512], index: 5, kind: input, shape index: {}]   ;;  %s10581_s6 = inlined_call_operand.hbm [shape: f32[1,512], index: 6, kind: input, shape index: {}]   ;;  %s10582_s7 = inlined_call_operand.vmem [shape: f32[512,2], index: 7, kind: input, shape index: {}]   ;;  %s10583_s8 = inlined_call_operand.hbm [shape: f32[2,512], index: 8, kind: input, shape index: {}]   ;;  %s10584_s9 = inlined_call_operand.vmem [shape: f32[32,512], index: 9, kind: output, shape index: {}]  }
   0x1   :  { %15 = vsyncpa [#allocation6], 0 }
   0x2   :  { %16 = vsyncpa [#allocation9], 0 }
   0x3   :  { %17 = vsyncpa [#allocation12], 0  ;;  %s9863_s30 = smov 0  }
   0x4 LB: > { %s9802_s10 = smov [#allocation5]   ;;  %s7252_s12 = sadd.s32 4294967295, %s9800_s30   ;;  %s9800_s30 = sphi %s9863_s30, %s23_s30  }
   0x5   : > { %s274_s11 = sshll.u32 %s9802_s10, 4  ;;  %p7254_p0 = scmp.ge.s32.totalorder %s9800_s30, 1  ;;  %s9877_s11 = int_to_ptr.vmem [resolvable:$true] %s274_s11 }
   0x6   : > { %p248_p1 = scmp.lt.s32.totalorder %s9800_s30, 3  ;;  %p9873_p2 = scmp.eq.s32.totalorder %s7252_s12, 0 }
   0x7   : > { %s9803_s15 = smov [#allocation8]   ;;  %s9804_s18 = smov [#allocation11]  }
   0x8   : > { %s10588_s13 = scalar_select %p9873_p2, 1, 0 }
   0x9   : > { %p9879_p3 = pnand %p7254_p0, %p248_p1  ;;  %s295_s16 = sshll.u32 %s9803_s15, 4  ;;  %s9885_s16 = int_to_ptr.vmem [resolvable:$true] %s295_s16 }
   0xa   : > { %s320_s19 = sshll.u32 %s9804_s18, 4  ;;  %s9805_s20 = smov [#allocation3]   ;;  %s9893_s19 = int_to_ptr.vmem [resolvable:$true] %s320_s19 }
   0xb   : > { %s10589_s14 = scalar_select %p9879_p3, 1, 0 }
   0xc   : > { %p8341_p4 = pneg %p9879_p3  ;;  %s9895_s21 = sshll.u32 %s9805_s20, 4  ;;  %s261_s21 = int_to_ptr.vmem [resolvable:$true] %s9895_s21 }
   0xd   : > { %s9582_s24 = scalar_lea.hbm %s10577_s2, 64 }
   0xe   : > { %p9889_p5 = pnand %p9873_p2, %p8341_p4  ;;  %p9583_p6 = scmp.ne.s32.totalorder %s10577_s2, %s9582_s24 }
   0xf   : > { %p9589_p10 = scmp.lt.u32.totalorder %s9582_s24, %s10577_s2 }
  0x10   : > { %p9905_p7 = pneg %p9889_p5 }
  0x12   : > { %p9585_p8 = pnand %p9905_p7, %p9583_p6 }
  0x14   : > { %p9586_p9 = pneg %p9585_p8 }
  0x16   : > { %p9591_p11 = pnand %p9589_p10, %p9586_p9 }
  0x18   : > { %9594 = shalt.err (!%p9591_p11)
}
  0x19   : > { %s9595_s10 = scalar_lea.vmem %s9877_s11, 64  ;;  %p9603_p1 = scmp.lt.s32.totalorder %s9877_s11, %s9877_s11 }
  0x1a   : > { %p9596_p12 = scmp.ne.s32.totalorder %s9877_s11, %s9595_s10  ;;  %p9604_p4 = scmp.lt.s32.totalorder %s9595_s10, %s9595_s10 }
  0x1c   : > { %p9598_p13 = pnand %p9596_p12, %p9905_p7  ;;  %p9605_p6 = por %p9604_p4, %p9603_p1 }
  0x1e   : > { %p9599_p0 = pneg %p9598_p13 }
  0x20   : > { %p9606_p8 = pnand %p9605_p6, %p9599_p0 }
  0x22   : > { %9609 = shalt.err (!%p9606_p8)
}
  0x23   : > { %8347 = dma.hbm_to_vmem [thread:$0]  (!%p9889_p5), %s10577_s2, 64, %s9877_s11, [#allocation6]  }
  0x24   : > { %s9610_s23 = scalar_lea.hbm %s10579_s4, 49152 }
  0x25   : > { %p9611_p9 = scmp.ne.s32.totalorder %s10579_s4, %s9610_s23  ;;  %p9617_p12 = scmp.lt.u32.totalorder %s9610_s23, %s10579_s4 }
  0x27   : > { %p9613_p10 = pnand %p9611_p9, %p9905_p7 }
  0x29   : > { %p9614_p11 = pneg %p9613_p10 }
  0x2b   : > { %p9619_p13 = pnand %p9617_p12, %p9614_p11 }
  0x2d   : > { %9622 = shalt.err (!%p9619_p13)
}
  0x2e   : > { %s9623_s11 = scalar_lea.vmem %s9885_s16, 49152  ;;  %p9631_p6 = scmp.lt.s32.totalorder %s9885_s16, %s9885_s16 }
  0x2f   : > { %p9624_p0 = scmp.ne.s32.totalorder %s9885_s16, %s9623_s11  ;;  %p9632_p8 = scmp.lt.s32.totalorder %s9623_s11, %s9623_s11 }
  0x31   : > { %p9626_p1 = pnand %p9624_p0, %p9905_p7  ;;  %p9633_p9 = por %p9632_p8, %p9631_p6 }
  0x33   : > { %p9627_p4 = pneg %p9626_p1 }
  0x35   : > { %p9634_p10 = pnand %p9633_p9, %p9627_p4 }
  0x37   : > { %9637 = shalt.err (!%p9634_p10)
}
  0x38   : > { %s9806_s29 = smov 256   ;;  %s9807_s10 = smov 16  }
  0x39   : > { %8353 = dma.hbm_to_vmem [thread:$0]  (!%p9889_p5), %s10579_s4, 49152, %s9885_s16, [#allocation9], %s9806_s29, %s9806_s29, %s9807_s10  }
  0x3a   : > { %s9638_s23 = scalar_lea.hbm %s10581_s6, 64 }
  0x3b   : > { %p9639_p11 = scmp.ne.s32.totalorder %s10581_s6, %s9638_s23  ;;  %p9645_p0 = scmp.lt.u32.totalorder %s9638_s23, %s10581_s6 }
  0x3d   : > { %p9641_p12 = pnand %p9639_p11, %p9905_p7 }
  0x3f   : > { %p9642_p13 = pneg %p9641_p12 }
  0x41   : > { %p9647_p1 = pnand %p9645_p0, %p9642_p13 }
  0x43   : > { %9650 = shalt.err (!%p9647_p1)
}
  0x44   : > { %s9651_s16 = scalar_lea.vmem %s9893_s19, 64  ;;  %p9659_p9 = scmp.lt.s32.totalorder %s9893_s19, %s9893_s19 }
  0x45   : > { %p9652_p4 = scmp.ne.s32.totalorder %s9893_s19, %s9651_s16  ;;  %p9660_p10 = scmp.lt.s32.totalorder %s9651_s16, %s9651_s16 }
  0x47   : > { %p9654_p6 = pnand %p9652_p4, %p9905_p7  ;;  %p9661_p11 = por %p9660_p10, %p9659_p9 }
  0x49   : > { %p9655_p8 = pneg %p9654_p6 }
  0x4b   : > { %p9662_p12 = pnand %p9661_p11, %p9655_p8 }
  0x4d   : > { %9665 = shalt.err (!%p9662_p12)
}
  0x4e   : > { %8359 = dma.hbm_to_vmem [thread:$0]  (!%p9889_p5), %s10581_s6, 64, %s9893_s19, [#allocation12]  }
  0x4f   : > { %s9666_s22 = scalar_lea.hbm %s10576_s1, 49152 }
  0x50   : > { %p9667_p13 = scmp.ne.s32.totalorder %s10576_s1, %s9666_s22  ;;  %p9673_p4 = scmp.lt.u32.totalorder %s9666_s22, %s10576_s1 }
  0x52   : > { %p9669_p0 = pnand %p9667_p13, %p9905_p7 }
  0x54   : > { %p9670_p1 = pneg %p9669_p0 }
  0x56   : > { %p9675_p6 = pnand %p9673_p4, %p9670_p1 }
  0x58   : > { %9678 = shalt.err (!%p9675_p6)
}
  0x59   : > { %s9679_s28 = scalar_lea.vmem %s261_s21, 49152  ;;  %p9687_p11 = scmp.lt.s32.totalorder %s261_s21, %s261_s21 }
  0x5a   : > { %p9680_p8 = scmp.ne.s32.totalorder %s261_s21, %s9679_s28  ;;  %p9688_p12 = scmp.lt.s32.totalorder %s9679_s28, %s9679_s28 }
  0x5c   : > { %p9682_p9 = pnand %p9680_p8, %p9905_p7  ;;  %p9689_p2 = por %p9688_p12, %p9687_p11 }
  0x5e   : > { %p9683_p10 = pneg %p9682_p9 }
  0x60   : > { %p9690_p3 = pnand %p9689_p2, %p9683_p10 }
  0x62   : > { %9693 = shalt.err (!%p9690_p3)
}
  0x63   : > { %8344 = dma.hbm_to_vmem [thread:$0]  (!%p9889_p5), %s10576_s1, 49152, %s261_s21, [#allocation4], %s9806_s29, %s9806_s29, %s9807_s10  }
  0x64   : > { %s9808_s11 = smov [#allocation7]   ;;  %s9809_s18 = smov [#allocation10]  }
  0x65   : > { %s285_s15 = sshll.u32 %s9808_s11, 4  ;;  %s309_s20 = sshll.u32 %s9809_s18, 4  ;;  %s286_s15 = int_to_ptr.vmem [resolvable:$true] %s285_s15  ;;  %s310_s20 = int_to_ptr.vmem [resolvable:$true] %s309_s20 }
  0x66   : > { %s9694_s24 = scalar_lea.hbm %s10578_s3, 64 }
  0x67   : > { %p9695_p2 = scmp.ne.s32.totalorder %s10578_s3, %s9694_s24  ;;  %p9701_p0 = scmp.lt.u32.totalorder %s9694_s24, %s10578_s3 }
  0x69   : > { %p9697_p3 = pnand %p9695_p2, %p9905_p7 }
  0x6b   : > { %p9698_p13 = pneg %p9697_p3 }
  0x6d   : > { %p9703_p1 = pnand %p9701_p0, %p9698_p13 }
  0x6f   : > { %9706 = shalt.err (!%p9703_p1)
}
  0x70   : > { %s9707_s21 = scalar_lea.vmem %s286_s15, 64  ;;  %p9715_p9 = scmp.lt.s32.totalorder %s286_s15, %s286_s15 }
  0x71   : > { %p9708_p4 = scmp.ne.s32.totalorder %s286_s15, %s9707_s21  ;;  %p9716_p10 = scmp.lt.s32.totalorder %s9707_s21, %s9707_s21 }
  0x73   : > { %p9710_p6 = pnand %p9708_p4, %p9905_p7  ;;  %p9717_p11 = por %p9716_p10, %p9715_p9 }
  0x75   : > { %p9711_p8 = pneg %p9710_p6 }
  0x77   : > { %p9718_p12 = pnand %p9717_p11, %p9711_p8 }
  0x79   : > { %9721 = shalt.err (!%p9718_p12)
}
  0x7a   : > { %8350 = dma.hbm_to_vmem [thread:$0]  (!%p9889_p5), %s10578_s3, 64, %s286_s15, [#allocation6]  }
  0x7b   : > { %s9722_s18 = scalar_lea.hbm %s10580_s5, 64 }
  0x7c   : > { %p9723_p2 = scmp.ne.s32.totalorder %s10580_s5, %s9722_s18  ;;  %p9729_p0 = scmp.lt.u32.totalorder %s9722_s18, %s10580_s5 }
  0x7e   : > { %p9725_p3 = pnand %p9723_p2, %p9905_p7 }
  0x80   : > { %p9726_p13 = pneg %p9725_p3 }
  0x82   : > { %p9731_p1 = pnand %p9729_p0, %p9726_p13 }
  0x84   : > { %9734 = shalt.err (!%p9731_p1)
}
  0x85   : > { %s9735_s26 = scalar_lea.vmem %s310_s20, 64  ;;  %p9743_p9 = scmp.lt.s32.totalorder %s310_s20, %s310_s20 }
  0x86   : > { %p9736_p4 = scmp.ne.s32.totalorder %s310_s20, %s9735_s26  ;;  %p9744_p10 = scmp.lt.s32.totalorder %s9735_s26, %s9735_s26 }
  0x88   : > { %p9738_p6 = pnand %p9736_p4, %p9905_p7  ;;  %p9745_p11 = por %p9744_p10, %p9743_p9 }
  0x8a   : > { %p9739_p8 = pneg %p9738_p6 }
  0x8c   : > { %p9746_p12 = pnand %p9745_p11, %p9739_p8 }
  0x8e   : > { %9749 = shalt.err (!%p9746_p12)
}
  0x8f   : > { %8356 = dma.hbm_to_vmem [thread:$0]  (!%p9889_p5), %s10580_s5, 64, %s310_s20, [#allocation9]  }
  0x90   : > { %s9810_s19 = smov [#allocation13]   ;;  %s9750_s16 = scalar_lea.hbm %s10583_s8, 128 }
  0x91   : > { %s334_s21 = sshll.u32 %s9810_s19, 4  ;;  %p9751_p2 = scmp.ne.s32.totalorder %s10583_s8, %s9750_s16  ;;  %s335_s21 = int_to_ptr.vmem [resolvable:$true] %s334_s21 }
  0x92   : > { %p9757_p0 = scmp.lt.u32.totalorder %s9750_s16, %s10583_s8 }
  0x93   : > { %p9753_p3 = pnand %p9751_p2, %p9905_p7 }
  0x95   : > { %p9754_p13 = pneg %p9753_p3 }
  0x97   : > { %p9759_p1 = pnand %p9757_p0, %p9754_p13 }
  0x99   : > { %9762 = shalt.err (!%p9759_p1)
}
  0x9a   : > { %s9763_s20 = scalar_lea.vmem %s335_s21, 128  ;;  %p9771_p9 = scmp.lt.s32.totalorder %s335_s21, %s335_s21 }
  0x9b   : > { %p9764_p4 = scmp.ne.s32.totalorder %s335_s21, %s9763_s20  ;;  %p9772_p10 = scmp.lt.s32.totalorder %s9763_s20, %s9763_s20 }
  0x9d   : > { %p9766_p6 = pnand %p9764_p4, %p9905_p7  ;;  %p9773_p11 = por %p9772_p10, %p9771_p9 }
  0x9f   : > { %p9767_p8 = pneg %p9766_p6 }
  0xa1   : > { %p9774_p12 = pnand %p9773_p11, %p9767_p8 }
  0xa3   : > { %9777 = shalt.err (!%p9774_p12)
}
  0xa4   : > { %8362 = dma.hbm_to_vmem [thread:$0]  (!%p9889_p5), %s10583_s8, 128, %s335_s21, [#allocation12]  }
  0xa5   : > { %p10592_p2 = scmp.ne.s32.totalorder %s10589_s14, 0 }
  0xa6   : > { %p10593_p3 = scmp.ne.s32.totalorder (!%p10592_p2), %s10588_s13, 0 }
  0xa7   : > { %357 = sbr.rel (%p10592_p2) target bundleno = 1838 (0x72e), region = 56 }
  0xae   : > { %9783 = dma.done.wait (%p10593_p3), [#allocation4], 49152  }
  0xaf   : > { %9785 = vsyncadd (%p10593_p3), [#allocation4], 4294918144 }
  0xb0   : > { %9787 = dma.done.wait (%p10593_p3), [#allocation6], 128  }
  0xb1   : > { %9789 = vsyncadd (%p10593_p3), [#allocation6], 4294967168 }
  0xb2   : > { %9791 = dma.done.wait (%p10593_p3), [#allocation9], 49216  }
  0xb3   : > { %9793 = vsyncadd (%p10593_p3), [#allocation9], 4294918080 }
  0xb4   : > { %9795 = dma.done.wait (%p10593_p3), [#allocation12], 192  }
  0xb5   : > { %9797 = vsyncadd (%p10593_p3), [#allocation12], 4294967104  ;;  %v8396_v0 = vld [vmem:[#allocation3 + $0x404] ss:$16 sps:$4 sm:$0xff]   ;;  %v8398_v1 = vld [vmem:[#allocation3 + $0x40c] ss:$16 sps:$4 sm:$0xff]  }
  0xb6   : > { %1529 = vmatprep.subr.bf16.mxu0 %v8396_v0  ;;  %v8400_v2 = vld [vmem:[#allocation3 + $0x400] ss:$16 sps:$4 sm:$0xff]   ;;  %v8401_v3 = vld [vmem:[#allocation3 + $0x408] ss:$16 sps:$4 sm:$0xff]   ;;  %1615 = vmatprep.subr.bf16.mxu1 %v8398_v1  ;;  %v8402_v4 = vld [vmem:[#allocation3 + $0x424] ss:$16 sps:$4 sm:$0xff]  }
  0xb7   : > { %1530 = vmatpush1.bf16.msra.mxu0 %v8400_v2  ;;  %1616 = vmatpush1.bf16.msra.mxu1 %v8401_v3  ;;  %v8404_v5 = vld [vmem:[#allocation3 + $0x42c] ss:$16 sps:$4 sm:$0xff]   ;;  %v8406_v6 = vld [vmem:[#allocation3 + $0x420] ss:$16 sps:$4 sm:$0xff]   ;;  %v8407_v7 = vld [vmem:[#allocation3 + $0x428] ss:$16 sps:$4 sm:$0xff]  }
  0xb8   : > { %1531 = vmatprep.subr.bf16.mxu0 %v8402_v4  ;;  %1617 = vmatprep.subr.bf16.mxu1 %v8404_v5  ;;  %v8408_v8 = vld [vmem:[#allocation3 + $0x444] ss:$16 sps:$4 sm:$0xff]   ;;  %v8410_v9 = vld [vmem:[#allocation3 + $0x44c] ss:$16 sps:$4 sm:$0xff]   ;;  %v8412_v10 = vld [vmem:[#allocation3 + $0x440] ss:$16 sps:$4 sm:$0xff]  }
  0xb9   : > { %v8413_v11 = vld [vmem:[#allocation3 + $0x448] ss:$16 sps:$4 sm:$0xff]   ;;  %v8414_v12 = vld [vmem:[#allocation3 + $0x464] ss:$16 sps:$4 sm:$0xff]   ;;  %v8416_v13 = vld [vmem:[#allocation3 + $0x46c] ss:$16 sps:$4 sm:$0xff]  }
  0xba   : > { %v8418_v14 = vld [vmem:[#allocation3 + $0x460] ss:$16 sps:$4 sm:$0xff]   ;;  %v8419_v15 = vld [vmem:[#allocation3 + $0x468] ss:$16 sps:$4 sm:$0xff]   ;;  %v8420_v16 = vld [vmem:[#allocation3 + $0x484] ss:$16 sps:$4 sm:$0xff]  }
  0xbb   : > { %1532 = vmatpush1.bf16.msra.mxu0 %v8406_v6  ;;  %1618 = vmatpush1.bf16.msra.mxu1 %v8407_v7  ;;  %v8422_v17 = vld [vmem:[#allocation3 + $0x48c] ss:$16 sps:$4 sm:$0xff]   ;;  %v8424_v18 = vld [vmem:[#allocation3 + $0x480] ss:$16 sps:$4 sm:$0xff]   ;;  %v8425_v19 = vld [vmem:[#allocation3 + $0x488] ss:$16 sps:$4 sm:$0xff]  }
  0xbc   : > { %1533 = vmatprep.subr.bf16.mxu0 %v8408_v8  ;;  %1619 = vmatprep.subr.bf16.mxu1 %v8410_v9  ;;  %v8426_v20 = vld [vmem:[#allocation3 + $0x4a4] ss:$16 sps:$4 sm:$0xff]   ;;  %v8428_v21 = vld [vmem:[#allocation3 + $0x4ac] ss:$16 sps:$4 sm:$0xff]   ;;  %v8430_v22 = vld [vmem:[#allocation3 + $0x4a0] ss:$16 sps:$4 sm:$0xff]  }
  0xbd   : > { %v8431_v23 = vld [vmem:[#allocation3 + $0x4a8] ss:$16 sps:$4 sm:$0xff]   ;;  %v8432_v24 = vld [vmem:[#allocation3 + $0x4c4] ss:$16 sps:$4 sm:$0xff]   ;;  %v8434_v25 = vld [vmem:[#allocation3 + $0x4cc] ss:$16 sps:$4 sm:$0xff]  }
  0xbe   : > { %v8436_v26 = vld [vmem:[#allocation3 + $0x4c0] ss:$16 sps:$4 sm:$0xff]   ;;  %v8437_v27 = vld [vmem:[#allocation3 + $0x4c8] ss:$16 sps:$4 sm:$0xff]   ;;  %v8438_v28 = vld [vmem:[#allocation3 + $0x4e4] ss:$16 sps:$4 sm:$0xff]  }
  0xbf   : > { %1534 = vmatpush1.bf16.msra.mxu0 %v8412_v10  ;;  %1620 = vmatpush1.bf16.msra.mxu1 %v8413_v11  ;;  %vm435_vm0 = vsmask.f32 256  ;;  %v8440_v29 = vld [vmem:[#allocation3 + $0x4ec] ss:$16 sps:$4 sm:$0xff]   ;;  %s7271_s13 = sshll.u32 %s7252_s12, 1  ;;  %vm434_vm1 = vcmask 1040384  }
  0xc0   : > { %1535 = vmatprep.subr.bf16.mxu0 %v8414_v12  ;;  %1621 = vmatprep.subr.bf16.mxu1 %v8416_v13  ;;  %vm438_vm2 = vsmask.f32 4352  ;;  %v8442_v30 = vld [vmem:[#allocation3 + $0x4e0] ss:$16 sps:$4 sm:$0xff]   ;;  %vm10073_vm3 = vmand %vm434_vm1, %vm435_vm0  ;;  %vm447_vm4 = vsmask.f32 7938 }
  0xc1   : > { %v8443_v32 = vld [vmem:[#allocation3 + $0x4e8] ss:$16 sps:$4 sm:$0xff]   ;;  %v8444_v33 = vld [vmem:[#allocation3 + $0x504] ss:$16 sps:$4 sm:$0xff]   ;;  %v8446_v34 = vld [vmem:[#allocation3 + $0x50c] ss:$16 sps:$4 sm:$0xff]  }
  0xc2   : > { %vm437_vm5 = vcmask 1044484   ;;  %p420_p5 = scmp.lt.s32.totalorder %s7271_s13, 3  ;;  %v8448_v36 = vld [vmem:[#allocation3 + $0x500] ss:$16 sps:$4 sm:$0xff]   ;;  %v8449_v37 = vld [vmem:[#allocation3 + $0x508] ss:$16 sps:$4 sm:$0xff]   ;;  %vm10083_vm7 = vmand %vm434_vm1, %vm447_vm4 }
  0xc3   : > { %1536 = vmatpush1.bf16.msra.mxu0 %v8418_v14  ;;  %1622 = vmatpush1.bf16.msra.mxu1 %v8419_v15  ;;  %vm10077_vm6 = vmand %vm437_vm5, %vm438_vm2  ;;  %vm449_vm8 = vsmask.f32 7954  ;;  %v8450_v39 = vld [vmem:[#allocation3 + $0x524] ss:$16 sps:$4 sm:$0xff]   ;;  %v8452_v40 = vld [vmem:[#allocation3 + $0x52c] ss:$16 sps:$4 sm:$0xff]  }
  0xc4   : > { %1537 = vmatprep.subr.bf16.mxu0 %v8420_v16  ;;  %1623 = vmatprep.subr.bf16.mxu1 %v8422_v17  ;;  %s10611_s13 = smov (!%p420_p5, %s7271_s13), 3  ;;  %vm10090_vm9 = vmand %vm437_vm5, %vm449_vm8  ;;  %v8454_v42 = vld [vmem:[#allocation3 + $0x520] ss:$16 sps:$4 sm:$0xff]   ;;  %v8455_v43 = vld [vmem:[#allocation3 + $0x528] ss:$16 sps:$4 sm:$0xff]   ;;  %vm528_vm12 = vcmask 1043456  }
  0xc5   : > { %v8456_v44 = vld [vmem:[#allocation3 + $0x544] ss:$16 sps:$4 sm:$0xff]   ;;  %v8458_v45 = vld [vmem:[#allocation3 + $0x54c] ss:$16 sps:$4 sm:$0xff]   ;;  %s8089_s12 = sshll.u32 %s10611_s13, 5  ;;  %vm10099_vm10 = vmor %vm10077_vm6, %vm10073_vm3  ;;  %vm530_vm13 = vcmask 1047556  }
  0xc6   : > { %v8460_v47 = vld [vmem:[#allocation3 + $0x540] ss:$16 sps:$4 sm:$0xff]   ;;  %v8461_v48 = vld [vmem:[#allocation3 + $0x548] ss:$16 sps:$4 sm:$0xff]   ;;  %vm451_vm11 = vmor %vm10090_vm9, %vm10083_vm7  ;;  %s10112_s27 = scalar_lea.vmem %s10575_s0, %s8089_s12  ;;  %vm486_vm15 = vsmask.f32 4368  ;;  %s431_s23 = scalar_lea.vmem %s10584_s9, %s8089_s12 }
  0xc7   : > { %1538 = vmatpush1.bf16.msra.mxu0 %v8424_v18  ;;  %1624 = vmatpush1.bf16.msra.mxu1 %v8425_v19  ;;  %v8462_v49 = vld [vmem:[#allocation3 + $0x564] ss:$16 sps:$4 sm:$0xff]   ;;  %v8464_v50 = vld [vmem:[#allocation3 + $0x56c] ss:$16 sps:$4 sm:$0xff]   ;;  %v8466_v51 = vld [vmem:[#allocation3 + $0x560] ss:$16 sps:$4 sm:$0xff]  }
  0xc8   : > { %1539 = vmatprep.subr.bf16.mxu0 %v8426_v20  ;;  %1625 = vmatprep.subr.bf16.mxu1 %v8428_v21  ;;  %v8467_v52 = vld [vmem:[#allocation3 + $0x568] ss:$16 sps:$4 sm:$0xff]   ;;  %v441_v53 = vld [vmem:[#allocation2] sm:$0x11]  ;;  %v8470_v59 = vld [vmem:[#allocation3 + $0x58c] ss:$16 sps:$4 sm:$0xff]  }
  0xc9   : > { %v8468_v54 = vld [vmem:[#allocation3 + $0x584] ss:$16 sps:$4 sm:$0xff]   ;;  %v442_v55 = vsel %vm10099_vm10, 0, %v441_v53  ;;  %v459_v58 = vld [vmem:[%s10112_s27 + $0x8] sm:$0xff]  ;;  %vm10127_vm14 = vmand %vm528_vm12, %vm447_vm4  ;;  %vm2658_vm4 = vcmask 1046528   ;;  %vm6902_vm5 = vcmask 1041408  }
  0xca   : > { %v452_v56 = vld [vmem:[#allocation2 + $0x20] sm:$0x11]  ;;  %443 = vst [vmem:[#allocation2] sm:$0x11] %v442_v55  ;;  %v463_v62 = vld [vmem:[%s10112_s27 + $0x28] sm:$0xff]  ;;  %vm531_vm1 = vmand %vm530_vm13, %vm449_vm8  ;;  %vm6898_vm6 = vcmask 15360  }
  0xcb   : > { %1540 = vmatpush1.bf16.msra.mxu0 %v8430_v22  ;;  %1626 = vmatpush1.bf16.msra.mxu1 %v8431_v23  ;;  %v458_v57 = vld [vmem:[%s10112_s27] sm:$0xff]  ;;  %v453_v60 = vsel %vm451_vm11, 0, %v452_v56  ;;  %v8473_v7 = vld [vmem:[#allocation3 + $0x588] ss:$16 sps:$4 sm:$0xff]   ;;  %v8476_v10 = vld [vmem:[#allocation3 + $0x5ac] ss:$16 sps:$4 sm:$0xff]  }
  0xcc   : > { %1541 = vmatprep.subr.bf16.mxu0 %v8432_v24  ;;  %1627 = vmatprep.subr.bf16.mxu1 %v8434_v25  ;;  %v462_v61 = vld [vmem:[%s10112_s27 + $0x20] sm:$0xff]  ;;  %v8091_v63 = vpack.c.bf16 %v459_v58, %v458_v57  ;;  %454 = vst [vmem:[#allocation2 + $0x20] sm:$0x11] %v453_v60  ;;  %vm10135_vm2 = vmor %vm531_vm1, %vm10127_vm14  ;;  %v8479_v17 = vld [vmem:[#allocation3 + $0x5a8] ss:$16 sps:$4 sm:$0xff]  }
  0xcd   : > { %v8093_v0 = vpack.c.bf16 %v463_v62, %v462_v61  ;;  %v8472_v4 = vld [vmem:[#allocation3 + $0x580] ss:$16 sps:$4 sm:$0xff]   ;;  %v8474_v8 = vld [vmem:[#allocation3 + $0x5a4] ss:$16 sps:$4 sm:$0xff]   ;;  %vm10141_vm3 = vmor %vm435_vm0, %vm486_vm15  ;;  %vm836_vm0 = vsmask.f32 7424 }
  0xce   : > { %v489_v2 = vshrl.u32 %v8091_v63, 16  ;;  %v492_v3 = vshll.u32 %v8091_v63, 16  ;;  %v8478_v13 = vld [vmem:[#allocation3 + $0x5a0] ss:$16 sps:$4 sm:$0xff]   ;;  %v8480_v21 = vld [vmem:[#allocation3 + $0x5c4] ss:$16 sps:$4 sm:$0xff]  }
  0xcf   : > { %1542 = vmatpush1.bf16.msra.mxu0 %v8436_v26  ;;  %1628 = vmatpush1.bf16.msra.mxu1 %v8437_v27  ;;  %v504_v5 = vshrl.u32 %v8093_v0, 16  ;;  %v507_v6 = vshll.u32 %v8093_v0, 16  ;;  %v8482_v24 = vld [vmem:[#allocation3 + $0x5cc] ss:$16 sps:$4 sm:$0xff]   ;;  %v8490_v35 = vld [vmem:[#allocation3 + $0x5e0] ss:$16 sps:$4 sm:$0xff]  }
  0xd0   : > { %1543 = vmatprep.subr.bf16.mxu0 %v8438_v28  ;;  %1629 = vmatprep.subr.bf16.mxu1 %v8440_v29  ;;  %v491_v9 = vrot.slane %v489_v2, 7  ;;  %v8484_v29 = vld [vmem:[#allocation3 + $0x5c0] ss:$16 sps:$4 sm:$0xff]   ;;  %v8496_v56 = vld [vmem:[#allocation3 + $0x608] ss:$16 sps:$4 sm:$0xff]  }
  0xd1   : > { %v506_v11 = vrot.slane %v504_v5, 7  ;;  %v533_v20 = vld [vmem:[#allocation2] sm:$0xff]  ;;  %v8505_v60 = vld [vmem:[#allocation3 + $0x62c] ss:$16 sps:$4 sm:$0xff]   ;;  %v8503_v62 = vld [vmem:[#allocation3 + $0x628] ss:$16 sps:$4 sm:$0xff]  }
  0xd2   : > { %v494_v15 = vor.u32 %v492_v3, %v491_v9  ;;  %v502_v16 = vrot.slane %v491_v9, 4  ;;  %v8493_v55 = vld [vmem:[#allocation3 + $0x600] ss:$16 sps:$4 sm:$0xff]   ;;  %v8508_v63 = vld [vmem:[#allocation3 + $0x644] ss:$16 sps:$4 sm:$0xff]  }
  0xd3   : > { %1544 = vmatpush1.bf16.msra.mxu0 %v8442_v30  ;;  %1630 = vmatpush1.bf16.msra.mxu1 %v8443_v32  ;;  %v509_v18 = vor.u32 %v507_v6, %v506_v11  ;;  %v520_v19 = vrot.slane %v506_v11, 4  ;;  %v541_v23 = vld [vmem:[#allocation2 + $0x20] sm:$0x11]  ;;  %v8485_v30 = vld [vmem:[#allocation3 + $0x5c8] ss:$16 sps:$4 sm:$0xff]  }
  0xd4   : > { %1545 = vmatprep.subr.bf16.mxu0 %v8444_v33  ;;  %1631 = vmatprep.subr.bf16.mxu1 %v8446_v34  ;;  %v534_v22 = vsel %vm10135_vm2, %v494_v15, %v533_v20  ;;  %v8486_v33 = vld [vmem:[#allocation3 + $0x5e4] ss:$16 sps:$4 sm:$0xff]   ;;  %v8488_v34 = vld [vmem:[#allocation3 + $0x5ec] ss:$16 sps:$4 sm:$0xff]   ;;  %v8500_v61 = vld [vmem:[#allocation3 + $0x620] ss:$16 sps:$4 sm:$0xff]  }
  0xd5   : > { %v10149_v25 = vsel %vm10141_vm3, %v502_v16, %v509_v18  ;;  %535 = vst [vmem:[#allocation2] sm:$0xff] %v534_v22  ;;  %v542_v26 = vsel %vm10099_vm10, %v520_v19, %v541_v23  ;;  %v8511_v0 = vld [vmem:[#allocation3 + $0x64c] ss:$16 sps:$4 sm:$0xff]   ;;  %v8506_v1 = vld [vmem:[#allocation3 + $0x640] ss:$16 sps:$4 sm:$0xff]  }
  0xd6   : > { %543 = vst [vmem:[#allocation2 + $0x20] sm:$0x11] %v542_v26  ;;  %v10154_v27 = vcombine.high %v534_v22, %v10149_v25  ;;  %v10157_v28 = vcombine.low %v534_v22, %v10149_v25  ;;  %v8509_v2 = vld [vmem:[#allocation3 + $0x648] ss:$16 sps:$4 sm:$0xff]   ;;  %v8514_v3 = vld [vmem:[#allocation3 + $0x664] ss:$16 sps:$4 sm:$0xff]  }
  0xd7   : > { %1546 = vmatpush1.bf16.msra.mxu0 %v8448_v36  ;;  %1632 = vmatpush1.bf16.msra.mxu1 %v8449_v37  ;;  %v8491_v36 = vld [vmem:[#allocation3 + $0x5e8] ss:$16 sps:$4 sm:$0xff]   ;;  %v8512_v5 = vld [vmem:[#allocation3 + $0x660] ss:$16 sps:$4 sm:$0xff]   ;;  %v8526_v11 = vld [vmem:[#allocation3 + $0x6a4] ss:$16 sps:$4 sm:$0xff]  }
  0xd8   : > { %1547 = vmatprep.subr.bf16.mxu0 %v8450_v39  ;;  %1633 = vmatprep.subr.bf16.mxu1 %v8452_v40  ;;  %v852_v31 = vshll.u32 %v10154_v27, 16  ;;  %v840_v32 = vshll.u32 %v10157_v28, 16  ;;  %v850_v37 = vshrl.u32 %v10154_v27, 16  ;;  %v838_v40 = vshrl.u32 %v10157_v28, 16  ;;  %v8515_v6 = vld [vmem:[#allocation3 + $0x668] ss:$16 sps:$4 sm:$0xff]  }
  0xd9   : > { %v8518_v9 = vld [vmem:[#allocation3 + $0x680] ss:$16 sps:$4 sm:$0xff]   ;;  %v8527_v16 = vld [vmem:[#allocation3 + $0x6a8] ss:$16 sps:$4 sm:$0xff]   ;;  %v8535_v18 = vld [vmem:[#allocation3 + $0x6cc] ss:$16 sps:$4 sm:$0xff]  }
  0xda   : > { %v854_v39 = vrot.slane %v852_v31, 1  ;;  %v8524_v15 = vld [vmem:[#allocation3 + $0x6a0] ss:$16 sps:$4 sm:$0xff]   ;;  %v8533_v20 = vld [vmem:[#allocation3 + $0x6c8] ss:$16 sps:$4 sm:$0xff]  }
  0xdb   : > { %1548 = vmatpush1.bf16.msra.mxu0 %v8454_v42  ;;  %1634 = vmatpush1.bf16.msra.mxu1 %v8455_v43  ;;  %v842_v42 = vrot.slane %v840_v32, 1  ;;  %v8530_v19 = vld [vmem:[#allocation3 + $0x6c0] ss:$16 sps:$4 sm:$0xff]   ;;  %v8541_v22 = vld [vmem:[#allocation3 + $0x6ec] ss:$16 sps:$4 sm:$0xff]  }
  0xdc   : > { %1549 = vmatprep.subr.bf16.mxu0 %v8456_v44  ;;  %1635 = vmatprep.subr.bf16.mxu1 %v8458_v45  ;;  %v8495_v44 = vld [vmem:[#allocation3 + $0x604] ss:$16 sps:$4 sm:$0xff]   ;;  %v8498_v45 = vld [vmem:[#allocation3 + $0x60c] ss:$16 sps:$4 sm:$0xff]   ;;  %v8539_v41 = vld [vmem:[#allocation3 + $0x6e8] ss:$16 sps:$4 sm:$0xff]  }
  0xdd   : > { %v679_v43 = vld [vmem:[#allocation2 + $0x20] sm:$0x11]  ;;  %v444_v23 = vld [vmem:[#allocation2 + $0x8] sm:$0x11]  ;;  %v461_v31 = vld [vmem:[%s10112_s27 + $0x18] sm:$0xff] }
  0xde   : > { %v445_v26 = vsel %vm10099_vm10, 0, %v444_v23  ;;  %v464_v32 = vld [vmem:[%s10112_s27 + $0x30] sm:$0xff] }
  0xdf   : > { %1550 = vmatpush1.bf16.msra.mxu0 %v8460_v47  ;;  %1636 = vmatpush1.bf16.msra.mxu1 %v8461_v48  ;;  %v10163_v47 = vcombine.high %v679_v43, %v679_v43  ;;  %v10165_v48 = vcombine.low %v679_v43, %v679_v43  ;;  %446 = vst [vmem:[#allocation2 + $0x8] sm:$0x11] %v445_v26  ;;  %v8547_v43 = vld [vmem:[#allocation3 + $0x70c] ss:$16 sps:$4 sm:$0xff]  }
  0xe0   : > { %1551 = vmatprep.subr.bf16.mxu0 %v8462_v49  ;;  %1637 = vmatprep.subr.bf16.mxu1 %v8464_v50  ;;  %v855_v49 = vor.u32 %v854_v39, %v850_v37  ;;  %v8577_v26 = vld [vmem:[#allocation3 + $0x7ac] ss:$16 sps:$4 sm:$0xff]  }
  0xe1   : > { %v857_v50 = vshll.u32 %v10163_v47, 16 }
  0xe3   : > { %1552 = vmatpush1.bf16.msra.mxu0 %v8466_v51  ;;  %1638 = vmatpush1.bf16.msra.mxu1 %v8467_v52  ;;  %v843_v51 = vor.u32 %v842_v42, %v838_v40  ;;  %v845_v52 = vshll.u32 %v10165_v48, 16  ;;  %v859_v53 = vrot.slane %v857_v50, 1  ;;  %v8544_v42 = vld [vmem:[#allocation3 + $0x704] ss:$16 sps:$4 sm:$0xff]   ;;  %v8545_v50 = vld [vmem:[#allocation3 + $0x708] ss:$16 sps:$4 sm:$0xff]  }
  0xe4   : > { %1553 = vmatprep.subr.bf16.mxu0 %v8468_v54  ;;  %1639 = vmatprep.subr.bf16.mxu1 %v8470_v59  ;;  %v8502_v59 = vld [vmem:[#allocation3 + $0x624] ss:$16 sps:$4 sm:$0xff]  }
  0xe5   : > { %v847_v54 = vrot.slane %v845_v52, 1  ;;  %v860_v57 = vsel %vm836_vm0, %v855_v49, %v859_v53  ;;  %v8542_v49 = vld [vmem:[#allocation3 + $0x700] ss:$16 sps:$4 sm:$0xff]  }
  0xe6   : > { %1561 = vmatprep.mubr.bf16.mxu0 %v860_v57  ;;  %1647 = vmatprep.mubr.bf16.mxu1 %v860_v57  ;;  %v8550_v57 = vld [vmem:[#allocation3 + $0x724] ss:$16 sps:$4 sm:$0xff]  }
  0xe7   : > { %1554 = vmatpush1.bf16.msra.mxu0 %v8472_v4  ;;  %1640 = vmatpush1.bf16.msra.mxu1 %v8473_v7  ;;  %v848_v58 = vsel %vm836_vm0, %v843_v51, %v847_v54  ;;  %v8517_v4 = vld [vmem:[#allocation3 + $0x66c] ss:$16 sps:$4 sm:$0xff]   ;;  %v8520_v7 = vld [vmem:[#allocation3 + $0x684] ss:$16 sps:$4 sm:$0xff]  }
  0xe8   : > { %1555 = vmatprep.subr.bf16.mxu0 %v8474_v8  ;;  %1641 = vmatprep.subr.bf16.mxu1 %v8476_v10  ;;  %v8523_v8 = vld [vmem:[#allocation3 + $0x68c] ss:$16 sps:$4 sm:$0xff]   ;;  %v8521_v10 = vld [vmem:[#allocation3 + $0x688] ss:$16 sps:$4 sm:$0xff]  }
  0xeb   : > { %1556 = vmatpush1.bf16.msra.mxu0 %v8478_v13  ;;  %1642 = vmatpush1.bf16.msra.mxu1 %v8479_v17  ;;  %v8529_v13 = vld [vmem:[#allocation3 + $0x6ac] ss:$16 sps:$4 sm:$0xff]   ;;  %v8532_v17 = vld [vmem:[#allocation3 + $0x6c4] ss:$16 sps:$4 sm:$0xff]  }
  0xec   : > { %1557 = vmatprep.subr.bf16.mxu0 %v8480_v21  ;;  %1643 = vmatprep.subr.bf16.mxu1 %v8482_v24  ;;  %v8538_v21 = vld [vmem:[#allocation3 + $0x6e4] ss:$16 sps:$4 sm:$0xff]   ;;  %v455_v24 = vld [vmem:[#allocation2 + $0x28] sm:$0x11] }
  0xef   : > { %1558 = vmatpush1.bf16.msra.mxu0 %v8484_v29  ;;  %1644 = vmatpush1.bf16.msra.mxu1 %v8485_v30  ;;  %v456_v29 = vsel %vm451_vm11, 0, %v455_v24  ;;  %v460_v30 = vld [vmem:[%s10112_s27 + $0x10] sm:$0xff] }
  0xf0   : > { %1559 = vmatprep.subr.bf16.mxu0 %v8486_v33  ;;  %1645 = vmatprep.subr.bf16.mxu1 %v8488_v34  ;;  %457 = vst [vmem:[#allocation2 + $0x28] sm:$0x11] %v456_v29  ;;  %v465_v33 = vld [vmem:[%s10112_s27 + $0x38] sm:$0xff]  ;;  %v8092_v34 = vpack.c.bf16 %v461_v31, %v460_v30  ;;  %v8574_v24 = vld [vmem:[#allocation3 + $0x7a4] ss:$16 sps:$4 sm:$0xff]  }
  0xf1   : > { %v8572_v30 = vld [vmem:[#allocation3 + $0x7a0] ss:$16 sps:$4 sm:$0xff]   ;;  %v8575_v31 = vld [vmem:[#allocation3 + $0x7a8] ss:$16 sps:$4 sm:$0xff]  }
  0xf2   : > { %v496_v37 = vshrl.u32 %v8092_v34, 16  ;;  %v499_v39 = vshll.u32 %v8092_v34, 16  ;;  %v8580_v34 = vld [vmem:[#allocation3 + $0x7c4] ss:$16 sps:$4 sm:$0xff]  }
  0xf3   : > { %1560 = vmatpush1.bf16.msra.mxu0 %v8490_v35  ;;  %1646 = vmatpush1.bf16.msra.mxu1 %v8491_v36  ;;  %v8094_v35 = vpack.c.bf16 %v465_v33, %v464_v32  ;;  %v8536_v36 = vld [vmem:[#allocation3 + $0x6e0] ss:$16 sps:$4 sm:$0xff]  }
  0xf4   : > { %1572 = vmatprep.subr.bf16.mxu0 %v8495_v44  ;;  %1658 = vmatprep.subr.bf16.mxu1 %v8498_v45  ;;  %v498_v44 = vrot.slane %v496_v37, 7  ;;  %v8581_v37 = vld [vmem:[#allocation3 + $0x7c8] ss:$16 sps:$4 sm:$0xff]  }
  0xf5   : > { %v513_v40 = vshrl.u32 %v8094_v35, 16  ;;  %v516_v38 = vshll.u32 %v8094_v35, 16  ;;  %v8583_v35 = vld [vmem:[#allocation3 + $0x7cc] ss:$16 sps:$4 sm:$0xff]  }
  0xf6   : > { %1562 = vmatmul.mubr.bf16.vlgmr.msra.gmra.mrb[0].mxu0 %v848_v58  ;;  %1648 = vmatmul.mubr.bf16.vlgmr.msra.gmra.mrb[0].mxu1 %v848_v58  ;;  %v501_v51 = vor.u32 %v499_v39, %v498_v44  ;;  %v511_v52 = vrot.slane %v498_v44, 4  ;;  %v8553_v58 = vld [vmem:[#allocation3 + $0x72c] ss:$16 sps:$4 sm:$0xff]   ;;  %v8587_v44 = vld [vmem:[#allocation3 + $0x7e8] ss:$16 sps:$4 sm:$0xff]  }
  0xf7   : > { %1573 = vmatpush1.bf16.msra.mxu0 %v8493_v55  ;;  %1659 = vmatpush1.bf16.msra.mxu1 %v8496_v56  ;;  %v515_v45 = vrot.slane %v513_v40, 7  ;;  %v536_v55 = vld [vmem:[#allocation2 + $0x8] sm:$0xff] }
  0xf8   : > { %1574 = vmatprep.subr.bf16.mxu0 %v8502_v59  ;;  %1660 = vmatprep.subr.bf16.mxu1 %v8505_v60  ;;  %v544_v56 = vld [vmem:[#allocation2 + $0x28] sm:$0x11]  ;;  %v537_v59 = vsel %vm10135_vm2, %v501_v51, %v536_v55  ;;  %v8600_v55 = vld [vmem:[#allocation3 + $0x24] ss:$16 sps:$4 sm:$0xff]  }
  0xf9   : > { %v518_v53 = vor.u32 %v516_v38, %v515_v45  ;;  %v521_v54 = vrot.slane %v515_v45, 4  ;;  %538 = vst [vmem:[#allocation2 + $0x8] sm:$0xff] %v537_v59  ;;  %v8586_v38 = vld [vmem:[#allocation3 + $0x7e4] ss:$16 sps:$4 sm:$0xff]   ;;  %v8596_v51 = vld [vmem:[#allocation3 + $0xc] ss:$16 sps:$4 sm:$0xff]  }
  0xfb   : > { %1575 = vmatpush1.bf16.msra.mxu0 %v8500_v61  ;;  %1661 = vmatpush1.bf16.msra.mxu1 %v8503_v62  ;;  %v10186_v60 = vsel %vm10141_vm3, %v511_v52, %v518_v53  ;;  %v545_v61 = vsel %vm10099_vm10, %v521_v54, %v544_v56  ;;  %v8548_v62 = vld [vmem:[#allocation3 + $0x720] ss:$16 sps:$4 sm:$0xff]   ;;  %v8594_v53 = vld [vmem:[#allocation3 + $0x8] ss:$16 sps:$4 sm:$0xff]   ;;  %v8603_v56 = vld [vmem:[#allocation3 + $0x2c] ss:$16 sps:$4 sm:$0xff]  }
  0xfc   : > { %1576 = vmatprep.subr.bf16.mxu0 %v8508_v63  ;;  %1662 = vmatprep.subr.bf16.mxu1 %v8511_v0  ;;  %546 = vst [vmem:[#allocation2 + $0x28] sm:$0x11] %v545_v61  ;;  %v10191_v63 = vcombine.high %v537_v59, %v10186_v60  ;;  %v8551_v0 = vld [vmem:[#allocation3 + $0x728] ss:$16 sps:$4 sm:$0xff]   ;;  %v10199_v23 = vcombine.low %v537_v59, %v10186_v60  ;;  %v8591_v52 = vld [vmem:[#allocation3] ss:$16 sps:$4 sm:$0xff]  }
  0xfd   : > { %v8606_v59 = vld [vmem:[#allocation3 + $0x44] ss:$16 sps:$4 sm:$0xff]   ;;  %v8609_v61 = vld [vmem:[#allocation3 + $0x4c] ss:$16 sps:$4 sm:$0xff]  }
  0xfe   : > { %v864_v33 = vshll.u32 %v10199_v23, 16  ;;  %v862_v39 = vshrl.u32 %v10199_v23, 16 }
  0xff   : > { %1577 = vmatpush1.bf16.msra.mxu0 %v8506_v1  ;;  %1663 = vmatpush1.bf16.msra.mxu1 %v8509_v2  ;;  %v8556_v1 = vld [vmem:[#allocation3 + $0x744] ss:$16 sps:$4 sm:$0xff]   ;;  %v8559_v2 = vld [vmem:[#allocation3 + $0x74c] ss:$16 sps:$4 sm:$0xff]  }
 0x100   : > { %1578 = vmatprep.subr.bf16.mxu0 %v8514_v3  ;;  %1664 = vmatprep.subr.bf16.mxu1 %v8517_v4  ;;  %v876_v3 = vshll.u32 %v10191_v63, 16  ;;  %v8554_v4 = vld [vmem:[#allocation3 + $0x740] ss:$16 sps:$4 sm:$0xff]  }
 0x103   : > { %1579 = vmatpush1.bf16.msra.mxu0 %v8512_v5  ;;  %1665 = vmatpush1.bf16.msra.mxu1 %v8515_v6  ;;  %v8557_v5 = vld [vmem:[#allocation3 + $0x748] ss:$16 sps:$4 sm:$0xff]   ;;  %v8562_v6 = vld [vmem:[#allocation3 + $0x764] ss:$16 sps:$4 sm:$0xff]  }
 0x104   : > { %1580 = vmatprep.subr.bf16.mxu0 %v8520_v7  ;;  %1666 = vmatprep.subr.bf16.mxu1 %v8523_v8  ;;  %v8565_v7 = vld [vmem:[#allocation3 + $0x76c] ss:$16 sps:$4 sm:$0xff]   ;;  %v874_v8 = vshrl.u32 %v10191_v63, 16 }
 0x107   : > { %1581 = vmatpush1.bf16.msra.mxu0 %v8518_v9  ;;  %1667 = vmatpush1.bf16.msra.mxu1 %v8521_v10  ;;  %v878_v9 = vrot.slane %v876_v3, 1  ;;  %v680_v10 = vld [vmem:[#allocation2 + $0x28] sm:$0x11]  ;;  %v8610_v3 = vld [vmem:[#allocation3 + $0x60] ss:$16 sps:$4 sm:$0xff]  }
 0x108   : > { %1582 = vmatprep.subr.bf16.mxu0 %v8526_v11  ;;  %1668 = vmatprep.subr.bf16.mxu1 %v8529_v13  ;;  %v8560_v11 = vld [vmem:[#allocation3 + $0x760] ss:$16 sps:$4 sm:$0xff]   ;;  %v10195_v13 = vcombine.high %v680_v10, %v680_v10  ;;  %v10202_v32 = vcombine.low %v680_v10, %v680_v10 }
 0x109   : > { %v8622_v10 = vld [vmem:[#allocation3 + $0xa0] ss:$16 sps:$4 sm:$0xff]  }
 0x10a   : > { %v869_v40 = vshll.u32 %v10202_v32, 16 }
 0x10b   : > { %1583 = vmatpush1.bf16.msra.mxu0 %v8524_v15  ;;  %1669 = vmatpush1.bf16.msra.mxu1 %v8527_v16  ;;  %v8563_v15 = vld [vmem:[#allocation3 + $0x768] ss:$16 sps:$4 sm:$0xff]   ;;  %v8568_v16 = vld [vmem:[#allocation3 + $0x784] ss:$16 sps:$4 sm:$0xff]  }
 0x10c   : > { %1584 = vmatprep.subr.bf16.mxu0 %v8532_v17  ;;  %1670 = vmatprep.subr.bf16.mxu1 %v8535_v18  ;;  %v8571_v17 = vld [vmem:[#allocation3 + $0x78c] ss:$16 sps:$4 sm:$0xff]   ;;  %v879_v18 = vor.u32 %v878_v9, %v874_v8  ;;  %v8624_v8 = vld [vmem:[#allocation3 + $0xa4] ss:$16 sps:$4 sm:$0xff]  }
 0x10d   : > { %v8627_v9 = vld [vmem:[#allocation3 + $0xac] ss:$16 sps:$4 sm:$0xff]  }
 0x10f   : > { %1585 = vmatpush1.bf16.msra.mxu0 %v8530_v19  ;;  %1671 = vmatpush1.bf16.msra.mxu1 %v8533_v20  ;;  %v881_v19 = vshll.u32 %v10195_v13, 16 }
 0x110   : > { %1586 = vmatprep.subr.bf16.mxu0 %v8538_v21  ;;  %1672 = vmatprep.subr.bf16.mxu1 %v8541_v22  ;;  %v8566_v21 = vld [vmem:[#allocation3 + $0x780] ss:$16 sps:$4 sm:$0xff]   ;;  %v8569_v22 = vld [vmem:[#allocation3 + $0x788] ss:$16 sps:$4 sm:$0xff]  }
 0x111   : > { %v883_v20 = vrot.slane %v881_v19, 1  ;;  %v8636_v19 = vld [vmem:[#allocation3 + $0xe4] ss:$16 sps:$4 sm:$0xff]  }
 0x113   : > { %1587 = vmatpush1.bf16.msra.mxu0 %v8536_v36  ;;  %1673 = vmatpush1.bf16.msra.mxu1 %v8539_v41  ;;  %v884_v29 = vsel %vm836_vm0, %v879_v18, %v883_v20  ;;  %v8578_v36 = vld [vmem:[#allocation3 + $0x7c0] ss:$16 sps:$4 sm:$0xff]   ;;  %v866_v41 = vrot.slane %v864_v33, 1  ;;  %v8631_v18 = vld [vmem:[#allocation3 + $0xc8] ss:$16 sps:$4 sm:$0xff]  }
 0x114   : > { %1588 = vmatprep.subr.bf16.mxu0 %v8544_v42  ;;  %1674 = vmatprep.subr.bf16.mxu1 %v8547_v43  ;;  %v8589_v42 = vld [vmem:[#allocation3 + $0x7ec] ss:$16 sps:$4 sm:$0xff]   ;;  %v8584_v43 = vld [vmem:[#allocation3 + $0x7e0] ss:$16 sps:$4 sm:$0xff]  }
 0x115   : > { %1604 = vmatprep.mubr.bf16.mxu0 %v884_v29  ;;  %1690 = vmatprep.mubr.bf16.mxu1 %v884_v29  ;;  %v867_v45 = vor.u32 %v866_v41, %v862_v39  ;;  %v8639_v20 = vld [vmem:[#allocation3 + $0xec] ss:$16 sps:$4 sm:$0xff]   ;;  %v8640_v29 = vld [vmem:[#allocation3 + $0x100] ss:$16 sps:$4 sm:$0xff]   ;;  %v8655_v41 = vld [vmem:[#allocation3 + $0x148] ss:$16 sps:$4 sm:$0xff]  }
 0x116   : > { %v8651_v33 = vld [vmem:[#allocation3 + $0x12c] ss:$16 sps:$4 sm:$0xff]   ;;  %v8652_v39 = vld [vmem:[#allocation3 + $0x140] ss:$16 sps:$4 sm:$0xff]  }
 0x117   : > { %1589 = vmatpush1.bf16.msra.mxu0 %v8542_v49  ;;  %1675 = vmatpush1.bf16.msra.mxu1 %v8545_v50  ;;  %v871_v49 = vrot.slane %v869_v40, 1  ;;  %v8593_v50 = vld [vmem:[#allocation3 + $0x4] ss:$16 sps:$4 sm:$0xff]  }
 0x118   : > { %1590 = vmatprep.subr.bf16.mxu0 %v8550_v57  ;;  %1676 = vmatprep.subr.bf16.mxu1 %v8553_v58  ;;  %v8598_v57 = vld [vmem:[#allocation3 + $0x20] ss:$16 sps:$4 sm:$0xff]   ;;  %v8601_v58 = vld [vmem:[#allocation3 + $0x28] ss:$16 sps:$4 sm:$0xff]   ;;  %v8660_v40 = vld [vmem:[#allocation3 + $0x164] ss:$16 sps:$4 sm:$0xff]  }
 0x119   : > { %v872_v54 = vsel %vm836_vm0, %v867_v45, %v871_v49  ;;  %v8669_v45 = vld [vmem:[#allocation3 + $0x18c] ss:$16 sps:$4 sm:$0xff]   ;;  %v8664_v49 = vld [vmem:[#allocation3 + $0x180] ss:$16 sps:$4 sm:$0xff]  }
 0x11b   : > { %1591 = vmatpush1.bf16.msra.mxu0 %v8548_v62  ;;  %1677 = vmatpush1.bf16.msra.mxu1 %v8551_v0  ;;  %v8604_v62 = vld [vmem:[#allocation3 + $0x40] ss:$16 sps:$4 sm:$0xff]   ;;  %v8607_v0 = vld [vmem:[#allocation3 + $0x48] ss:$16 sps:$4 sm:$0xff]  }
 0x11c   : > { %1592 = vmatprep.subr.bf16.mxu0 %v8556_v1  ;;  %1678 = vmatprep.subr.bf16.mxu1 %v8559_v2  ;;  %v8612_v1 = vld [vmem:[#allocation3 + $0x64] ss:$16 sps:$4 sm:$0xff]   ;;  %v8615_v2 = vld [vmem:[#allocation3 + $0x6c] ss:$16 sps:$4 sm:$0xff]  }
 0x11f   : > { %1593 = vmatpush1.bf16.msra.mxu0 %v8554_v4  ;;  %1679 = vmatpush1.bf16.msra.mxu1 %v8557_v5  ;;  %v8613_v4 = vld [vmem:[#allocation3 + $0x68] ss:$16 sps:$4 sm:$0xff]   ;;  %v8618_v5 = vld [vmem:[#allocation3 + $0x84] ss:$16 sps:$4 sm:$0xff]  }
 0x120   : > { %1594 = vmatprep.subr.bf16.mxu0 %v8562_v6  ;;  %1680 = vmatprep.subr.bf16.mxu1 %v8565_v7  ;;  %v8621_v6 = vld [vmem:[#allocation3 + $0x8c] ss:$16 sps:$4 sm:$0xff]   ;;  %v8616_v7 = vld [vmem:[#allocation3 + $0x80] ss:$16 sps:$4 sm:$0xff]  }
 0x123   : > { %1595 = vmatpush1.bf16.msra.mxu0 %v8560_v11  ;;  %1681 = vmatpush1.bf16.msra.mxu1 %v8563_v15  ;;  %v8625_v11 = vld [vmem:[#allocation3 + $0xa8] ss:$16 sps:$4 sm:$0xff]   ;;  %v8630_v15 = vld [vmem:[#allocation3 + $0xc4] ss:$16 sps:$4 sm:$0xff]  }
 0x124   : > { %1596 = vmatprep.subr.bf16.mxu0 %v8568_v16  ;;  %1682 = vmatprep.subr.bf16.mxu1 %v8571_v17  ;;  %v8633_v16 = vld [vmem:[#allocation3 + $0xcc] ss:$16 sps:$4 sm:$0xff]   ;;  %v8628_v17 = vld [vmem:[#allocation3 + $0xc0] ss:$16 sps:$4 sm:$0xff]  }
 0x127   : > { %1597 = vmatpush1.bf16.msra.mxu0 %v8566_v21  ;;  %1683 = vmatpush1.bf16.msra.mxu1 %v8569_v22  ;;  %v8634_v21 = vld [vmem:[#allocation3 + $0xe0] ss:$16 sps:$4 sm:$0xff]   ;;  %v8637_v22 = vld [vmem:[#allocation3 + $0xe8] ss:$16 sps:$4 sm:$0xff]  }
 0x128   : > { %1598 = vmatprep.subr.bf16.mxu0 %v8574_v24  ;;  %1684 = vmatprep.subr.bf16.mxu1 %v8577_v26  ;;  %v8642_v24 = vld [vmem:[#allocation3 + $0x104] ss:$16 sps:$4 sm:$0xff]   ;;  %v8645_v26 = vld [vmem:[#allocation3 + $0x10c] ss:$16 sps:$4 sm:$0xff]  }
 0x12b   : > { %1599 = vmatpush1.bf16.msra.mxu0 %v8572_v30  ;;  %1685 = vmatpush1.bf16.msra.mxu1 %v8575_v31  ;;  %v8643_v30 = vld [vmem:[#allocation3 + $0x108] ss:$16 sps:$4 sm:$0xff]   ;;  %v8648_v31 = vld [vmem:[#allocation3 + $0x124] ss:$16 sps:$4 sm:$0xff]  }
 0x12c   : > { %1600 = vmatprep.subr.bf16.mxu0 %v8580_v34  ;;  %1686 = vmatprep.subr.bf16.mxu1 %v8583_v35  ;;  %v8646_v34 = vld [vmem:[#allocation3 + $0x120] ss:$16 sps:$4 sm:$0xff]   ;;  %v8649_v35 = vld [vmem:[#allocation3 + $0x128] ss:$16 sps:$4 sm:$0xff]  }
 0x12f   : > { %1601 = vmatpush1.bf16.msra.mxu0 %v8578_v36  ;;  %1687 = vmatpush1.bf16.msra.mxu1 %v8581_v37  ;;  %v8654_v36 = vld [vmem:[#allocation3 + $0x144] ss:$16 sps:$4 sm:$0xff]   ;;  %v8657_v37 = vld [vmem:[#allocation3 + $0x14c] ss:$16 sps:$4 sm:$0xff]  }
 0x130   : > { %1602 = vmatprep.subr.bf16.mxu0 %v8586_v38  ;;  %1688 = vmatprep.subr.bf16.mxu1 %v8589_v42  ;;  %v8663_v38 = vld [vmem:[#allocation3 + $0x16c] ss:$16 sps:$4 sm:$0xff]   ;;  %v8658_v42 = vld [vmem:[#allocation3 + $0x160] ss:$16 sps:$4 sm:$0xff]  }
 0x133   : > { %1603 = vmatpush1.bf16.msra.mxu0 %v8584_v43  ;;  %1689 = vmatpush1.bf16.msra.mxu1 %v8587_v44  ;;  %v8661_v43 = vld [vmem:[#allocation3 + $0x168] ss:$16 sps:$4 sm:$0xff]   ;;  %v8666_v44 = vld [vmem:[#allocation3 + $0x184] ss:$16 sps:$4 sm:$0xff]  }
 0x134   : > { %2345 = vmatprep.subr.bf16.mxu0 %v8593_v50  ;;  %2431 = vmatprep.subr.bf16.mxu1 %v8596_v51  ;;  %v8667_v50 = vld [vmem:[#allocation3 + $0x188] ss:$16 sps:$4 sm:$0xff]   ;;  %v8672_v51 = vld [vmem:[#allocation3 + $0x1a4] ss:$16 sps:$4 sm:$0xff]  }
 0x136   : > { %1605 = vmatmul.mubr.bf16.vlgmr.msra.gmra.mrb[0].mxu0 %v872_v54  ;;  %1691 = vmatmul.mubr.bf16.vlgmr.msra.gmra.mrb[0].mxu1 %v872_v54  ;;  %v8673_v54 = vld [vmem:[#allocation3 + $0x1a8] ss:$16 sps:$4 sm:$0xff]  }
 0x137   : > { %2346 = vmatpush1.bf16.msra.mxu0 %v8591_v52  ;;  %2432 = vmatpush1.bf16.msra.mxu1 %v8594_v53  ;;  %v8675_v52 = vld [vmem:[#allocation3 + $0x1ac] ss:$16 sps:$4 sm:$0xff]   ;;  %v8670_v53 = vld [vmem:[#allocation3 + $0x1a0] ss:$16 sps:$4 sm:$0xff]  }
 0x138   : > { %2347 = vmatprep.subr.bf16.mxu0 %v8600_v55  ;;  %2433 = vmatprep.subr.bf16.mxu1 %v8603_v56  ;;  %v8678_v55 = vld [vmem:[#allocation3 + $0x1c4] ss:$16 sps:$4 sm:$0xff]   ;;  %v8681_v56 = vld [vmem:[#allocation3 + $0x1cc] ss:$16 sps:$4 sm:$0xff]  }
 0x139   : > { %2377 = vmatprep.mubr.bf16.mxu0 %v10154_v27  ;;  %2463 = vmatprep.mubr.bf16.mxu1 %v10154_v27  ;;  %v8619_v27 = vld [vmem:[#allocation3 + $0x88] ss:$16 sps:$4 sm:$0xff]  }
 0x13b   : > { %2348 = vmatpush1.bf16.msra.mxu0 %v8598_v57  ;;  %2434 = vmatpush1.bf16.msra.mxu1 %v8601_v58  ;;  %v8676_v57 = vld [vmem:[#allocation3 + $0x1c0] ss:$16 sps:$4 sm:$0xff]   ;;  %v8679_v58 = vld [vmem:[#allocation3 + $0x1c8] ss:$16 sps:$4 sm:$0xff]  }
 0x13c   : > { %2349 = vmatprep.subr.bf16.mxu0 %v8606_v59  ;;  %2435 = vmatprep.subr.bf16.mxu1 %v8609_v61  ;;  %v8684_v59 = vld [vmem:[#allocation3 + $0x1e4] ss:$16 sps:$4 sm:$0xff]   ;;  %v8687_v61 = vld [vmem:[#allocation3 + $0x1ec] ss:$16 sps:$4 sm:$0xff]  }
 0x13f   : > { %2350 = vmatpush1.bf16.msra.mxu0 %v8604_v62  ;;  %2436 = vmatpush1.bf16.msra.mxu1 %v8607_v0  ;;  %v8682_v62 = vld [vmem:[#allocation3 + $0x1e0] ss:$16 sps:$4 sm:$0xff]   ;;  %v8685_v0 = vld [vmem:[#allocation3 + $0x1e8] ss:$16 sps:$4 sm:$0xff]  }
 0x140   : > { %2351 = vmatprep.subr.bf16.mxu0 %v8612_v1  ;;  %2437 = vmatprep.subr.bf16.mxu1 %v8615_v2  ;;  %v8690_v1 = vld [vmem:[#allocation3 + $0x204] ss:$16 sps:$4 sm:$0xff]   ;;  %v8693_v2 = vld [vmem:[#allocation3 + $0x20c] ss:$16 sps:$4 sm:$0xff]  }
 0x143   : > { %2352 = vmatpush1.bf16.msra.mxu0 %v8610_v3  ;;  %2438 = vmatpush1.bf16.msra.mxu1 %v8613_v4  ;;  %v8688_v3 = vld [vmem:[#allocation3 + $0x200] ss:$16 sps:$4 sm:$0xff]   ;;  %v8691_v4 = vld [vmem:[#allocation3 + $0x208] ss:$16 sps:$4 sm:$0xff]  }
 0x144   : > { %2353 = vmatprep.subr.bf16.mxu0 %v8618_v5  ;;  %2439 = vmatprep.subr.bf16.mxu1 %v8621_v6  ;;  %v8696_v5 = vld [vmem:[#allocation3 + $0x224] ss:$16 sps:$4 sm:$0xff]   ;;  %v8699_v6 = vld [vmem:[#allocation3 + $0x22c] ss:$16 sps:$4 sm:$0xff]  }
 0x147   : > { %2354 = vmatpush1.bf16.msra.mxu0 %v8616_v7  ;;  %2440 = vmatpush1.bf16.msra.mxu1 %v8619_v27  ;;  %v8694_v7 = vld [vmem:[#allocation3 + $0x220] ss:$16 sps:$4 sm:$0xff]   ;;  %v8697_v27 = vld [vmem:[#allocation3 + $0x228] ss:$16 sps:$4 sm:$0xff]  }
 0x148   : > { %2355 = vmatprep.subr.bf16.mxu0 %v8624_v8  ;;  %2441 = vmatprep.subr.bf16.mxu1 %v8627_v9  ;;  %v8702_v8 = vld [vmem:[#allocation3 + $0x244] ss:$16 sps:$4 sm:$0xff]   ;;  %v8705_v9 = vld [vmem:[#allocation3 + $0x24c] ss:$16 sps:$4 sm:$0xff]  }
 0x14b   : > { %2356 = vmatpush1.bf16.msra.mxu0 %v8622_v10  ;;  %2442 = vmatpush1.bf16.msra.mxu1 %v8625_v11  ;;  %v8700_v10 = vld [vmem:[#allocation3 + $0x240] ss:$16 sps:$4 sm:$0xff]   ;;  %v8703_v11 = vld [vmem:[#allocation3 + $0x248] ss:$16 sps:$4 sm:$0xff]  }
 0x14c   : > { %2357 = vmatprep.subr.bf16.mxu0 %v8630_v15  ;;  %2443 = vmatprep.subr.bf16.mxu1 %v8633_v16  ;;  %v8708_v15 = vld [vmem:[#allocation3 + $0x264] ss:$16 sps:$4 sm:$0xff]   ;;  %v8706_v16 = vld [vmem:[#allocation3 + $0x260] ss:$16 sps:$4 sm:$0xff]  }
 0x14f   : > { %2358 = vmatpush1.bf16.msra.mxu0 %v8628_v17  ;;  %2444 = vmatpush1.bf16.msra.mxu1 %v8631_v18  ;;  %v8709_v17 = vld [vmem:[#allocation3 + $0x268] ss:$16 sps:$4 sm:$0xff]   ;;  %v8714_v18 = vld [vmem:[#allocation3 + $0x284] ss:$16 sps:$4 sm:$0xff]  }
 0x150   : > { %2359 = vmatprep.subr.bf16.mxu0 %v8636_v19  ;;  %2445 = vmatprep.subr.bf16.mxu1 %v8639_v20  ;;  %v8717_v19 = vld [vmem:[#allocation3 + $0x28c] ss:$16 sps:$4 sm:$0xff]   ;;  %v8712_v20 = vld [vmem:[#allocation3 + $0x280] ss:$16 sps:$4 sm:$0xff]  }
 0x153   : > { %2360 = vmatpush1.bf16.msra.mxu0 %v8634_v21  ;;  %2446 = vmatpush1.bf16.msra.mxu1 %v8637_v22  ;;  %v8720_v21 = vld [vmem:[#allocation3 + $0x2a4] ss:$16 sps:$4 sm:$0xff]   ;;  %v8723_v22 = vld [vmem:[#allocation3 + $0x2ac] ss:$16 sps:$4 sm:$0xff]  }
 0x154   : > { %2361 = vmatprep.subr.bf16.mxu0 %v8642_v24  ;;  %2447 = vmatprep.subr.bf16.mxu1 %v8645_v26  ;;  %v8718_v24 = vld [vmem:[#allocation3 + $0x2a0] ss:$16 sps:$4 sm:$0xff]   ;;  %v8721_v26 = vld [vmem:[#allocation3 + $0x2a8] ss:$16 sps:$4 sm:$0xff]  }
 0x157   : > { %2362 = vmatpush1.bf16.msra.mxu0 %v8640_v29  ;;  %2448 = vmatpush1.bf16.msra.mxu1 %v8643_v30  ;;  %v8726_v29 = vld [vmem:[#allocation3 + $0x2c4] ss:$16 sps:$4 sm:$0xff]   ;;  %v8729_v30 = vld [vmem:[#allocation3 + $0x2cc] ss:$16 sps:$4 sm:$0xff]  }
 0x158   : > { %2363 = vmatprep.subr.bf16.mxu0 %v8648_v31  ;;  %2449 = vmatprep.subr.bf16.mxu1 %v8651_v33  ;;  %v8724_v31 = vld [vmem:[#allocation3 + $0x2c0] ss:$16 sps:$4 sm:$0xff]   ;;  %v8727_v33 = vld [vmem:[#allocation3 + $0x2c8] ss:$16 sps:$4 sm:$0xff]  }
 0x15b   : > { %2364 = vmatpush1.bf16.msra.mxu0 %v8646_v34  ;;  %2450 = vmatpush1.bf16.msra.mxu1 %v8649_v35  ;;  %v8732_v34 = vld [vmem:[#allocation3 + $0x2e4] ss:$16 sps:$4 sm:$0xff]   ;;  %v8735_v35 = vld [vmem:[#allocation3 + $0x2ec] ss:$16 sps:$4 sm:$0xff]  }
 0x15c   : > { %2365 = vmatprep.subr.bf16.mxu0 %v8654_v36  ;;  %2451 = vmatprep.subr.bf16.mxu1 %v8657_v37  ;;  %v8730_v36 = vld [vmem:[#allocation3 + $0x2e0] ss:$16 sps:$4 sm:$0xff]   ;;  %v8733_v37 = vld [vmem:[#allocation3 + $0x2e8] ss:$16 sps:$4 sm:$0xff]  }
 0x15f   : > { %2366 = vmatpush1.bf16.msra.mxu0 %v8652_v39  ;;  %2452 = vmatpush1.bf16.msra.mxu1 %v8655_v41  ;;  %v8738_v39 = vld [vmem:[#allocation3 + $0x304] ss:$16 sps:$4 sm:$0xff]   ;;  %v8741_v41 = vld [vmem:[#allocation3 + $0x30c] ss:$16 sps:$4 sm:$0xff]  }
 0x160   : > { %2367 = vmatprep.subr.bf16.mxu0 %v8660_v40  ;;  %2453 = vmatprep.subr.bf16.mxu1 %v8663_v38  ;;  %v8736_v40 = vld [vmem:[#allocation3 + $0x300] ss:$16 sps:$4 sm:$0xff]   ;;  %v8739_v38 = vld [vmem:[#allocation3 + $0x308] ss:$16 sps:$4 sm:$0xff]  }
 0x163   : > { %2368 = vmatpush1.bf16.msra.mxu0 %v8658_v42  ;;  %2454 = vmatpush1.bf16.msra.mxu1 %v8661_v43  ;;  %v8744_v42 = vld [vmem:[#allocation3 + $0x324] ss:$16 sps:$4 sm:$0xff]   ;;  %v8747_v43 = vld [vmem:[#allocation3 + $0x32c] ss:$16 sps:$4 sm:$0xff]  }
 0x164   : > { %2369 = vmatprep.subr.bf16.mxu0 %v8666_v44  ;;  %2455 = vmatprep.subr.bf16.mxu1 %v8669_v45  ;;  %v8742_v44 = vld [vmem:[#allocation3 + $0x320] ss:$16 sps:$4 sm:$0xff]   ;;  %v8745_v45 = vld [vmem:[#allocation3 + $0x328] ss:$16 sps:$4 sm:$0xff]  }
 0x167   : > { %2370 = vmatpush1.bf16.msra.mxu0 %v8664_v49  ;;  %2456 = vmatpush1.bf16.msra.mxu1 %v8667_v50  ;;  %v8750_v49 = vld [vmem:[#allocation3 + $0x344] ss:$16 sps:$4 sm:$0xff]   ;;  %v8753_v50 = vld [vmem:[#allocation3 + $0x34c] ss:$16 sps:$4 sm:$0xff]  }
 0x168   : > { %2371 = vmatprep.subr.bf16.mxu0 %v8672_v51  ;;  %2457 = vmatprep.subr.bf16.mxu1 %v8675_v52  ;;  %v8748_v51 = vld [vmem:[#allocation3 + $0x340] ss:$16 sps:$4 sm:$0xff]   ;;  %v8751_v52 = vld [vmem:[#allocation3 + $0x348] ss:$16 sps:$4 sm:$0xff]  }
 0x16b   : > { %2372 = vmatpush1.bf16.msra.mxu0 %v8670_v53  ;;  %2458 = vmatpush1.bf16.msra.mxu1 %v8673_v54  ;;  %v8756_v53 = vld [vmem:[#allocation3 + $0x364] ss:$16 sps:$4 sm:$0xff]   ;;  %v8759_v54 = vld [vmem:[#allocation3 + $0x36c] ss:$16 sps:$4 sm:$0xff]  }
 0x16c   : > { %2373 = vmatprep.subr.bf16.mxu0 %v8678_v55  ;;  %2459 = vmatprep.subr.bf16.mxu1 %v8681_v56  ;;  %v8754_v55 = vld [vmem:[#allocation3 + $0x360] ss:$16 sps:$4 sm:$0xff]   ;;  %v8757_v56 = vld [vmem:[#allocation3 + $0x368] ss:$16 sps:$4 sm:$0xff]  }
 0x16f   : > { %2374 = vmatpush1.bf16.msra.mxu0 %v8676_v57  ;;  %2460 = vmatpush1.bf16.msra.mxu1 %v8679_v58  ;;  %v8762_v57 = vld [vmem:[#allocation3 + $0x384] ss:$16 sps:$4 sm:$0xff]   ;;  %v8765_v58 = vld [vmem:[#allocation3 + $0x38c] ss:$16 sps:$4 sm:$0xff]  }
 0x170   : > { %2375 = vmatprep.subr.bf16.mxu0 %v8684_v59  ;;  %2461 = vmatprep.subr.bf16.mxu1 %v8687_v61  ;;  %v8760_v59 = vld [vmem:[#allocation3 + $0x380] ss:$16 sps:$4 sm:$0xff]   ;;  %v8763_v61 = vld [vmem:[#allocation3 + $0x388] ss:$16 sps:$4 sm:$0xff]  }
 0x173   : > { %2376 = vmatpush1.bf16.msra.mxu0 %v8682_v62  ;;  %2462 = vmatpush1.bf16.msra.mxu1 %v8685_v0  ;;  %v8768_v62 = vld [vmem:[#allocation3 + $0x3a4] ss:$16 sps:$4 sm:$0xff]   ;;  %v8771_v0 = vld [vmem:[#allocation3 + $0x3ac] ss:$16 sps:$4 sm:$0xff]  }
 0x174   : > { %2388 = vmatprep.subr.bf16.mxu0 %v8690_v1  ;;  %2474 = vmatprep.subr.bf16.mxu1 %v8693_v2  ;;  %v8766_v1 = vld [vmem:[#allocation3 + $0x3a0] ss:$16 sps:$4 sm:$0xff]   ;;  %v8769_v2 = vld [vmem:[#allocation3 + $0x3a8] ss:$16 sps:$4 sm:$0xff]  }
 0x176   : > { %2378 = vmatmul.mubr.bf16.vlgmr.msra.gmra.mrb[0].mxu0 %v10157_v28  ;;  %2464 = vmatmul.mubr.bf16.vlgmr.msra.gmra.mrb[0].mxu1 %v10157_v28  ;;  %v8711_v28 = vld [vmem:[#allocation3 + $0x26c] ss:$16 sps:$4 sm:$0xff]  }
 0x177   : > { %2389 = vmatpush1.bf16.msra.mxu0 %v8688_v3  ;;  %2475 = vmatpush1.bf16.msra.mxu1 %v8691_v4  ;;  %v8774_v3 = vld [vmem:[#allocation3 + $0x3c4] ss:$16 sps:$4 sm:$0xff]   ;;  %v8777_v4 = vld [vmem:[#allocation3 + $0x3cc] ss:$16 sps:$4 sm:$0xff]  }
 0x178   : > { %2390 = vmatprep.subr.bf16.mxu0 %v8696_v5  ;;  %2476 = vmatprep.subr.bf16.mxu1 %v8699_v6  ;;  %v8772_v5 = vld [vmem:[#allocation3 + $0x3c0] ss:$16 sps:$4 sm:$0xff]   ;;  %v8775_v6 = vld [vmem:[#allocation3 + $0x3c8] ss:$16 sps:$4 sm:$0xff]  }
 0x179   : > { %2420 = vmatprep.mubr.bf16.mxu0 %v10191_v63  ;;  %2506 = vmatprep.mubr.bf16.mxu1 %v10191_v63  ;;  %v8715_v63 = vld [vmem:[#allocation3 + $0x288] ss:$16 sps:$4 sm:$0xff]  }
 0x17b   : > { %2391 = vmatpush1.bf16.msra.mxu0 %v8694_v7  ;;  %2477 = vmatpush1.bf16.msra.mxu1 %v8697_v27  ;;  %v8780_v7 = vld [vmem:[#allocation3 + $0x3e4] ss:$16 sps:$4 sm:$0xff]  }
 0x17c   : > { %2392 = vmatprep.subr.bf16.mxu0 %v8702_v8  ;;  %2478 = vmatprep.subr.bf16.mxu1 %v8705_v9  ;;  %v10214_v27 = vld [vmem:[#allocation2] sm:$0xee]  ;;  %v8783_v8 = vld [vmem:[#allocation3 + $0x3ec] ss:$16 sps:$4 sm:$0xff]  }
 0x17d   : > { %v8778_v9 = vld [vmem:[#allocation3 + $0x3e0] ss:$16 sps:$4 sm:$0xff]  }
 0x17f   : > { %2393 = vmatpush1.bf16.msra.mxu0 %v8700_v10  ;;  %2479 = vmatpush1.bf16.msra.mxu1 %v8703_v11  ;;  %v7546_v10 = vcombine.high %v10214_v27, %v10149_v25  ;;  %v8781_v11 = vld [vmem:[#allocation3 + $0x3e8] ss:$16 sps:$4 sm:$0xff]  }
 0x180   : > { %2394 = vmatprep.subr.bf16.mxu0 %v8708_v15  ;;  %2480 = vmatprep.subr.bf16.mxu1 %v8711_v28  ;;  %v8786_v15 = vld [vmem:[#allocation3 + $0x804] ss:$16 sps:$4 sm:$0xff]   ;;  %v8789_v28 = vld [vmem:[#allocation3 + $0x80c] ss:$16 sps:$4 sm:$0xff]  }
 0x183   : > { %2395 = vmatpush1.bf16.msra.mxu0 %v8706_v16  ;;  %2481 = vmatpush1.bf16.msra.mxu1 %v8709_v17  ;;  %v8784_v16 = vld [vmem:[#allocation3 + $0x800] ss:$16 sps:$4 sm:$0xff]   ;;  %v2662_v17 = vrot.slane %v7546_v10, 1 }
 0x184   : > { %2396 = vmatprep.subr.bf16.mxu0 %v8714_v18  ;;  %2482 = vmatprep.subr.bf16.mxu1 %v8717_v19  ;;  %v2663_v18 = vrot.slane %v10163_v47, 1  ;;  %v8787_v19 = vld [vmem:[#allocation3 + $0x808] ss:$16 sps:$4 sm:$0xff]   ;;  %v8801_v47 = vld [vmem:[#allocation3 + $0x84c] ss:$16 sps:$4 sm:$0xff]  }
 0x185   : > { %v8856_v10 = vld [vmem:[#allocation3 + $0x980] ss:$16 sps:$4 sm:$0xff]  }
 0x187   : > { %2397 = vmatpush1.bf16.msra.mxu0 %v8712_v20  ;;  %2483 = vmatpush1.bf16.msra.mxu1 %v8715_v63  ;;  %v8792_v20 = vld [vmem:[#allocation3 + $0x824] ss:$16 sps:$4 sm:$0xff]   ;;  %v8795_v63 = vld [vmem:[#allocation3 + $0x82c] ss:$16 sps:$4 sm:$0xff]  }
 0x188   : > { %2398 = vmatprep.subr.bf16.mxu0 %v8720_v21  ;;  %2484 = vmatprep.subr.bf16.mxu1 %v8723_v22  ;;  %v8790_v21 = vld [vmem:[#allocation3 + $0x820] ss:$16 sps:$4 sm:$0xff]   ;;  %v2664_v22 = vsel %vm2658_vm4, %v2662_v17, %v2663_v18  ;;  %v8865_v17 = vld [vmem:[#allocation3 + $0x9a8] ss:$16 sps:$4 sm:$0xff]   ;;  %v8870_v18 = vld [vmem:[#allocation3 + $0x9c4] ss:$16 sps:$4 sm:$0xff]  }
 0x18b   : > { %2399 = vmatpush1.bf16.msra.mxu0 %v8718_v24  ;;  %2485 = vmatpush1.bf16.msra.mxu1 %v8721_v26  ;;  %v8793_v24 = vld [vmem:[#allocation3 + $0x828] ss:$16 sps:$4 sm:$0xff]   ;;  %v8798_v26 = vld [vmem:[#allocation3 + $0x844] ss:$16 sps:$4 sm:$0xff]  }
 0x18c   : > { %2400 = vmatprep.subr.bf16.mxu0 %v8726_v29  ;;  %2486 = vmatprep.subr.bf16.mxu1 %v8729_v30  ;;  %v8796_v29 = vld [vmem:[#allocation3 + $0x840] ss:$16 sps:$4 sm:$0xff]   ;;  %v8799_v30 = vld [vmem:[#allocation3 + $0x848] ss:$16 sps:$4 sm:$0xff]  }
 0x18f   : > { %2401 = vmatpush1.bf16.msra.mxu0 %v8724_v31  ;;  %2487 = vmatpush1.bf16.msra.mxu1 %v8727_v33  ;;  %v8804_v31 = vld [vmem:[#allocation3 + $0x864] ss:$16 sps:$4 sm:$0xff]   ;;  %v8802_v33 = vld [vmem:[#allocation3 + $0x860] ss:$16 sps:$4 sm:$0xff]  }
 0x190   : > { %2402 = vmatprep.subr.bf16.mxu0 %v8732_v34  ;;  %2488 = vmatprep.subr.bf16.mxu1 %v8735_v35  ;;  %v8805_v34 = vld [vmem:[#allocation3 + $0x868] ss:$16 sps:$4 sm:$0xff]   ;;  %v8810_v35 = vld [vmem:[#allocation3 + $0x884] ss:$16 sps:$4 sm:$0xff]  }
 0x193   : > { %2403 = vmatpush1.bf16.msra.mxu0 %v8730_v36  ;;  %2489 = vmatpush1.bf16.msra.mxu1 %v8733_v37  ;;  %v8813_v36 = vld [vmem:[#allocation3 + $0x88c] ss:$16 sps:$4 sm:$0xff]   ;;  %v8808_v37 = vld [vmem:[#allocation3 + $0x880] ss:$16 sps:$4 sm:$0xff]  }
 0x194   : > { %2404 = vmatprep.subr.bf16.mxu0 %v8738_v39  ;;  %2490 = vmatprep.subr.bf16.mxu1 %v8741_v41  ;;  %v8811_v39 = vld [vmem:[#allocation3 + $0x888] ss:$16 sps:$4 sm:$0xff]   ;;  %v8816_v41 = vld [vmem:[#allocation3 + $0x8a4] ss:$16 sps:$4 sm:$0xff]  }
 0x197   : > { %2405 = vmatpush1.bf16.msra.mxu0 %v8736_v40  ;;  %2491 = vmatpush1.bf16.msra.mxu1 %v8739_v38  ;;  %v8819_v40 = vld [vmem:[#allocation3 + $0x8ac] ss:$16 sps:$4 sm:$0xff]   ;;  %v8814_v38 = vld [vmem:[#allocation3 + $0x8a0] ss:$16 sps:$4 sm:$0xff]  }
 0x198   : > { %2406 = vmatprep.subr.bf16.mxu0 %v8744_v42  ;;  %2492 = vmatprep.subr.bf16.mxu1 %v8747_v43  ;;  %v8817_v42 = vld [vmem:[#allocation3 + $0x8a8] ss:$16 sps:$4 sm:$0xff]   ;;  %v8822_v43 = vld [vmem:[#allocation3 + $0x8c4] ss:$16 sps:$4 sm:$0xff]  }
 0x19b   : > { %2407 = vmatpush1.bf16.msra.mxu0 %v8742_v44  ;;  %2493 = vmatpush1.bf16.msra.mxu1 %v8745_v45  ;;  %v8825_v44 = vld [vmem:[#allocation3 + $0x8cc] ss:$16 sps:$4 sm:$0xff]   ;;  %v8820_v45 = vld [vmem:[#allocation3 + $0x8c0] ss:$16 sps:$4 sm:$0xff]  }
 0x19c   : > { %2408 = vmatprep.subr.bf16.mxu0 %v8750_v49  ;;  %2494 = vmatprep.subr.bf16.mxu1 %v8753_v50  ;;  %v8823_v49 = vld [vmem:[#allocation3 + $0x8c8] ss:$16 sps:$4 sm:$0xff]   ;;  %v8828_v50 = vld [vmem:[#allocation3 + $0x8e4] ss:$16 sps:$4 sm:$0xff]  }
 0x19f   : > { %2409 = vmatpush1.bf16.msra.mxu0 %v8748_v51  ;;  %2495 = vmatpush1.bf16.msra.mxu1 %v8751_v52  ;;  %v8831_v51 = vld [vmem:[#allocation3 + $0x8ec] ss:$16 sps:$4 sm:$0xff]   ;;  %v8826_v52 = vld [vmem:[#allocation3 + $0x8e0] ss:$16 sps:$4 sm:$0xff]  }
 0x1a0   : > { %2410 = vmatprep.subr.bf16.mxu0 %v8756_v53  ;;  %2496 = vmatprep.subr.bf16.mxu1 %v8759_v54  ;;  %v8829_v53 = vld [vmem:[#allocation3 + $0x8e8] ss:$16 sps:$4 sm:$0xff]   ;;  %v8834_v54 = vld [vmem:[#allocation3 + $0x904] ss:$16 sps:$4 sm:$0xff]  }
 0x1a3   : > { %2411 = vmatpush1.bf16.msra.mxu0 %v8754_v55  ;;  %2497 = vmatpush1.bf16.msra.mxu1 %v8757_v56  ;;  %v8837_v55 = vld [vmem:[#allocation3 + $0x90c] ss:$16 sps:$4 sm:$0xff]   ;;  %v8832_v56 = vld [vmem:[#allocation3 + $0x900] ss:$16 sps:$4 sm:$0xff]  }
 0x1a4   : > { %2412 = vmatprep.subr.bf16.mxu0 %v8762_v57  ;;  %2498 = vmatprep.subr.bf16.mxu1 %v8765_v58  ;;  %v8835_v57 = vld [vmem:[#allocation3 + $0x908] ss:$16 sps:$4 sm:$0xff]   ;;  %v8840_v58 = vld [vmem:[#allocation3 + $0x924] ss:$16 sps:$4 sm:$0xff]  }
 0x1a7   : > { %2413 = vmatpush1.bf16.msra.mxu0 %v8760_v59  ;;  %2499 = vmatpush1.bf16.msra.mxu1 %v8763_v61  ;;  %v8843_v59 = vld [vmem:[#allocation3 + $0x92c] ss:$16 sps:$4 sm:$0xff]   ;;  %v8838_v61 = vld [vmem:[#allocation3 + $0x920] ss:$16 sps:$4 sm:$0xff]  }
 0x1a8   : > { %2414 = vmatprep.subr.bf16.mxu0 %v8768_v62  ;;  %2500 = vmatprep.subr.bf16.mxu1 %v8771_v0  ;;  %v8841_v62 = vld [vmem:[#allocation3 + $0x928] ss:$16 sps:$4 sm:$0xff]   ;;  %v8846_v0 = vld [vmem:[#allocation3 + $0x944] ss:$16 sps:$4 sm:$0xff]  }
 0x1ab   : > { %2415 = vmatpush1.bf16.msra.mxu0 %v8766_v1  ;;  %2501 = vmatpush1.bf16.msra.mxu1 %v8769_v2  ;;  %v8849_v1 = vld [vmem:[#allocation3 + $0x94c] ss:$16 sps:$4 sm:$0xff]   ;;  %v8844_v2 = vld [vmem:[#allocation3 + $0x940] ss:$16 sps:$4 sm:$0xff]  }
 0x1ac   : > { %2416 = vmatprep.subr.bf16.mxu0 %v8774_v3  ;;  %2502 = vmatprep.subr.bf16.mxu1 %v8777_v4  ;;  %v8847_v3 = vld [vmem:[#allocation3 + $0x948] ss:$16 sps:$4 sm:$0xff]   ;;  %v8852_v4 = vld [vmem:[#allocation3 + $0x964] ss:$16 sps:$4 sm:$0xff]  }
 0x1af   : > { %2417 = vmatpush1.bf16.msra.mxu0 %v8772_v5  ;;  %2503 = vmatpush1.bf16.msra.mxu1 %v8775_v6  ;;  %v8855_v5 = vld [vmem:[#allocation3 + $0x96c] ss:$16 sps:$4 sm:$0xff]   ;;  %v8850_v6 = vld [vmem:[#allocation3 + $0x960] ss:$16 sps:$4 sm:$0xff]  }
 0x1b0   : > { %2418 = vmatprep.subr.bf16.mxu0 %v8780_v7  ;;  %2504 = vmatprep.subr.bf16.mxu1 %v8783_v8  ;;  %v8853_v7 = vld [vmem:[#allocation3 + $0x968] ss:$16 sps:$4 sm:$0xff]   ;;  %v8858_v8 = vld [vmem:[#allocation3 + $0x984] ss:$16 sps:$4 sm:$0xff]  }
 0x1b3   : > { %2419 = vmatpush1.bf16.msra.mxu0 %v8778_v9  ;;  %2505 = vmatpush1.bf16.msra.mxu1 %v8781_v11  ;;  %v8861_v9 = vld [vmem:[#allocation3 + $0x98c] ss:$16 sps:$4 sm:$0xff]   ;;  %v8859_v11 = vld [vmem:[#allocation3 + $0x988] ss:$16 sps:$4 sm:$0xff]  }
 0x1b4   : > { %3315 = vmatprep.subr.bf16.mxu0 %v8786_v15  ;;  %3401 = vmatprep.subr.bf16.mxu1 %v8789_v28  ;;  %v8864_v15 = vld [vmem:[#allocation3 + $0x9a4] ss:$16 sps:$4 sm:$0xff]   ;;  %v8867_v28 = vld [vmem:[#allocation3 + $0x9ac] ss:$16 sps:$4 sm:$0xff]  }
 0x1b6   : > { %2421 = vmatmul.mubr.bf16.vlgmr.msra.gmra.mrb[0].mxu0 %v10199_v23  ;;  %2507 = vmatmul.mubr.bf16.vlgmr.msra.gmra.mrb[0].mxu1 %v10199_v23  ;;  %v8807_v23 = vld [vmem:[#allocation3 + $0x86c] ss:$16 sps:$4 sm:$0xff]  }
 0x1b7   : > { %3316 = vmatpush1.bf16.msra.mxu0 %v8784_v16  ;;  %3402 = vmatpush1.bf16.msra.mxu1 %v8787_v19  ;;  %v8862_v16 = vld [vmem:[#allocation3 + $0x9a0] ss:$16 sps:$4 sm:$0xff]   ;;  %v8873_v19 = vld [vmem:[#allocation3 + $0x9cc] ss:$16 sps:$4 sm:$0xff]  }
 0x1b8   : > { %3317 = vmatprep.subr.bf16.mxu0 %v8792_v20  ;;  %3403 = vmatprep.subr.bf16.mxu1 %v8795_v63  ;;  %v8868_v20 = vld [vmem:[#allocation3 + $0x9c0] ss:$16 sps:$4 sm:$0xff]   ;;  %v8871_v63 = vld [vmem:[#allocation3 + $0x9c8] ss:$16 sps:$4 sm:$0xff]  }
 0x1b9   : > { %3347 = vmatprep.mubr.bf16.mxu0 %v2664_v22  ;;  %3433 = vmatprep.mubr.bf16.mxu1 %v2664_v22  ;;  %v8876_v22 = vld [vmem:[#allocation3 + $0x9e4] ss:$16 sps:$4 sm:$0xff]  }
 0x1bb   : > { %3318 = vmatpush1.bf16.msra.mxu0 %v8790_v21  ;;  %3404 = vmatpush1.bf16.msra.mxu1 %v8793_v24  ;;  %v10222_v21 = vld [vmem:[#allocation2 + $0x8] sm:$0xee] }
 0x1bc   : > { %3319 = vmatprep.subr.bf16.mxu0 %v8798_v26  ;;  %3405 = vmatprep.subr.bf16.mxu1 %v8801_v47  ;;  %v8879_v24 = vld [vmem:[#allocation3 + $0x9ec] ss:$16 sps:$4 sm:$0xff]   ;;  %v7545_v26 = vcombine.low %v10214_v27, %v10149_v25  ;;  %v8874_v47 = vld [vmem:[#allocation3 + $0x9e0] ss:$16 sps:$4 sm:$0xff]  }
 0x1bd   : > { %v8891_v25 = vld [vmem:[#allocation3 + $0xa2c] ss:$16 sps:$4 sm:$0xff]  }
 0x1bf   : > { %3320 = vmatpush1.bf16.msra.mxu0 %v8796_v29  ;;  %3406 = vmatpush1.bf16.msra.mxu1 %v8799_v30  ;;  %v8877_v29 = vld [vmem:[#allocation3 + $0x9e8] ss:$16 sps:$4 sm:$0xff]   ;;  %v8882_v30 = vld [vmem:[#allocation3 + $0xa04] ss:$16 sps:$4 sm:$0xff]  }
 0x1c0   : > { %3321 = vmatprep.subr.bf16.mxu0 %v8804_v31  ;;  %3407 = vmatprep.subr.bf16.mxu1 %v8807_v23  ;;  %v8885_v31 = vld [vmem:[#allocation3 + $0xa0c] ss:$16 sps:$4 sm:$0xff]   ;;  %v7548_v23 = vcombine.high %v10222_v21, %v10186_v60 }
 0x1c2   : > { %v2668_v27 = vrot.slane %v7548_v23, 1  ;;  %v8963_v23 = vld [vmem:[#allocation3 + $0xbac] ss:$16 sps:$4 sm:$0xff]  }
 0x1c3   : > { %3322 = vmatpush1.bf16.msra.mxu0 %v8802_v33  ;;  %3408 = vmatpush1.bf16.msra.mxu1 %v8805_v34  ;;  %v2659_v33 = vrot.slane %v7545_v26, 1  ;;  %v2660_v34 = vrot.slane %v10165_v48, 1  ;;  %v8894_v48 = vld [vmem:[#allocation3 + $0xa44] ss:$16 sps:$4 sm:$0xff]  }
 0x1c4   : > { %3323 = vmatprep.subr.bf16.mxu0 %v8810_v35  ;;  %3409 = vmatprep.subr.bf16.mxu1 %v8813_v36  ;;  %v8880_v35 = vld [vmem:[#allocation3 + $0xa00] ss:$16 sps:$4 sm:$0xff]   ;;  %v8883_v36 = vld [vmem:[#allocation3 + $0xa08] ss:$16 sps:$4 sm:$0xff]   ;;  %v8954_v26 = vld [vmem:[#allocation3 + $0xb84] ss:$16 sps:$4 sm:$0xff]  }
 0x1c7   : > { %3324 = vmatpush1.bf16.msra.mxu0 %v8808_v37  ;;  %3410 = vmatpush1.bf16.msra.mxu1 %v8811_v39  ;;  %v8888_v37 = vld [vmem:[#allocation3 + $0xa24] ss:$16 sps:$4 sm:$0xff]   ;;  %v2669_v39 = vrot.slane %v10195_v13, 1  ;;  %v8895_v13 = vld [vmem:[#allocation3 + $0xa48] ss:$16 sps:$4 sm:$0xff]  }
 0x1c8   : > { %3325 = vmatprep.subr.bf16.mxu0 %v8816_v41  ;;  %3411 = vmatprep.subr.bf16.mxu1 %v8819_v40  ;;  %v2661_v41 = vsel %vm2658_vm4, %v2659_v33, %v2660_v34  ;;  %v8886_v40 = vld [vmem:[#allocation3 + $0xa20] ss:$16 sps:$4 sm:$0xff]   ;;  %v8961_v34 = vld [vmem:[#allocation3 + $0xba8] ss:$16 sps:$4 sm:$0xff]  }
 0x1c9   : > { %v8958_v33 = vld [vmem:[#allocation3 + $0xba0] ss:$16 sps:$4 sm:$0xff]  }
 0x1cb   : > { %3326 = vmatpush1.bf16.msra.mxu0 %v8814_v38  ;;  %3412 = vmatpush1.bf16.msra.mxu1 %v8817_v42  ;;  %v8889_v38 = vld [vmem:[#allocation3 + $0xa28] ss:$16 sps:$4 sm:$0xff]   ;;  %v8897_v42 = vld [vmem:[#allocation3 + $0xa4c] ss:$16 sps:$4 sm:$0xff]  }
 0x1cc   : > { %3327 = vmatprep.subr.bf16.mxu0 %v8822_v43  ;;  %3413 = vmatprep.subr.bf16.mxu1 %v8825_v44  ;;  %v2670_v43 = vsel %vm2658_vm4, %v2668_v27, %v2669_v39  ;;  %v8892_v44 = vld [vmem:[#allocation3 + $0xa40] ss:$16 sps:$4 sm:$0xff]   ;;  %v8972_v27 = vld [vmem:[#allocation3 + $0xbe4] ss:$16 sps:$4 sm:$0xff]   ;;  %v8975_v39 = vld [vmem:[#allocation3 + $0xbec] ss:$16 sps:$4 sm:$0xff]  }
 0x1cf   : > { %3328 = vmatpush1.bf16.msra.mxu0 %v8820_v45  ;;  %3414 = vmatpush1.bf16.msra.mxu1 %v8823_v49  ;;  %v8900_v45 = vld [vmem:[#allocation3 + $0xa64] ss:$16 sps:$4 sm:$0xff]   ;;  %v8903_v49 = vld [vmem:[#allocation3 + $0xa6c] ss:$16 sps:$4 sm:$0xff]  }
 0x1d0   : > { %3329 = vmatprep.subr.bf16.mxu0 %v8828_v50  ;;  %3415 = vmatprep.subr.bf16.mxu1 %v8831_v51  ;;  %v8898_v50 = vld [vmem:[#allocation3 + $0xa60] ss:$16 sps:$4 sm:$0xff]   ;;  %v8901_v51 = vld [vmem:[#allocation3 + $0xa68] ss:$16 sps:$4 sm:$0xff]  }
 0x1d3   : > { %3330 = vmatpush1.bf16.msra.mxu0 %v8826_v52  ;;  %3416 = vmatpush1.bf16.msra.mxu1 %v8829_v53  ;;  %v8906_v52 = vld [vmem:[#allocation3 + $0xa84] ss:$16 sps:$4 sm:$0xff]   ;;  %v8909_v53 = vld [vmem:[#allocation3 + $0xa8c] ss:$16 sps:$4 sm:$0xff]  }
 0x1d4   : > { %3331 = vmatprep.subr.bf16.mxu0 %v8834_v54  ;;  %3417 = vmatprep.subr.bf16.mxu1 %v8837_v55  ;;  %v8904_v54 = vld [vmem:[#allocation3 + $0xa80] ss:$16 sps:$4 sm:$0xff]   ;;  %v8907_v55 = vld [vmem:[#allocation3 + $0xa88] ss:$16 sps:$4 sm:$0xff]  }
 0x1d7   : > { %3332 = vmatpush1.bf16.msra.mxu0 %v8832_v56  ;;  %3418 = vmatpush1.bf16.msra.mxu1 %v8835_v57  ;;  %v8912_v56 = vld [vmem:[#allocation3 + $0xaa4] ss:$16 sps:$4 sm:$0xff]   ;;  %v8915_v57 = vld [vmem:[#allocation3 + $0xaac] ss:$16 sps:$4 sm:$0xff]  }
 0x1d8   : > { %3333 = vmatprep.subr.bf16.mxu0 %v8840_v58  ;;  %3419 = vmatprep.subr.bf16.mxu1 %v8843_v59  ;;  %v8910_v58 = vld [vmem:[#allocation3 + $0xaa0] ss:$16 sps:$4 sm:$0xff]   ;;  %v8913_v59 = vld [vmem:[#allocation3 + $0xaa8] ss:$16 sps:$4 sm:$0xff]  }
 0x1db   : > { %3334 = vmatpush1.bf16.msra.mxu0 %v8838_v61  ;;  %3420 = vmatpush1.bf16.msra.mxu1 %v8841_v62  ;;  %v8918_v61 = vld [vmem:[#allocation3 + $0xac4] ss:$16 sps:$4 sm:$0xff]   ;;  %v8921_v62 = vld [vmem:[#allocation3 + $0xacc] ss:$16 sps:$4 sm:$0xff]  }
 0x1dc   : > { %3335 = vmatprep.subr.bf16.mxu0 %v8846_v0  ;;  %3421 = vmatprep.subr.bf16.mxu1 %v8849_v1  ;;  %v8916_v0 = vld [vmem:[#allocation3 + $0xac0] ss:$16 sps:$4 sm:$0xff]   ;;  %v8919_v1 = vld [vmem:[#allocation3 + $0xac8] ss:$16 sps:$4 sm:$0xff]  }
 0x1df   : > { %3336 = vmatpush1.bf16.msra.mxu0 %v8844_v2  ;;  %3422 = vmatpush1.bf16.msra.mxu1 %v8847_v3  ;;  %v8924_v2 = vld [vmem:[#allocation3 + $0xae4] ss:$16 sps:$4 sm:$0xff]   ;;  %v8927_v3 = vld [vmem:[#allocation3 + $0xaec] ss:$16 sps:$4 sm:$0xff]  }
 0x1e0   : > { %3337 = vmatprep.subr.bf16.mxu0 %v8852_v4  ;;  %3423 = vmatprep.subr.bf16.mxu1 %v8855_v5  ;;  %v8922_v4 = vld [vmem:[#allocation3 + $0xae0] ss:$16 sps:$4 sm:$0xff]   ;;  %v8925_v5 = vld [vmem:[#allocation3 + $0xae8] ss:$16 sps:$4 sm:$0xff]  }
 0x1e3   : > { %3338 = vmatpush1.bf16.msra.mxu0 %v8850_v6  ;;  %3424 = vmatpush1.bf16.msra.mxu1 %v8853_v7  ;;  %v8930_v6 = vld [vmem:[#allocation3 + $0xb04] ss:$16 sps:$4 sm:$0xff]   ;;  %v8933_v7 = vld [vmem:[#allocation3 + $0xb0c] ss:$16 sps:$4 sm:$0xff]  }
 0x1e4   : > { %3339 = vmatprep.subr.bf16.mxu0 %v8858_v8  ;;  %3425 = vmatprep.subr.bf16.mxu1 %v8861_v9  ;;  %v8928_v8 = vld [vmem:[#allocation3 + $0xb00] ss:$16 sps:$4 sm:$0xff]   ;;  %v8931_v9 = vld [vmem:[#allocation3 + $0xb08] ss:$16 sps:$4 sm:$0xff]  }
 0x1e7   : > { %3340 = vmatpush1.bf16.msra.mxu0 %v8856_v10  ;;  %3426 = vmatpush1.bf16.msra.mxu1 %v8859_v11  ;;  %v8936_v10 = vld [vmem:[#allocation3 + $0xb24] ss:$16 sps:$4 sm:$0xff]   ;;  %v8939_v11 = vld [vmem:[#allocation3 + $0xb2c] ss:$16 sps:$4 sm:$0xff]  }
 0x1e8   : > { %3341 = vmatprep.subr.bf16.mxu0 %v8864_v15  ;;  %3427 = vmatprep.subr.bf16.mxu1 %v8867_v28  ;;  %v8934_v15 = vld [vmem:[#allocation3 + $0xb20] ss:$16 sps:$4 sm:$0xff]   ;;  %v8937_v28 = vld [vmem:[#allocation3 + $0xb28] ss:$16 sps:$4 sm:$0xff]  }
 0x1eb   : > { %3342 = vmatpush1.bf16.msra.mxu0 %v8862_v16  ;;  %3428 = vmatpush1.bf16.msra.mxu1 %v8865_v17  ;;  %v8942_v16 = vld [vmem:[#allocation3 + $0xb44] ss:$16 sps:$4 sm:$0xff]   ;;  %v8945_v17 = vld [vmem:[#allocation3 + $0xb4c] ss:$16 sps:$4 sm:$0xff]  }
 0x1ec   : > { %3343 = vmatprep.subr.bf16.mxu0 %v8870_v18  ;;  %3429 = vmatprep.subr.bf16.mxu1 %v8873_v19  ;;  %v8940_v18 = vld [vmem:[#allocation3 + $0xb40] ss:$16 sps:$4 sm:$0xff]   ;;  %v8943_v19 = vld [vmem:[#allocation3 + $0xb48] ss:$16 sps:$4 sm:$0xff]  }
 0x1ef   : > { %3344 = vmatpush1.bf16.msra.mxu0 %v8868_v20  ;;  %3430 = vmatpush1.bf16.msra.mxu1 %v8871_v63  ;;  %v8948_v20 = vld [vmem:[#allocation3 + $0xb64] ss:$16 sps:$4 sm:$0xff]   ;;  %v8951_v63 = vld [vmem:[#allocation3 + $0xb6c] ss:$16 sps:$4 sm:$0xff]  }
 0x1f0   : > { %3345 = vmatprep.subr.bf16.mxu0 %v8876_v22  ;;  %3431 = vmatprep.subr.bf16.mxu1 %v8879_v24  ;;  %v8946_v22 = vld [vmem:[#allocation3 + $0xb60] ss:$16 sps:$4 sm:$0xff]   ;;  %v8949_v24 = vld [vmem:[#allocation3 + $0xb68] ss:$16 sps:$4 sm:$0xff]  }
 0x1f3   : > { %3346 = vmatpush1.bf16.msra.mxu0 %v8874_v47  ;;  %3432 = vmatpush1.bf16.msra.mxu1 %v8877_v29  ;;  %v8957_v47 = vld [vmem:[#allocation3 + $0xb8c] ss:$16 sps:$4 sm:$0xff]   ;;  %v8952_v29 = vld [vmem:[#allocation3 + $0xb80] ss:$16 sps:$4 sm:$0xff]  }
 0x1f4   : > { %3358 = vmatprep.subr.bf16.mxu0 %v8882_v30  ;;  %3444 = vmatprep.subr.bf16.mxu1 %v8885_v31  ;;  %v8955_v30 = vld [vmem:[#allocation3 + $0xb88] ss:$16 sps:$4 sm:$0xff]   ;;  %v8960_v31 = vld [vmem:[#allocation3 + $0xba4] ss:$16 sps:$4 sm:$0xff]  }
 0x1f6   : > { %3348 = vmatmul.mubr.bf16.vlgmr.msra.gmra.mrb[0].mxu0 %v2661_v41  ;;  %3434 = vmatmul.mubr.bf16.vlgmr.msra.gmra.mrb[0].mxu1 %v2661_v41  ;;  %v7547_v41 = vcombine.low %v10222_v21, %v10186_v60  ;;  %v8982_v21 = vld [vmem:[#allocation8 + $0x420] ss:$16 sps:$4 sm:$0xff]  }
 0x1f7   : > { %3359 = vmatpush1.bf16.msra.mxu0 %v8880_v35  ;;  %3445 = vmatpush1.bf16.msra.mxu1 %v8883_v36  ;;  %v8966_v35 = vld [vmem:[#allocation3 + $0xbc4] ss:$16 sps:$4 sm:$0xff]   ;;  %v8969_v36 = vld [vmem:[#allocation3 + $0xbcc] ss:$16 sps:$4 sm:$0xff]  }
 0x1f8   : > { %3360 = vmatprep.subr.bf16.mxu0 %v8888_v37  ;;  %3446 = vmatprep.subr.bf16.mxu1 %v8891_v25  ;;  %v8964_v37 = vld [vmem:[#allocation3 + $0xbc0] ss:$16 sps:$4 sm:$0xff]   ;;  %v8967_v25 = vld [vmem:[#allocation3 + $0xbc8] ss:$16 sps:$4 sm:$0xff]  }
 0x1f9   : > { %3390 = vmatprep.mubr.bf16.mxu0 %v2670_v43  ;;  %3476 = vmatprep.mubr.bf16.mxu1 %v2670_v43  ;;  %v2665_v43 = vrot.slane %v7547_v41, 1  ;;  %v9059_v41 = vld [vmem:[#allocation8 + $0x5ac] ss:$16 sps:$4 sm:$0xff]  }
 0x1fb   : > { %3361 = vmatpush1.bf16.msra.mxu0 %v8886_v40  ;;  %3447 = vmatpush1.bf16.msra.mxu1 %v8889_v38  ;;  %v8970_v40 = vld [vmem:[#allocation3 + $0xbe0] ss:$16 sps:$4 sm:$0xff]   ;;  %v8973_v38 = vld [vmem:[#allocation3 + $0xbe8] ss:$16 sps:$4 sm:$0xff]  }
 0x1fc   : > { %3362 = vmatprep.subr.bf16.mxu0 %v8894_v48  ;;  %3448 = vmatprep.subr.bf16.mxu1 %v8897_v42  ;;  %v8978_v48 = vld [vmem:[#allocation8 + $0x404] ss:$16 sps:$4 sm:$0xff]   ;;  %v8981_v42 = vld [vmem:[#allocation8 + $0x40c] ss:$16 sps:$4 sm:$0xff]  }
 0x1ff   : > { %3363 = vmatpush1.bf16.msra.mxu0 %v8892_v44  ;;  %3449 = vmatpush1.bf16.msra.mxu1 %v8895_v13  ;;  %v2666_v44 = vrot.slane %v10202_v32, 1  ;;  %v8976_v13 = vld [vmem:[#allocation8 + $0x400] ss:$16 sps:$4 sm:$0xff]  }
 0x200   : > { %3364 = vmatprep.subr.bf16.mxu0 %v8900_v45  ;;  %3450 = vmatprep.subr.bf16.mxu1 %v8903_v49  ;;  %v8979_v45 = vld [vmem:[#allocation8 + $0x408] ss:$16 sps:$4 sm:$0xff]   ;;  %v8984_v49 = vld [vmem:[#allocation8 + $0x424] ss:$16 sps:$4 sm:$0xff]   ;;  %v8988_v32 = vld [vmem:[#allocation8 + $0x440] ss:$16 sps:$4 sm:$0xff]  }
 0x201   : > { %v2667_v60 = vsel %vm2658_vm4, %v2665_v43, %v2666_v44  ;;  %v9068_v43 = vld [vmem:[#allocation8 + $0x5e4] ss:$16 sps:$4 sm:$0xff]   ;;  %v9071_v44 = vld [vmem:[#allocation8 + $0x5ec] ss:$16 sps:$4 sm:$0xff]  }
 0x203   : > { %3365 = vmatpush1.bf16.msra.mxu0 %v8898_v50  ;;  %3451 = vmatpush1.bf16.msra.mxu1 %v8901_v51  ;;  %v8987_v50 = vld [vmem:[#allocation8 + $0x42c] ss:$16 sps:$4 sm:$0xff]   ;;  %v8985_v51 = vld [vmem:[#allocation8 + $0x428] ss:$16 sps:$4 sm:$0xff]  }
 0x204   : > { %3366 = vmatprep.subr.bf16.mxu0 %v8906_v52  ;;  %3452 = vmatprep.subr.bf16.mxu1 %v8909_v53  ;;  %v8990_v52 = vld [vmem:[#allocation8 + $0x444] ss:$16 sps:$4 sm:$0xff]   ;;  %v8993_v53 = vld [vmem:[#allocation8 + $0x44c] ss:$16 sps:$4 sm:$0xff]  }
 0x207   : > { %3367 = vmatpush1.bf16.msra.mxu0 %v8904_v54  ;;  %3453 = vmatpush1.bf16.msra.mxu1 %v8907_v55  ;;  %v8991_v54 = vld [vmem:[#allocation8 + $0x448] ss:$16 sps:$4 sm:$0xff]   ;;  %v8996_v55 = vld [vmem:[#allocation8 + $0x464] ss:$16 sps:$4 sm:$0xff]  }
 0x208   : > { %3368 = vmatprep.subr.bf16.mxu0 %v8912_v56  ;;  %3454 = vmatprep.subr.bf16.mxu1 %v8915_v57  ;;  %v8999_v56 = vld [vmem:[#allocation8 + $0x46c] ss:$16 sps:$4 sm:$0xff]   ;;  %v8994_v57 = vld [vmem:[#allocation8 + $0x460] ss:$16 sps:$4 sm:$0xff]  }
 0x20b   : > { %3369 = vmatpush1.bf16.msra.mxu0 %v8910_v58  ;;  %3455 = vmatpush1.bf16.msra.mxu1 %v8913_v59  ;;  %v8997_v58 = vld [vmem:[#allocation8 + $0x468] ss:$16 sps:$4 sm:$0xff]   ;;  %v9002_v59 = vld [vmem:[#allocation8 + $0x484] ss:$16 sps:$4 sm:$0xff]  }
 0x20c   : > { %3370 = vmatprep.subr.bf16.mxu0 %v8918_v61  ;;  %3456 = vmatprep.subr.bf16.mxu1 %v8921_v62  ;;  %v9005_v61 = vld [vmem:[#allocation8 + $0x48c] ss:$16 sps:$4 sm:$0xff]   ;;  %v9000_v62 = vld [vmem:[#allocation8 + $0x480] ss:$16 sps:$4 sm:$0xff]  }
 0x20f   : > { %3371 = vmatpush1.bf16.msra.mxu0 %v8916_v0  ;;  %3457 = vmatpush1.bf16.msra.mxu1 %v8919_v1  ;;  %v9003_v0 = vld [vmem:[#allocation8 + $0x488] ss:$16 sps:$4 sm:$0xff]   ;;  %v9008_v1 = vld [vmem:[#allocation8 + $0x4a4] ss:$16 sps:$4 sm:$0xff]  }
 0x210   : > { %3372 = vmatprep.subr.bf16.mxu0 %v8924_v2  ;;  %3458 = vmatprep.subr.bf16.mxu1 %v8927_v3  ;;  %v9011_v2 = vld [vmem:[#allocation8 + $0x4ac] ss:$16 sps:$4 sm:$0xff]   ;;  %v9006_v3 = vld [vmem:[#allocation8 + $0x4a0] ss:$16 sps:$4 sm:$0xff]  }
 0x213   : > { %3373 = vmatpush1.bf16.msra.mxu0 %v8922_v4  ;;  %3459 = vmatpush1.bf16.msra.mxu1 %v8925_v5  ;;  %v9009_v4 = vld [vmem:[#allocation8 + $0x4a8] ss:$16 sps:$4 sm:$0xff]   ;;  %v9014_v5 = vld [vmem:[#allocation8 + $0x4c4] ss:$16 sps:$4 sm:$0xff]  }
 0x214   : > { %3374 = vmatprep.subr.bf16.mxu0 %v8930_v6  ;;  %3460 = vmatprep.subr.bf16.mxu1 %v8933_v7  ;;  %v9017_v6 = vld [vmem:[#allocation8 + $0x4cc] ss:$16 sps:$4 sm:$0xff]   ;;  %v9012_v7 = vld [vmem:[#allocation8 + $0x4c0] ss:$16 sps:$4 sm:$0xff]  }
 0x217   : > { %3375 = vmatpush1.bf16.msra.mxu0 %v8928_v8  ;;  %3461 = vmatpush1.bf16.msra.mxu1 %v8931_v9  ;;  %v9015_v8 = vld [vmem:[#allocation8 + $0x4c8] ss:$16 sps:$4 sm:$0xff]   ;;  %v9020_v9 = vld [vmem:[#allocation8 + $0x4e4] ss:$16 sps:$4 sm:$0xff]  }
 0x218   : > { %3376 = vmatprep.subr.bf16.mxu0 %v8936_v10  ;;  %3462 = vmatprep.subr.bf16.mxu1 %v8939_v11  ;;  %v9023_v10 = vld [vmem:[#allocation8 + $0x4ec] ss:$16 sps:$4 sm:$0xff]   ;;  %v9018_v11 = vld [vmem:[#allocation8 + $0x4e0] ss:$16 sps:$4 sm:$0xff]  }
 0x21b   : > { %3377 = vmatpush1.bf16.msra.mxu0 %v8934_v15  ;;  %3463 = vmatpush1.bf16.msra.mxu1 %v8937_v28  ;;  %v9021_v15 = vld [vmem:[#allocation8 + $0x4e8] ss:$16 sps:$4 sm:$0xff]   ;;  %v9026_v28 = vld [vmem:[#allocation8 + $0x504] ss:$16 sps:$4 sm:$0xff]  }
 0x21c   : > { %3378 = vmatprep.subr.bf16.mxu0 %v8942_v16  ;;  %3464 = vmatprep.subr.bf16.mxu1 %v8945_v17  ;;  %v9029_v16 = vld [vmem:[#allocation8 + $0x50c] ss:$16 sps:$4 sm:$0xff]   ;;  %v9024_v17 = vld [vmem:[#allocation8 + $0x500] ss:$16 sps:$4 sm:$0xff]  }
 0x21f   : > { %3379 = vmatpush1.bf16.msra.mxu0 %v8940_v18  ;;  %3465 = vmatpush1.bf16.msra.mxu1 %v8943_v19  ;;  %v9027_v18 = vld [vmem:[#allocation8 + $0x508] ss:$16 sps:$4 sm:$0xff]   ;;  %v9032_v19 = vld [vmem:[#allocation8 + $0x524] ss:$16 sps:$4 sm:$0xff]  }
 0x220   : > { %3380 = vmatprep.subr.bf16.mxu0 %v8948_v20  ;;  %3466 = vmatprep.subr.bf16.mxu1 %v8951_v63  ;;  %v9035_v20 = vld [vmem:[#allocation8 + $0x52c] ss:$16 sps:$4 sm:$0xff]   ;;  %v9030_v63 = vld [vmem:[#allocation8 + $0x520] ss:$16 sps:$4 sm:$0xff]  }
 0x223   : > { %3381 = vmatpush1.bf16.msra.mxu0 %v8946_v22  ;;  %3467 = vmatpush1.bf16.msra.mxu1 %v8949_v24  ;;  %v9033_v22 = vld [vmem:[#allocation8 + $0x528] ss:$16 sps:$4 sm:$0xff]   ;;  %v9038_v24 = vld [vmem:[#allocation8 + $0x544] ss:$16 sps:$4 sm:$0xff]  }
 0x224   : > { %3382 = vmatprep.subr.bf16.mxu0 %v8954_v26  ;;  %3468 = vmatprep.subr.bf16.mxu1 %v8957_v47  ;;  %v9041_v26 = vld [vmem:[#allocation8 + $0x54c] ss:$16 sps:$4 sm:$0xff]   ;;  %v9036_v47 = vld [vmem:[#allocation8 + $0x540] ss:$16 sps:$4 sm:$0xff]  }
 0x227   : > { %3383 = vmatpush1.bf16.msra.mxu0 %v8952_v29  ;;  %3469 = vmatpush1.bf16.msra.mxu1 %v8955_v30  ;;  %v9039_v29 = vld [vmem:[#allocation8 + $0x548] ss:$16 sps:$4 sm:$0xff]   ;;  %v9044_v30 = vld [vmem:[#allocation8 + $0x564] ss:$16 sps:$4 sm:$0xff]  }
 0x228   : > { %3384 = vmatprep.subr.bf16.mxu0 %v8960_v31  ;;  %3470 = vmatprep.subr.bf16.mxu1 %v8963_v23  ;;  %v9047_v31 = vld [vmem:[#allocation8 + $0x56c] ss:$16 sps:$4 sm:$0xff]   ;;  %v9042_v23 = vld [vmem:[#allocation8 + $0x560] ss:$16 sps:$4 sm:$0xff]  }
 0x22b   : > { %3385 = vmatpush1.bf16.msra.mxu0 %v8958_v33  ;;  %3471 = vmatpush1.bf16.msra.mxu1 %v8961_v34  ;;  %v9045_v33 = vld [vmem:[#allocation8 + $0x568] ss:$16 sps:$4 sm:$0xff]   ;;  %v9050_v34 = vld [vmem:[#allocation8 + $0x584] ss:$16 sps:$4 sm:$0xff]  }
 0x22c   : > { %3386 = vmatprep.subr.bf16.mxu0 %v8966_v35  ;;  %3472 = vmatprep.subr.bf16.mxu1 %v8969_v36  ;;  %v9053_v35 = vld [vmem:[#allocation8 + $0x58c] ss:$16 sps:$4 sm:$0xff]   ;;  %v9048_v36 = vld [vmem:[#allocation8 + $0x580] ss:$16 sps:$4 sm:$0xff]  }
 0x22f   : > { %3387 = vmatpush1.bf16.msra.mxu0 %v8964_v37  ;;  %3473 = vmatpush1.bf16.msra.mxu1 %v8967_v25  ;;  %v9051_v37 = vld [vmem:[#allocation8 + $0x588] ss:$16 sps:$4 sm:$0xff]   ;;  %v9054_v25 = vld [vmem:[#allocation8 + $0x5a0] ss:$16 sps:$4 sm:$0xff]  }
 0x230   : > { %3388 = vmatprep.subr.bf16.mxu0 %v8972_v27  ;;  %3474 = vmatprep.subr.bf16.mxu1 %v8975_v39  ;;  %v9056_v27 = vld [vmem:[#allocation8 + $0x5a4] ss:$16 sps:$4 sm:$0xff]   ;;  %v9057_v39 = vld [vmem:[#allocation8 + $0x5a8] ss:$16 sps:$4 sm:$0xff]  }
 0x233   : > { %3389 = vmatpush1.bf16.msra.mxu0 %v8970_v40  ;;  %3475 = vmatpush1.bf16.msra.mxu1 %v8973_v38  ;;  %v9062_v40 = vld [vmem:[#allocation8 + $0x5c4] ss:$16 sps:$4 sm:$0xff]   ;;  %v9065_v38 = vld [vmem:[#allocation8 + $0x5cc] ss:$16 sps:$4 sm:$0xff]  }
 0x234   : > { %4617 = vmatprep.subr.bf16.mxu0 %v8978_v48  ;;  %4703 = vmatprep.subr.bf16.mxu1 %v8981_v42  ;;  %v9060_v48 = vld [vmem:[#allocation8 + $0x5c0] ss:$16 sps:$4 sm:$0xff]   ;;  %v9063_v42 = vld [vmem:[#allocation8 + $0x5c8] ss:$16 sps:$4 sm:$0xff]  }
 0x236   : > { %3391 = vmatmul.mubr.bf16.vlgmr.msra.gmra.mrb[0].mxu0 %v2667_v60  ;;  %3477 = vmatmul.mubr.bf16.vlgmr.msra.gmra.mrb[0].mxu1 %v2667_v60  ;;  %v3497_v60 = vlaneseq }
 0x237   : > { %4618 = vmatpush1.bf16.msra.mxu0 %v8976_v13  ;;  %4704 = vmatpush1.bf16.msra.mxu1 %v8979_v45  ;;  %v9066_v13 = vld [vmem:[#allocation8 + $0x5e0] ss:$16 sps:$4 sm:$0xff]   ;;  %v9069_v45 = vld [vmem:[#allocation8 + $0x5e8] ss:$16 sps:$4 sm:$0xff]  }
 0x238   : > { %4619 = vmatprep.subr.bf16.mxu0 %v8984_v49  ;;  %4705 = vmatprep.subr.bf16.mxu1 %v8987_v50  ;;  %v9075_v49 = vld [vmem:[#allocation8 + $0x604] ss:$16 sps:$4 sm:$0xff]   ;;  %v9078_v50 = vld [vmem:[#allocation8 + $0x60c] ss:$16 sps:$4 sm:$0xff]  }
 0x23b   : > { %4620 = vmatpush1.bf16.msra.mxu0 %v8982_v21  ;;  %4706 = vmatpush1.bf16.msra.mxu1 %v8985_v51  ;;  %v10236_v21 = vshrl.u32 %v3497_v60, 7 }
 0x23c   : > { %4621 = vmatprep.subr.bf16.mxu0 %v8990_v52  ;;  %4707 = vmatprep.subr.bf16.mxu1 %v8993_v53  ;;  %v3495_v53 = vld [vmem:[#allocation5] sm:$0xf] }
 0x23d   : > { %v10239_v51 = vsub.s32 0, %v10236_v21  ;;  %v10242_v52 = vsub.s32 2, %v10236_v21 }
 0x23f   : > { %4622 = vmatpush1.bf16.msra.mxu0 %v8988_v32  ;;  %4708 = vmatpush1.bf16.msra.mxu1 %v8991_v54  ;;  %v10245_v32 = vsub.s32 1, %v10236_v21  ;;  %v10248_v54 = vsub.s32 3, %v10236_v21 }
 0x240   : > { %4623 = vmatprep.subr.bf16.mxu0 %v8996_v55  ;;  %4709 = vmatprep.subr.bf16.mxu1 %v8999_v56  ;;  %v3525_v55 = vld [vmem:[#allocation7] sm:$0xf]  ;;  %v3500_v56 = vrot.slane %v3495_v53, %v10239_v51 }
 0x243   : > { %4624 = vmatpush1.bf16.msra.mxu0 %v8994_v57  ;;  %4710 = vmatpush1.bf16.msra.mxu1 %v8997_v58  ;;  %v3508_v57 = vrot.slane %v3495_v53, %v10242_v52  ;;  %v3504_v58 = vrot.slane %v3495_v53, %v10245_v32 }
 0x244   : > { %4625 = vmatprep.subr.bf16.mxu0 %v9002_v59  ;;  %4711 = vmatprep.subr.bf16.mxu1 %v9005_v61  ;;  %v3512_v59 = vrot.slane %v3495_v53, %v10248_v54  ;;  %v3530_v61 = vrot.slane %v3525_v55, %v10239_v51 }
 0x247   : > { %4626 = vmatpush1.bf16.msra.mxu0 %v9000_v62  ;;  %4712 = vmatpush1.bf16.msra.mxu1 %v9003_v0  ;;  %v3538_v62 = vrot.slane %v3525_v55, %v10242_v52 }
 0x248   : > { %4627 = vmatprep.subr.bf16.mxu0 %v9008_v1  ;;  %4713 = vmatprep.subr.bf16.mxu1 %v9011_v2  ;;  %v3534_v2 = vrot.slane %v3525_v55, %v10245_v32 }
 0x24b   : > { %4628 = vmatpush1.bf16.msra.mxu0 %v9006_v3  ;;  %4714 = vmatpush1.bf16.msra.mxu1 %v9009_v4  ;;  %v3542_v3 = vrot.slane %v3525_v55, %v10248_v54 }
 0x24c   : > { %4629 = vmatprep.subr.bf16.mxu0 %v9014_v5  ;;  %4715 = vmatprep.subr.bf16.mxu1 %v9017_v6 }
 0x24f   : > { %4630 = vmatpush1.bf16.msra.mxu0 %v9012_v7  ;;  %4716 = vmatpush1.bf16.msra.mxu1 %v9015_v8 }
 0x250   : > { %4631 = vmatprep.subr.bf16.mxu0 %v9020_v9  ;;  %4717 = vmatprep.subr.bf16.mxu1 %v9023_v10 }
 0x253   : > { %4632 = vmatpush1.bf16.msra.mxu0 %v9018_v11  ;;  %4718 = vmatpush1.bf16.msra.mxu1 %v9021_v15 }
 0x254   : > { %4633 = vmatprep.subr.bf16.mxu0 %v9026_v28  ;;  %4719 = vmatprep.subr.bf16.mxu1 %v9029_v16 }
 0x257   : > { %4634 = vmatpush1.bf16.msra.mxu0 %v9024_v17  ;;  %4720 = vmatpush1.bf16.msra.mxu1 %v9027_v18 }
 0x258   : > { %4635 = vmatprep.subr.bf16.mxu0 %v9032_v19  ;;  %4721 = vmatprep.subr.bf16.mxu1 %v9035_v20 }
 0x25b   : > { %4636 = vmatpush1.bf16.msra.mxu0 %v9030_v63  ;;  %4722 = vmatpush1.bf16.msra.mxu1 %v9033_v22 }
 0x25c   : > { %4637 = vmatprep.subr.bf16.mxu0 %v9038_v24  ;;  %4723 = vmatprep.subr.bf16.mxu1 %v9041_v26 }
 0x25f   : > { %4638 = vmatpush1.bf16.msra.mxu0 %v9036_v47  ;;  %4724 = vmatpush1.bf16.msra.mxu1 %v9039_v29 }
 0x260   : > { %4639 = vmatprep.subr.bf16.mxu0 %v9044_v30  ;;  %4725 = vmatprep.subr.bf16.mxu1 %v9047_v31 }
 0x263   : > { %4640 = vmatpush1.bf16.msra.mxu0 %v9042_v23  ;;  %4726 = vmatpush1.bf16.msra.mxu1 %v9045_v33 }
 0x264   : > { %4641 = vmatprep.subr.bf16.mxu0 %v9050_v34  ;;  %4727 = vmatprep.subr.bf16.mxu1 %v9053_v35 }
 0x267   : > { %4642 = vmatpush1.bf16.msra.mxu0 %v9048_v36  ;;  %4728 = vmatpush1.bf16.msra.mxu1 %v9051_v37 }
 0x268   : > { %4643 = vmatprep.subr.bf16.mxu0 %v9056_v27  ;;  %4729 = vmatprep.subr.bf16.mxu1 %v9059_v41 }
 0x26b   : > { %4644 = vmatpush1.bf16.msra.mxu0 %v9054_v25  ;;  %4730 = vmatpush1.bf16.msra.mxu1 %v9057_v39 }
 0x26c   : > { %4645 = vmatprep.subr.bf16.mxu0 %v9062_v40  ;;  %4731 = vmatprep.subr.bf16.mxu1 %v9065_v38 }
 0x26f   : > { %4646 = vmatpush1.bf16.msra.mxu0 %v9060_v48  ;;  %4732 = vmatpush1.bf16.msra.mxu1 %v9063_v42 }
 0x270   : > { %4647 = vmatprep.subr.bf16.mxu0 %v9068_v43  ;;  %4733 = vmatprep.subr.bf16.mxu1 %v9071_v44 }
 0x273   : > { %4648 = vmatpush1.bf16.msra.mxu0 %v9066_v13  ;;  %4734 = vmatpush1.bf16.msra.mxu1 %v9069_v45  ;;  %v3625_v45 = vld [vmem:[#allocation2 + $0x8] sm:$0xff] }
 0x274   : > { %4660 = vmatprep.subr.bf16.mxu0 %v9075_v49  ;;  %4746 = vmatprep.subr.bf16.mxu1 %v9078_v50 }
 0x309   : > { %v3392_v0 = vpop.f32.mrb[0].mxu0  ;;  %v3478_v1 = vpop.f32.mrb[0].mxu1 }
 0x30a   : > { %v3517_v4 = vmul.f32 %v3500_v56, %v3392_v0  ;;  %v3519_v5 = vmul.f32 %v3508_v57, %v3478_v1  ;;  %v3394_v6 = vpop.f32.mrb[1].mxu0  ;;  %v3480_v7 = vpop.f32.mrb[1].mxu1 }
 0x30b   : > { %v3518_v8 = vmul.f32 %v3504_v58, %v3394_v6  ;;  %v3520_v9 = vmul.f32 %v3512_v59, %v3480_v7  ;;  %v3396_v10 = vpop.f32.mrb[2].mxu0  ;;  %v3482_v11 = vpop.f32.mrb[2].mxu1 }
 0x30c   : > { %v3547_v15 = vadd.f32 %v3530_v61, %v3517_v4  ;;  %v3549_v28 = vadd.f32 %v3538_v62, %v3519_v5  ;;  %v3521_v16 = vmul.f32 %v3500_v56, %v3396_v10  ;;  %v3523_v17 = vmul.f32 %v3508_v57, %v3482_v11  ;;  %v3398_v18 = vpop.f32.mrb[3].mxu0  ;;  %v3484_v19 = vpop.f32.mrb[3].mxu1 }
 0x30d   : > { %v3548_v20 = vadd.f32 %v3534_v2, %v3518_v8  ;;  %v3550_v63 = vadd.f32 %v3542_v3, %v3520_v9  ;;  %v3522_v22 = vmul.f32 %v3504_v58, %v3398_v18  ;;  %v3524_v24 = vmul.f32 %v3512_v59, %v3484_v19 }
 0x30e   : > { %v3555_v26 = vmax.f32 %v3547_v15, 0.0  ;;  %v3557_v47 = vmax.f32 %v3549_v28, 0.0  ;;  %v3551_v29 = vadd.f32 %v3530_v61, %v3521_v16  ;;  %v3553_v30 = vadd.f32 %v3538_v62, %v3523_v17  ;;  %v9573_v61 = vld [vmem:[#allocation2] sm:$0xff] }
 0x30f   : > { %v3556_v31 = vmax.f32 %v3548_v20, 0.0  ;;  %v3558_v23 = vmax.f32 %v3550_v63, 0.0  ;;  %v3552_v33 = vadd.f32 %v3534_v2, %v3522_v22  ;;  %v3554_v34 = vadd.f32 %v3542_v3, %v3524_v24  ;;  %v3630_v2 = vld [vmem:[#allocation2 + $0x20] sm:$0x11]  ;;  %v3633_v3 = vld [vmem:[#allocation2 + $0x28] sm:$0x11] }
 0x310   : > { %v3559_v35 = vmax.f32 %v3551_v29, 0.0  ;;  %v3561_v36 = vmax.f32 %v3553_v30, 0.0 }
 0x311   : > { %v8095_v37 = vpack.c.bf16 %v3556_v31, %v3555_v26  ;;  %v8096_v25 = vpack.c.bf16 %v3558_v23, %v3557_v47  ;;  %v3560_v27 = vmax.f32 %v3552_v33, 0.0  ;;  %v3562_v39 = vmax.f32 %v3554_v34, 0.0 }
 0x313   : > { %v3584_v41 = vshrl.u32 %v8095_v37, 16  ;;  %v3591_v40 = vshrl.u32 %v8096_v25, 16  ;;  %v8097_v38 = vpack.c.bf16 %v3560_v27, %v3559_v35  ;;  %v8098_v48 = vpack.c.bf16 %v3562_v39, %v3561_v36 }
 0x314   : > { %v3587_v43 = vshll.u32 %v8095_v37, 16  ;;  %v3594_v13 = vshll.u32 %v8096_v25, 16 }
 0x315   : > { %v3586_v42 = vrot.slane %v3584_v41, 7  ;;  %v3593_v44 = vrot.slane %v3591_v40, 7  ;;  %v3599_v49 = vshrl.u32 %v8097_v38, 16  ;;  %v3608_v50 = vshrl.u32 %v8098_v48, 16 }
 0x316   : > { %v3602_v56 = vshll.u32 %v8097_v38, 16  ;;  %v3611_v58 = vshll.u32 %v8098_v48, 16 }
 0x317   : > { %v3589_v60 = vor.u32 %v3587_v43, %v3586_v42  ;;  %v3596_v53 = vor.u32 %v3594_v13, %v3593_v44  ;;  %v3601_v55 = vrot.slane %v3599_v49, 7  ;;  %v3610_v57 = vrot.slane %v3608_v50, 7  ;;  %v9076_v50 = vld [vmem:[#allocation8 + $0x608] ss:$16 sps:$4 sm:$0xff]  }
 0x318   : > { %v3597_v59 = vrot.slane %v3586_v42, 4  ;;  %v3606_v0 = vrot.slane %v3593_v44, 4  ;;  %v9073_v44 = vld [vmem:[#allocation8 + $0x600] ss:$16 sps:$4 sm:$0xff]  }
 0x319   : > { %v3623_v62 = vsel %vm10135_vm2, %v3589_v60, %v9573_v61  ;;  %v3626_v1 = vsel %vm10135_vm2, %v3596_v53, %v3625_v45  ;;  %v3604_v4 = vor.u32 %v3602_v56, %v3601_v55  ;;  %v3615_v5 = vrot.slane %v3601_v55, 4 }
 0x31a   : > { %3624 = vst [vmem:[#allocation2] sm:$0xff] %v3623_v62  ;;  %3627 = vst [vmem:[#allocation2 + $0x8] sm:$0xff] %v3626_v1  ;;  %v3613_v6 = vor.u32 %v3611_v58, %v3610_v57  ;;  %v3616_v7 = vrot.slane %v3610_v57, 4 }
 0x31b   : > { %v3605_v8 = vsel %vm10141_vm3, %v3597_v59, %v3604_v4  ;;  %v3631_v9 = vsel %vm10099_vm10, %v3615_v5, %v3630_v2 }
 0x31c   : > { %v3614_v10 = vsel %vm10141_vm3, %v3606_v0, %v3613_v6  ;;  %v3634_v12 = vsel %vm10099_vm10, %v3616_v7, %v3633_v3  ;;  %3632 = vst [vmem:[#allocation2 + $0x20] sm:$0x11] %v3631_v9  ;;  %v10270_v11 = vcombine.high %v3623_v62, %v3605_v8  ;;  %v10272_v15 = vcombine.low %v3623_v62, %v3605_v8  ;;  %v9083_v62 = vld [vmem:[#allocation8 + $0x624] ss:$16 sps:$4 sm:$0xff]   ;;  %v9086_v0 = vld [vmem:[#allocation8 + $0x62c] ss:$16 sps:$4 sm:$0xff]  }
 0x31d   : > { %3635 = vst [vmem:[#allocation2 + $0x28] sm:$0x11] %v3634_v12  ;;  %v10274_v28 = vcombine.high %v3626_v1, %v3614_v10  ;;  %v10276_v16 = vcombine.low %v3626_v1, %v3614_v10  ;;  %v9081_v6 = vld [vmem:[#allocation8 + $0x620] ss:$16 sps:$4 sm:$0xff]   ;;  %v9084_v7 = vld [vmem:[#allocation8 + $0x628] ss:$16 sps:$4 sm:$0xff]  }
 0x31e   : > { %v3940_v17 = vshll.u32 %v10270_v11, 16  ;;  %v3928_v18 = vshll.u32 %v10272_v15, 16  ;;  %v3938_v46 = vshrl.u32 %v10270_v11, 16  ;;  %v3926_v34 = vshrl.u32 %v10272_v15, 16  ;;  %v9092_v9 = vld [vmem:[#allocation8 + $0x64c] ss:$16 sps:$4 sm:$0xff]  }
 0x31f   : > { %v3964_v14 = vshll.u32 %v10274_v28, 16  ;;  %v3962_v35 = vshrl.u32 %v10274_v28, 16  ;;  %v9090_v12 = vld [vmem:[#allocation8 + $0x648] ss:$16 sps:$4 sm:$0xff]  }
 0x320   : > { %v3942_v22 = vrot.slane %v3940_v17, 1  ;;  %v3930_v24 = vrot.slane %v3928_v18, 1  ;;  %v9095_v17 = vld [vmem:[#allocation8 + $0x664] ss:$16 sps:$4 sm:$0xff]   ;;  %v9098_v18 = vld [vmem:[#allocation8 + $0x66c] ss:$16 sps:$4 sm:$0xff]  }
 0x321   : > { %v5605_v19 = vld [vmem:[#allocation2] sm:$0xee]  ;;  %v5606_v20 = vld [vmem:[#allocation2 + $0x8] sm:$0xee]  ;;  %v3966_v36 = vrot.slane %v3964_v14, 1 }
 0x322   : > { %v7946_v47 = vcombine.high %v5605_v19, %v3605_v8  ;;  %v7945_v29 = vcombine.low %v5605_v19, %v3605_v8  ;;  %v7948_v33 = vcombine.high %v5606_v20, %v3614_v10  ;;  %v7947_v41 = vcombine.low %v5606_v20, %v3614_v10  ;;  %v9089_v8 = vld [vmem:[#allocation8 + $0x644] ss:$16 sps:$4 sm:$0xff]   ;;  %v9087_v10 = vld [vmem:[#allocation8 + $0x640] ss:$16 sps:$4 sm:$0xff]   ;;  %v9096_v19 = vld [vmem:[#allocation8 + $0x668] ss:$16 sps:$4 sm:$0xff]  }
 0x323   : > { %v3768_v63 = vld [vmem:[#allocation2 + $0x20] sm:$0x11]  ;;  %v3943_v40 = vor.u32 %v3942_v22, %v3938_v46  ;;  %v3931_v38 = vor.u32 %v3930_v24, %v3926_v34  ;;  %v3967_v59 = vor.u32 %v3966_v36, %v3962_v35  ;;  %v9093_v14 = vld [vmem:[#allocation8 + $0x660] ss:$16 sps:$4 sm:$0xff]   ;;  %v9101_v20 = vld [vmem:[#allocation8 + $0x684] ss:$16 sps:$4 sm:$0xff]  }
 0x324   : > { %v3769_v26 = vld [vmem:[#allocation2 + $0x28] sm:$0x11]  ;;  %v7686_v30 = vcombine.high %v3768_v63, %v3768_v63  ;;  %v7685_v31 = vcombine.low %v3768_v63, %v3768_v63  ;;  %v5749_v48 = vrot.slane %v7946_v47, 1  ;;  %v5746_v42 = vrot.slane %v7945_v29, 1  ;;  %v9104_v46 = vld [vmem:[#allocation8 + $0x68c] ss:$16 sps:$4 sm:$0xff]  }
 0x325   : > { %v7688_v23 = vcombine.high %v3769_v26, %v3769_v26  ;;  %v10284_v37 = vcombine.low %v3769_v26, %v3769_v26  ;;  %v5755_v49 = vrot.slane %v7948_v33, 1  ;;  %v5752_v61 = vrot.slane %v7947_v41, 1  ;;  %v9099_v63 = vld [vmem:[#allocation8 + $0x680] ss:$16 sps:$4 sm:$0xff]   ;;  %v9102_v22 = vld [vmem:[#allocation8 + $0x688] ss:$16 sps:$4 sm:$0xff]  }
 0x326   : > { %v3945_v25 = vshll.u32 %v7686_v30, 16  ;;  %v3933_v27 = vshll.u32 %v7685_v31, 16  ;;  %v5750_v60 = vrot.slane %v7686_v30, 1  ;;  %v5747_v53 = vrot.slane %v7685_v31, 1  ;;  %v9107_v24 = vld [vmem:[#allocation8 + $0x6a4] ss:$16 sps:$4 sm:$0xff]  }
 0x327   : > { %v3969_v39 = vshll.u32 %v7688_v23, 16  ;;  %v5756_v55 = vrot.slane %v7688_v23, 1  ;;  %v5753_v56 = vrot.slane %v10284_v37, 1  ;;  %v9110_v26 = vld [vmem:[#allocation8 + $0x6ac] ss:$16 sps:$4 sm:$0xff]  }
 0x328   : > { %v3947_v43 = vrot.slane %v3945_v25, 1  ;;  %v3935_v13 = vrot.slane %v3933_v27, 1  ;;  %v10290_v1 = vsel %vm2658_vm4, %v5749_v48, %v5750_v60  ;;  %v10293_v2 = vsel %vm2658_vm4, %v5746_v42, %v5747_v53  ;;  %v9105_v47 = vld [vmem:[#allocation8 + $0x6a0] ss:$16 sps:$4 sm:$0xff]   ;;  %v9108_v29 = vld [vmem:[#allocation8 + $0x6a8] ss:$16 sps:$4 sm:$0xff]  }
 0x329   : > { %v3971_v45 = vrot.slane %v3969_v39, 1  ;;  %v10296_v3 = vsel %vm2658_vm4, %v5755_v49, %v5756_v55  ;;  %v10299_v4 = vsel %vm2658_vm4, %v5752_v61, %v5753_v56  ;;  %v9113_v30 = vld [vmem:[#allocation8 + $0x6c4] ss:$16 sps:$4 sm:$0xff]   ;;  %v9116_v31 = vld [vmem:[#allocation8 + $0x6cc] ss:$16 sps:$4 sm:$0xff]  }
 0x32a   : > { %v3948_v57 = vsel %vm836_vm0, %v3943_v40, %v3947_v43  ;;  %v3936_v58 = vsel %vm836_vm0, %v3931_v38, %v3935_v13  ;;  %v9111_v23 = vld [vmem:[#allocation8 + $0x6c0] ss:$16 sps:$4 sm:$0xff]   ;;  %v9114_v33 = vld [vmem:[#allocation8 + $0x6c8] ss:$16 sps:$4 sm:$0xff]   ;;  %v9119_v34 = vld [vmem:[#allocation8 + $0x6e4] ss:$16 sps:$4 sm:$0xff]  }
 0x32b   : > { %4649 = vmatprep.mubr.bf16.mxu0 %v3948_v57  ;;  %4735 = vmatprep.mubr.bf16.mxu1 %v3948_v57  ;;  %v3972_v5 = vsel %vm836_vm0, %v3967_v59, %v3971_v45  ;;  %v9122_v35 = vld [vmem:[#allocation8 + $0x6ec] ss:$16 sps:$4 sm:$0xff]   ;;  %v9117_v36 = vld [vmem:[#allocation8 + $0x6e0] ss:$16 sps:$4 sm:$0xff]   ;;  %v9120_v25 = vld [vmem:[#allocation8 + $0x6e8] ss:$16 sps:$4 sm:$0xff]  }
 0x32c   : > { %4650 = vmatmul.mubr.bf16.vlgmr.msra.gmra.mrb[4].mxu0 %v3936_v58  ;;  %4736 = vmatmul.mubr.bf16.vlgmr.msra.gmra.mrb[4].mxu1 %v3936_v58  ;;  %v9125_v27 = vld [vmem:[#allocation8 + $0x704] ss:$16 sps:$4 sm:$0xff]   ;;  %v9128_v39 = vld [vmem:[#allocation8 + $0x70c] ss:$16 sps:$4 sm:$0xff]   ;;  %v9123_v41 = vld [vmem:[#allocation8 + $0x700] ss:$16 sps:$4 sm:$0xff]  }
 0x32d   : > { %4661 = vmatpush1.bf16.msra.mxu0 %v9073_v44  ;;  %4747 = vmatpush1.bf16.msra.mxu1 %v9076_v50  ;;  %v9126_v40 = vld [vmem:[#allocation8 + $0x708] ss:$16 sps:$4 sm:$0xff]   ;;  %v9131_v38 = vld [vmem:[#allocation8 + $0x724] ss:$16 sps:$4 sm:$0xff]   ;;  %v9134_v48 = vld [vmem:[#allocation8 + $0x72c] ss:$16 sps:$4 sm:$0xff]  }
 0x32e   : > { %4692 = vmatprep.mubr.bf16.mxu0 %v3972_v5  ;;  %4778 = vmatprep.mubr.bf16.mxu1 %v3972_v5  ;;  %v9129_v42 = vld [vmem:[#allocation8 + $0x720] ss:$16 sps:$4 sm:$0xff]   ;;  %v9132_v43 = vld [vmem:[#allocation8 + $0x728] ss:$16 sps:$4 sm:$0xff]   ;;  %v9137_v44 = vld [vmem:[#allocation8 + $0x744] ss:$16 sps:$4 sm:$0xff]  }
 0x32f   : > { %4662 = vmatprep.subr.bf16.mxu0 %v9083_v62  ;;  %4748 = vmatprep.subr.bf16.mxu1 %v9086_v0  ;;  %v9140_v13 = vld [vmem:[#allocation8 + $0x74c] ss:$16 sps:$4 sm:$0xff]   ;;  %v9135_v45 = vld [vmem:[#allocation8 + $0x740] ss:$16 sps:$4 sm:$0xff]   ;;  %v9138_v49 = vld [vmem:[#allocation8 + $0x748] ss:$16 sps:$4 sm:$0xff]  }
 0x330   : > { %v9143_v50 = vld [vmem:[#allocation8 + $0x764] ss:$16 sps:$4 sm:$0xff]   ;;  %v9146_v60 = vld [vmem:[#allocation8 + $0x76c] ss:$16 sps:$4 sm:$0xff]   ;;  %v9141_v53 = vld [vmem:[#allocation8 + $0x760] ss:$16 sps:$4 sm:$0xff]  }
 0x331   : > { %4663 = vmatpush1.bf16.msra.mxu0 %v9081_v6  ;;  %4749 = vmatpush1.bf16.msra.mxu1 %v9084_v7  ;;  %v9144_v55 = vld [vmem:[#allocation8 + $0x768] ss:$16 sps:$4 sm:$0xff]   ;;  %v9149_v56 = vld [vmem:[#allocation8 + $0x784] ss:$16 sps:$4 sm:$0xff]   ;;  %v9152_v57 = vld [vmem:[#allocation8 + $0x78c] ss:$16 sps:$4 sm:$0xff]  }
 0x332   : > { %4664 = vmatprep.subr.bf16.mxu0 %v9089_v8  ;;  %4750 = vmatprep.subr.bf16.mxu1 %v9092_v9  ;;  %v9147_v58 = vld [vmem:[#allocation8 + $0x780] ss:$16 sps:$4 sm:$0xff]   ;;  %v9150_v59 = vld [vmem:[#allocation8 + $0x788] ss:$16 sps:$4 sm:$0xff]   ;;  %v9155_v61 = vld [vmem:[#allocation8 + $0x7a4] ss:$16 sps:$4 sm:$0xff]  }
 0x333   : > { %v9158_v62 = vld [vmem:[#allocation8 + $0x7ac] ss:$16 sps:$4 sm:$0xff]   ;;  %v9153_v0 = vld [vmem:[#allocation8 + $0x7a0] ss:$16 sps:$4 sm:$0xff]   ;;  %v9156_v5 = vld [vmem:[#allocation8 + $0x7a8] ss:$16 sps:$4 sm:$0xff]  }
 0x334   : > { %v9161_v6 = vld [vmem:[#allocation8 + $0x7c4] ss:$16 sps:$4 sm:$0xff]   ;;  %v9164_v7 = vld [vmem:[#allocation8 + $0x7cc] ss:$16 sps:$4 sm:$0xff]   ;;  %v9159_v8 = vld [vmem:[#allocation8 + $0x7c0] ss:$16 sps:$4 sm:$0xff]  }
 0x335   : > { %4665 = vmatpush1.bf16.msra.mxu0 %v9087_v10  ;;  %4751 = vmatpush1.bf16.msra.mxu1 %v9090_v12  ;;  %v9162_v9 = vld [vmem:[#allocation8 + $0x7c8] ss:$16 sps:$4 sm:$0xff]   ;;  %v3952_v10 = vshll.u32 %v10276_v16, 16  ;;  %v9167_v12 = vld [vmem:[#allocation8 + $0x7e4] ss:$16 sps:$4 sm:$0xff]  }
 0x336   : > { %4666 = vmatprep.subr.bf16.mxu0 %v9095_v17  ;;  %4752 = vmatprep.subr.bf16.mxu1 %v9098_v18  ;;  %v9170_v17 = vld [vmem:[#allocation8 + $0x7ec] ss:$16 sps:$4 sm:$0xff]   ;;  %v3957_v18 = vshll.u32 %v10284_v37, 16 }
 0x339   : > { %4667 = vmatpush1.bf16.msra.mxu0 %v9093_v14  ;;  %4753 = vmatpush1.bf16.msra.mxu1 %v9096_v19  ;;  %v9165_v14 = vld [vmem:[#allocation8 + $0x7e0] ss:$16 sps:$4 sm:$0xff]   ;;  %v9168_v19 = vld [vmem:[#allocation8 + $0x7e8] ss:$16 sps:$4 sm:$0xff]  }
 0x33a   : > { %4668 = vmatprep.subr.bf16.mxu0 %v9101_v20  ;;  %4754 = vmatprep.subr.bf16.mxu1 %v9104_v46  ;;  %v3954_v20 = vrot.slane %v3952_v10, 1  ;;  %v9174_v46 = vld [vmem:[#allocation8 + $0x4] ss:$16 sps:$4 sm:$0xff]   ;;  %v9237_v10 = vld [vmem:[#allocation8 + $0x14c] ss:$16 sps:$4 sm:$0xff]  }
 0x33d   : > { %4669 = vmatpush1.bf16.msra.mxu0 %v9099_v63  ;;  %4755 = vmatpush1.bf16.msra.mxu1 %v9102_v22  ;;  %v9177_v63 = vld [vmem:[#allocation8 + $0xc] ss:$16 sps:$4 sm:$0xff]   ;;  %v3950_v22 = vshrl.u32 %v10276_v16, 16 }
 0x33e   : > { %4670 = vmatprep.subr.bf16.mxu0 %v9107_v24  ;;  %4756 = vmatprep.subr.bf16.mxu1 %v9110_v26  ;;  %v3959_v24 = vrot.slane %v3957_v18, 1  ;;  %v9240_v18 = vld [vmem:[#allocation8 + $0x164] ss:$16 sps:$4 sm:$0xff]  }
 0x33f   : > { %v3955_v26 = vor.u32 %v3954_v20, %v3950_v22  ;;  %v9241_v20 = vld [vmem:[#allocation8 + $0x168] ss:$16 sps:$4 sm:$0xff]   ;;  %v9244_v22 = vld [vmem:[#allocation8 + $0x180] ss:$16 sps:$4 sm:$0xff]  }
 0x341   : > { %4671 = vmatpush1.bf16.msra.mxu0 %v9105_v47  ;;  %4757 = vmatpush1.bf16.msra.mxu1 %v9108_v29  ;;  %v9172_v47 = vld [vmem:[#allocation8] ss:$16 sps:$4 sm:$0xff]   ;;  %v9175_v29 = vld [vmem:[#allocation8 + $0x8] ss:$16 sps:$4 sm:$0xff]   ;;  %v3960_v37 = vsel %vm836_vm0, %v3955_v26, %v3959_v24  ;;  %v9252_v26 = vld [vmem:[#allocation8 + $0x1a4] ss:$16 sps:$4 sm:$0xff]  }
 0x342   : > { %4672 = vmatprep.subr.bf16.mxu0 %v9113_v30  ;;  %4758 = vmatprep.subr.bf16.mxu1 %v9116_v31  ;;  %v9180_v30 = vld [vmem:[#allocation8 + $0x24] ss:$16 sps:$4 sm:$0xff]   ;;  %v9183_v31 = vld [vmem:[#allocation8 + $0x2c] ss:$16 sps:$4 sm:$0xff]   ;;  %v9247_v24 = vld [vmem:[#allocation8 + $0x188] ss:$16 sps:$4 sm:$0xff]  }
 0x345   : > { %4673 = vmatpush1.bf16.msra.mxu0 %v9111_v23  ;;  %4759 = vmatpush1.bf16.msra.mxu1 %v9114_v33  ;;  %v9178_v23 = vld [vmem:[#allocation8 + $0x20] ss:$16 sps:$4 sm:$0xff]   ;;  %v9181_v33 = vld [vmem:[#allocation8 + $0x28] ss:$16 sps:$4 sm:$0xff]  }
 0x346   : > { %4674 = vmatprep.subr.bf16.mxu0 %v9119_v34  ;;  %4760 = vmatprep.subr.bf16.mxu1 %v9122_v35  ;;  %v9186_v34 = vld [vmem:[#allocation8 + $0x44] ss:$16 sps:$4 sm:$0xff]   ;;  %v9189_v35 = vld [vmem:[#allocation8 + $0x4c] ss:$16 sps:$4 sm:$0xff]  }
 0x349   : > { %4675 = vmatpush1.bf16.msra.mxu0 %v9117_v36  ;;  %4761 = vmatpush1.bf16.msra.mxu1 %v9120_v25  ;;  %v9184_v36 = vld [vmem:[#allocation8 + $0x40] ss:$16 sps:$4 sm:$0xff]   ;;  %v9187_v25 = vld [vmem:[#allocation8 + $0x48] ss:$16 sps:$4 sm:$0xff]  }
 0x34a   : > { %4676 = vmatprep.subr.bf16.mxu0 %v9125_v27  ;;  %4762 = vmatprep.subr.bf16.mxu1 %v9128_v39  ;;  %v9192_v27 = vld [vmem:[#allocation8 + $0x64] ss:$16 sps:$4 sm:$0xff]   ;;  %v9195_v39 = vld [vmem:[#allocation8 + $0x6c] ss:$16 sps:$4 sm:$0xff]  }
 0x34d   : > { %4677 = vmatpush1.bf16.msra.mxu0 %v9123_v41  ;;  %4763 = vmatpush1.bf16.msra.mxu1 %v9126_v40  ;;  %v9190_v41 = vld [vmem:[#allocation8 + $0x60] ss:$16 sps:$4 sm:$0xff]   ;;  %v9193_v40 = vld [vmem:[#allocation8 + $0x68] ss:$16 sps:$4 sm:$0xff]  }
 0x34e   : > { %4678 = vmatprep.subr.bf16.mxu0 %v9131_v38  ;;  %4764 = vmatprep.subr.bf16.mxu1 %v9134_v48  ;;  %v9198_v38 = vld [vmem:[#allocation8 + $0x84] ss:$16 sps:$4 sm:$0xff]   ;;  %v9196_v48 = vld [vmem:[#allocation8 + $0x80] ss:$16 sps:$4 sm:$0xff]  }
 0x351   : > { %4679 = vmatpush1.bf16.msra.mxu0 %v9129_v42  ;;  %4765 = vmatpush1.bf16.msra.mxu1 %v9132_v43  ;;  %v9199_v42 = vld [vmem:[#allocation8 + $0x88] ss:$16 sps:$4 sm:$0xff]   ;;  %v9204_v43 = vld [vmem:[#allocation8 + $0xa4] ss:$16 sps:$4 sm:$0xff]  }
 0x352   : > { %4680 = vmatprep.subr.bf16.mxu0 %v9137_v44  ;;  %4766 = vmatprep.subr.bf16.mxu1 %v9140_v13  ;;  %v9207_v44 = vld [vmem:[#allocation8 + $0xac] ss:$16 sps:$4 sm:$0xff]   ;;  %v9202_v13 = vld [vmem:[#allocation8 + $0xa0] ss:$16 sps:$4 sm:$0xff]  }
 0x355   : > { %4681 = vmatpush1.bf16.msra.mxu0 %v9135_v45  ;;  %4767 = vmatpush1.bf16.msra.mxu1 %v9138_v49  ;;  %v9205_v45 = vld [vmem:[#allocation8 + $0xa8] ss:$16 sps:$4 sm:$0xff]   ;;  %v9210_v49 = vld [vmem:[#allocation8 + $0xc4] ss:$16 sps:$4 sm:$0xff]  }
 0x356   : > { %4682 = vmatprep.subr.bf16.mxu0 %v9143_v50  ;;  %4768 = vmatprep.subr.bf16.mxu1 %v9146_v60  ;;  %v9213_v50 = vld [vmem:[#allocation8 + $0xcc] ss:$16 sps:$4 sm:$0xff]   ;;  %v9208_v60 = vld [vmem:[#allocation8 + $0xc0] ss:$16 sps:$4 sm:$0xff]  }
 0x359   : > { %4683 = vmatpush1.bf16.msra.mxu0 %v9141_v53  ;;  %4769 = vmatpush1.bf16.msra.mxu1 %v9144_v55  ;;  %v9211_v53 = vld [vmem:[#allocation8 + $0xc8] ss:$16 sps:$4 sm:$0xff]   ;;  %v9216_v55 = vld [vmem:[#allocation8 + $0xe4] ss:$16 sps:$4 sm:$0xff]  }
 0x35a   : > { %4684 = vmatprep.subr.bf16.mxu0 %v9149_v56  ;;  %4770 = vmatprep.subr.bf16.mxu1 %v9152_v57  ;;  %v9219_v56 = vld [vmem:[#allocation8 + $0xec] ss:$16 sps:$4 sm:$0xff]   ;;  %v9214_v57 = vld [vmem:[#allocation8 + $0xe0] ss:$16 sps:$4 sm:$0xff]  }
 0x35d   : > { %4685 = vmatpush1.bf16.msra.mxu0 %v9147_v58  ;;  %4771 = vmatpush1.bf16.msra.mxu1 %v9150_v59  ;;  %v9217_v58 = vld [vmem:[#allocation8 + $0xe8] ss:$16 sps:$4 sm:$0xff]   ;;  %v9222_v59 = vld [vmem:[#allocation8 + $0x104] ss:$16 sps:$4 sm:$0xff]  }
 0x35e   : > { %4686 = vmatprep.subr.bf16.mxu0 %v9155_v61  ;;  %4772 = vmatprep.subr.bf16.mxu1 %v9158_v62  ;;  %v9225_v61 = vld [vmem:[#allocation8 + $0x10c] ss:$16 sps:$4 sm:$0xff]   ;;  %v9220_v62 = vld [vmem:[#allocation8 + $0x100] ss:$16 sps:$4 sm:$0xff]  }
 0x361   : > { %4687 = vmatpush1.bf16.msra.mxu0 %v9153_v0  ;;  %4773 = vmatpush1.bf16.msra.mxu1 %v9156_v5  ;;  %v9223_v0 = vld [vmem:[#allocation8 + $0x108] ss:$16 sps:$4 sm:$0xff]   ;;  %v9228_v5 = vld [vmem:[#allocation8 + $0x124] ss:$16 sps:$4 sm:$0xff]  }
 0x362   : > { %4688 = vmatprep.subr.bf16.mxu0 %v9161_v6  ;;  %4774 = vmatprep.subr.bf16.mxu1 %v9164_v7  ;;  %v9231_v6 = vld [vmem:[#allocation8 + $0x12c] ss:$16 sps:$4 sm:$0xff]   ;;  %v9226_v7 = vld [vmem:[#allocation8 + $0x120] ss:$16 sps:$4 sm:$0xff]  }
 0x365   : > { %4689 = vmatpush1.bf16.msra.mxu0 %v9159_v8  ;;  %4775 = vmatpush1.bf16.msra.mxu1 %v9162_v9  ;;  %v9229_v8 = vld [vmem:[#allocation8 + $0x128] ss:$16 sps:$4 sm:$0xff]   ;;  %v9234_v9 = vld [vmem:[#allocation8 + $0x144] ss:$16 sps:$4 sm:$0xff]  }
 0x366   : > { %4690 = vmatprep.subr.bf16.mxu0 %v9167_v12  ;;  %4776 = vmatprep.subr.bf16.mxu1 %v9170_v17  ;;  %v9232_v12 = vld [vmem:[#allocation8 + $0x140] ss:$16 sps:$4 sm:$0xff]   ;;  %v9235_v17 = vld [vmem:[#allocation8 + $0x148] ss:$16 sps:$4 sm:$0xff]  }
 0x369   : > { %4691 = vmatpush1.bf16.msra.mxu0 %v9165_v14  ;;  %4777 = vmatpush1.bf16.msra.mxu1 %v9168_v19  ;;  %v9243_v14 = vld [vmem:[#allocation8 + $0x16c] ss:$16 sps:$4 sm:$0xff]   ;;  %v9238_v19 = vld [vmem:[#allocation8 + $0x160] ss:$16 sps:$4 sm:$0xff]  }
 0x36a   : > { %5433 = vmatprep.subr.bf16.mxu0 %v9174_v46  ;;  %5519 = vmatprep.subr.bf16.mxu1 %v9177_v63  ;;  %v9246_v46 = vld [vmem:[#allocation8 + $0x184] ss:$16 sps:$4 sm:$0xff]   ;;  %v9249_v63 = vld [vmem:[#allocation8 + $0x18c] ss:$16 sps:$4 sm:$0xff]  }
 0x36c   : > { %4693 = vmatmul.mubr.bf16.vlgmr.msra.gmra.mrb[4].mxu0 %v3960_v37  ;;  %4779 = vmatmul.mubr.bf16.vlgmr.msra.gmra.mrb[4].mxu1 %v3960_v37  ;;  %v9253_v37 = vld [vmem:[#allocation8 + $0x1a8] ss:$16 sps:$4 sm:$0xff]  }
 0x36d   : > { %5434 = vmatpush1.bf16.msra.mxu0 %v9172_v47  ;;  %5465 = vmatprep.mubr.bf16.mxu0 %v10270_v11  ;;  %v9255_v47 = vld [vmem:[#allocation8 + $0x1ac] ss:$16 sps:$4 sm:$0xff]  }
 0x36e   : > { %5520 = vmatpush1.bf16.msra.mxu1 %v9175_v29  ;;  %5551 = vmatprep.mubr.bf16.mxu1 %v10270_v11  ;;  %v9201_v11 = vld [vmem:[#allocation8 + $0x8c] ss:$16 sps:$4 sm:$0xff]   ;;  %v9250_v29 = vld [vmem:[#allocation8 + $0x1a0] ss:$16 sps:$4 sm:$0xff]  }
 0x36f   : > { %5435 = vmatprep.subr.bf16.mxu0 %v9180_v30  ;;  %5521 = vmatprep.subr.bf16.mxu1 %v9183_v31  ;;  %v9258_v30 = vld [vmem:[#allocation8 + $0x1c4] ss:$16 sps:$4 sm:$0xff]   ;;  %v9261_v31 = vld [vmem:[#allocation8 + $0x1cc] ss:$16 sps:$4 sm:$0xff]  }
 0x371   : > { %5436 = vmatpush1.bf16.msra.mxu0 %v9178_v23  ;;  %v9256_v23 = vld [vmem:[#allocation8 + $0x1c0] ss:$16 sps:$4 sm:$0xff]  }
 0x372   : > { %5522 = vmatpush1.bf16.msra.mxu1 %v9181_v33  ;;  %5437 = vmatprep.subr.bf16.mxu0 %v9186_v34  ;;  %v9259_v33 = vld [vmem:[#allocation8 + $0x1c8] ss:$16 sps:$4 sm:$0xff]   ;;  %v9264_v34 = vld [vmem:[#allocation8 + $0x1e4] ss:$16 sps:$4 sm:$0xff]  }
 0x373   : > { %5523 = vmatprep.subr.bf16.mxu1 %v9189_v35  ;;  %v9267_v35 = vld [vmem:[#allocation8 + $0x1ec] ss:$16 sps:$4 sm:$0xff]  }
 0x375   : > { %5438 = vmatpush1.bf16.msra.mxu0 %v9184_v36  ;;  %v9262_v36 = vld [vmem:[#allocation8 + $0x1e0] ss:$16 sps:$4 sm:$0xff]  }
 0x376   : > { %5524 = vmatpush1.bf16.msra.mxu1 %v9187_v25  ;;  %5439 = vmatprep.subr.bf16.mxu0 %v9192_v27  ;;  %v9265_v25 = vld [vmem:[#allocation8 + $0x1e8] ss:$16 sps:$4 sm:$0xff]   ;;  %v9270_v27 = vld [vmem:[#allocation8 + $0x204] ss:$16 sps:$4 sm:$0xff]  }
 0x377   : > { %5525 = vmatprep.subr.bf16.mxu1 %v9195_v39  ;;  %v9273_v39 = vld [vmem:[#allocation8 + $0x20c] ss:$16 sps:$4 sm:$0xff]  }
 0x379   : > { %5440 = vmatpush1.bf16.msra.mxu0 %v9190_v41  ;;  %v9268_v41 = vld [vmem:[#allocation8 + $0x200] ss:$16 sps:$4 sm:$0xff]  }
 0x37a   : > { %5526 = vmatpush1.bf16.msra.mxu1 %v9193_v40  ;;  %5441 = vmatprep.subr.bf16.mxu0 %v9198_v38  ;;  %v9271_v40 = vld [vmem:[#allocation8 + $0x208] ss:$16 sps:$4 sm:$0xff]   ;;  %v9276_v38 = vld [vmem:[#allocation8 + $0x224] ss:$16 sps:$4 sm:$0xff]  }
 0x37b   : > { %5527 = vmatprep.subr.bf16.mxu1 %v9201_v11  ;;  %v9279_v11 = vld [vmem:[#allocation8 + $0x22c] ss:$16 sps:$4 sm:$0xff]  }
 0x37d   : > { %5442 = vmatpush1.bf16.msra.mxu0 %v9196_v48  ;;  %v9274_v48 = vld [vmem:[#allocation8 + $0x220] ss:$16 sps:$4 sm:$0xff]  }
 0x37e   : > { %5528 = vmatpush1.bf16.msra.mxu1 %v9199_v42  ;;  %5443 = vmatprep.subr.bf16.mxu0 %v9204_v43  ;;  %v9277_v42 = vld [vmem:[#allocation8 + $0x228] ss:$16 sps:$4 sm:$0xff]   ;;  %v9282_v43 = vld [vmem:[#allocation8 + $0x244] ss:$16 sps:$4 sm:$0xff]  }
 0x37f   : > { %5529 = vmatprep.subr.bf16.mxu1 %v9207_v44  ;;  %v9285_v44 = vld [vmem:[#allocation8 + $0x24c] ss:$16 sps:$4 sm:$0xff]  }
 0x381   : > { %5444 = vmatpush1.bf16.msra.mxu0 %v9202_v13  ;;  %v9280_v13 = vld [vmem:[#allocation8 + $0x240] ss:$16 sps:$4 sm:$0xff]  }
 0x382   : > { %5530 = vmatpush1.bf16.msra.mxu1 %v9205_v45  ;;  %5445 = vmatprep.subr.bf16.mxu0 %v9210_v49  ;;  %v9283_v45 = vld [vmem:[#allocation8 + $0x248] ss:$16 sps:$4 sm:$0xff]   ;;  %v9288_v49 = vld [vmem:[#allocation8 + $0x264] ss:$16 sps:$4 sm:$0xff]  }
 0x383   : > { %5531 = vmatprep.subr.bf16.mxu1 %v9213_v50  ;;  %v9286_v50 = vld [vmem:[#allocation8 + $0x260] ss:$16 sps:$4 sm:$0xff]  }
 0x385   : > { %5446 = vmatpush1.bf16.msra.mxu0 %v9208_v60  ;;  %v9289_v60 = vld [vmem:[#allocation8 + $0x268] ss:$16 sps:$4 sm:$0xff]  }
 0x386   : > { %5532 = vmatpush1.bf16.msra.mxu1 %v9211_v53  ;;  %5447 = vmatprep.subr.bf16.mxu0 %v9216_v55  ;;  %v9294_v53 = vld [vmem:[#allocation8 + $0x284] ss:$16 sps:$4 sm:$0xff]   ;;  %v9297_v55 = vld [vmem:[#allocation8 + $0x28c] ss:$16 sps:$4 sm:$0xff]  }
 0x387   : > { %5533 = vmatprep.subr.bf16.mxu1 %v9219_v56  ;;  %v9295_v56 = vld [vmem:[#allocation8 + $0x288] ss:$16 sps:$4 sm:$0xff]  }
 0x389   : > { %5448 = vmatpush1.bf16.msra.mxu0 %v9214_v57  ;;  %v9300_v57 = vld [vmem:[#allocation8 + $0x2a4] ss:$16 sps:$4 sm:$0xff]  }
 0x38a   : > { %5534 = vmatpush1.bf16.msra.mxu1 %v9217_v58  ;;  %5449 = vmatprep.subr.bf16.mxu0 %v9222_v59  ;;  %v9303_v58 = vld [vmem:[#allocation8 + $0x2ac] ss:$16 sps:$4 sm:$0xff]   ;;  %v9298_v59 = vld [vmem:[#allocation8 + $0x2a0] ss:$16 sps:$4 sm:$0xff]  }
 0x38b   : > { %5535 = vmatprep.subr.bf16.mxu1 %v9225_v61  ;;  %v9301_v61 = vld [vmem:[#allocation8 + $0x2a8] ss:$16 sps:$4 sm:$0xff]  }
 0x38d   : > { %5450 = vmatpush1.bf16.msra.mxu0 %v9220_v62  ;;  %v9306_v62 = vld [vmem:[#allocation8 + $0x2c4] ss:$16 sps:$4 sm:$0xff]  }
 0x38e   : > { %5536 = vmatpush1.bf16.msra.mxu1 %v9223_v0  ;;  %5451 = vmatprep.subr.bf16.mxu0 %v9228_v5  ;;  %v9309_v0 = vld [vmem:[#allocation8 + $0x2cc] ss:$16 sps:$4 sm:$0xff]   ;;  %v9304_v5 = vld [vmem:[#allocation8 + $0x2c0] ss:$16 sps:$4 sm:$0xff]  }
 0x38f   : > { %5537 = vmatprep.subr.bf16.mxu1 %v9231_v6  ;;  %v9307_v6 = vld [vmem:[#allocation8 + $0x2c8] ss:$16 sps:$4 sm:$0xff]  }
 0x391   : > { %5452 = vmatpush1.bf16.msra.mxu0 %v9226_v7  ;;  %v9312_v7 = vld [vmem:[#allocation8 + $0x2e4] ss:$16 sps:$4 sm:$0xff]  }
 0x392   : > { %5538 = vmatpush1.bf16.msra.mxu1 %v9229_v8  ;;  %5453 = vmatprep.subr.bf16.mxu0 %v9234_v9  ;;  %v9315_v8 = vld [vmem:[#allocation8 + $0x2ec] ss:$16 sps:$4 sm:$0xff]   ;;  %v9310_v9 = vld [vmem:[#allocation8 + $0x2e0] ss:$16 sps:$4 sm:$0xff]  }
 0x393   : > { %5539 = vmatprep.subr.bf16.mxu1 %v9237_v10  ;;  %v9313_v10 = vld [vmem:[#allocation8 + $0x2e8] ss:$16 sps:$4 sm:$0xff]  }
 0x395   : > { %5454 = vmatpush1.bf16.msra.mxu0 %v9232_v12  ;;  %v9318_v12 = vld [vmem:[#allocation8 + $0x304] ss:$16 sps:$4 sm:$0xff]  }
 0x396   : > { %5540 = vmatpush1.bf16.msra.mxu1 %v9235_v17  ;;  %5455 = vmatprep.subr.bf16.mxu0 %v9240_v18  ;;  %v9321_v17 = vld [vmem:[#allocation8 + $0x30c] ss:$16 sps:$4 sm:$0xff]   ;;  %v9316_v18 = vld [vmem:[#allocation8 + $0x300] ss:$16 sps:$4 sm:$0xff]  }
 0x397   : > { %5541 = vmatprep.subr.bf16.mxu1 %v9243_v14  ;;  %v9319_v14 = vld [vmem:[#allocation8 + $0x308] ss:$16 sps:$4 sm:$0xff]  }
 0x399   : > { %5456 = vmatpush1.bf16.msra.mxu0 %v9238_v19  ;;  %v9324_v19 = vld [vmem:[#allocation8 + $0x324] ss:$16 sps:$4 sm:$0xff]  }
 0x39a   : > { %5542 = vmatpush1.bf16.msra.mxu1 %v9241_v20  ;;  %5457 = vmatprep.subr.bf16.mxu0 %v9246_v46  ;;  %v9327_v20 = vld [vmem:[#allocation8 + $0x32c] ss:$16 sps:$4 sm:$0xff]   ;;  %v9322_v46 = vld [vmem:[#allocation8 + $0x320] ss:$16 sps:$4 sm:$0xff]  }
 0x39b   : > { %5543 = vmatprep.subr.bf16.mxu1 %v9249_v63  ;;  %v9325_v63 = vld [vmem:[#allocation8 + $0x328] ss:$16 sps:$4 sm:$0xff]  }
 0x39d   : > { %5458 = vmatpush1.bf16.msra.mxu0 %v9244_v22  ;;  %v9330_v22 = vld [vmem:[#allocation8 + $0x344] ss:$16 sps:$4 sm:$0xff]  }
 0x39e   : > { %5544 = vmatpush1.bf16.msra.mxu1 %v9247_v24  ;;  %5459 = vmatprep.subr.bf16.mxu0 %v9252_v26  ;;  %v9333_v24 = vld [vmem:[#allocation8 + $0x34c] ss:$16 sps:$4 sm:$0xff]   ;;  %v9328_v26 = vld [vmem:[#allocation8 + $0x340] ss:$16 sps:$4 sm:$0xff]  }
 0x39f   : > { %5545 = vmatprep.subr.bf16.mxu1 %v9255_v47  ;;  %v9331_v47 = vld [vmem:[#allocation8 + $0x348] ss:$16 sps:$4 sm:$0xff]  }
 0x3a1   : > { %5460 = vmatpush1.bf16.msra.mxu0 %v9250_v29  ;;  %v9336_v29 = vld [vmem:[#allocation8 + $0x364] ss:$16 sps:$4 sm:$0xff]  }
 0x3a2   : > { %5546 = vmatpush1.bf16.msra.mxu1 %v9253_v37  ;;  %5461 = vmatprep.subr.bf16.mxu0 %v9258_v30  ;;  %v9339_v37 = vld [vmem:[#allocation8 + $0x36c] ss:$16 sps:$4 sm:$0xff]   ;;  %v9334_v30 = vld [vmem:[#allocation8 + $0x360] ss:$16 sps:$4 sm:$0xff]  }
 0x3a3   : > { %5547 = vmatprep.subr.bf16.mxu1 %v9261_v31  ;;  %v9337_v31 = vld [vmem:[#allocation8 + $0x368] ss:$16 sps:$4 sm:$0xff]  }
 0x3a5   : > { %5462 = vmatpush1.bf16.msra.mxu0 %v9256_v23  ;;  %v9342_v23 = vld [vmem:[#allocation8 + $0x384] ss:$16 sps:$4 sm:$0xff]  }
 0x3a6   : > { %5548 = vmatpush1.bf16.msra.mxu1 %v9259_v33  ;;  %5463 = vmatprep.subr.bf16.mxu0 %v9264_v34  ;;  %v9345_v33 = vld [vmem:[#allocation8 + $0x38c] ss:$16 sps:$4 sm:$0xff]   ;;  %v9340_v34 = vld [vmem:[#allocation8 + $0x380] ss:$16 sps:$4 sm:$0xff]  }
 0x3a7   : > { %5549 = vmatprep.subr.bf16.mxu1 %v9267_v35  ;;  %v9343_v35 = vld [vmem:[#allocation8 + $0x388] ss:$16 sps:$4 sm:$0xff]  }
 0x3a9   : > { %5464 = vmatpush1.bf16.msra.mxu0 %v9262_v36  ;;  %v9348_v36 = vld [vmem:[#allocation8 + $0x3a4] ss:$16 sps:$4 sm:$0xff]  }
 0x3aa   : > { %5550 = vmatpush1.bf16.msra.mxu1 %v9265_v25  ;;  %5476 = vmatprep.subr.bf16.mxu0 %v9270_v27  ;;  %v9351_v25 = vld [vmem:[#allocation8 + $0x3ac] ss:$16 sps:$4 sm:$0xff]   ;;  %v9346_v27 = vld [vmem:[#allocation8 + $0x3a0] ss:$16 sps:$4 sm:$0xff]  }
 0x3ab   : > { %5562 = vmatprep.subr.bf16.mxu1 %v9273_v39  ;;  %v9349_v39 = vld [vmem:[#allocation8 + $0x3a8] ss:$16 sps:$4 sm:$0xff]  }
 0x3ac   : > { %5466 = vmatmul.mubr.bf16.vlgmr.msra.gmra.mrb[4].mxu0 %v10272_v15 }
 0x3ad   : > { %5552 = vmatmul.mubr.bf16.vlgmr.msra.gmra.mrb[4].mxu1 %v10272_v15  ;;  %5477 = vmatpush1.bf16.msra.mxu0 %v9268_v41  ;;  %v9291_v15 = vld [vmem:[#allocation8 + $0x26c] ss:$16 sps:$4 sm:$0xff]   ;;  %v9354_v41 = vld [vmem:[#allocation8 + $0x3c4] ss:$16 sps:$4 sm:$0xff]  }
 0x3ae   : > { %5508 = vmatprep.mubr.bf16.mxu0 %v10274_v28  ;;  %5563 = vmatpush1.bf16.msra.mxu1 %v9271_v40  ;;  %v9357_v40 = vld [vmem:[#allocation8 + $0x3cc] ss:$16 sps:$4 sm:$0xff]  }
 0x3af   : > { %5594 = vmatprep.mubr.bf16.mxu1 %v10274_v28  ;;  %5478 = vmatprep.subr.bf16.mxu0 %v9276_v38  ;;  %v9292_v28 = vld [vmem:[#allocation8 + $0x280] ss:$16 sps:$4 sm:$0xff]  }
 0x3b0   : > { %5564 = vmatprep.subr.bf16.mxu1 %v9279_v11  ;;  %v9352_v38 = vld [vmem:[#allocation8 + $0x3c0] ss:$16 sps:$4 sm:$0xff]   ;;  %v9355_v11 = vld [vmem:[#allocation8 + $0x3c8] ss:$16 sps:$4 sm:$0xff]  }
 0x3b1   : > { %5479 = vmatpush1.bf16.msra.mxu0 %v9274_v48  ;;  %v9360_v48 = vld [vmem:[#allocation8 + $0x3e4] ss:$16 sps:$4 sm:$0xff]  }
 0x3b2   : > { %5565 = vmatpush1.bf16.msra.mxu1 %v9277_v42  ;;  %5480 = vmatprep.subr.bf16.mxu0 %v9282_v43  ;;  %v9363_v42 = vld [vmem:[#allocation8 + $0x3ec] ss:$16 sps:$4 sm:$0xff]   ;;  %v9358_v43 = vld [vmem:[#allocation8 + $0x3e0] ss:$16 sps:$4 sm:$0xff]  }
 0x3b3   : > { %5566 = vmatprep.subr.bf16.mxu1 %v9285_v44  ;;  %v9361_v44 = vld [vmem:[#allocation8 + $0x3e8] ss:$16 sps:$4 sm:$0xff]  }
 0x3b5   : > { %5481 = vmatpush1.bf16.msra.mxu0 %v9280_v13  ;;  %v9366_v13 = vld [vmem:[#allocation8 + $0x804] ss:$16 sps:$4 sm:$0xff]  }
 0x3b6   : > { %5567 = vmatpush1.bf16.msra.mxu1 %v9283_v45  ;;  %5482 = vmatprep.subr.bf16.mxu0 %v9288_v49  ;;  %v9369_v45 = vld [vmem:[#allocation8 + $0x80c] ss:$16 sps:$4 sm:$0xff]   ;;  %v9364_v49 = vld [vmem:[#allocation8 + $0x800] ss:$16 sps:$4 sm:$0xff]  }
 0x3b7   : > { %5568 = vmatprep.subr.bf16.mxu1 %v9291_v15  ;;  %v9367_v15 = vld [vmem:[#allocation8 + $0x808] ss:$16 sps:$4 sm:$0xff]  }
 0x3b9   : > { %5483 = vmatpush1.bf16.msra.mxu0 %v9286_v50  ;;  %v9372_v50 = vld [vmem:[#allocation8 + $0x824] ss:$16 sps:$4 sm:$0xff]  }
 0x3ba   : > { %5569 = vmatpush1.bf16.msra.mxu1 %v9289_v60  ;;  %5484 = vmatprep.subr.bf16.mxu0 %v9294_v53  ;;  %v9375_v60 = vld [vmem:[#allocation8 + $0x82c] ss:$16 sps:$4 sm:$0xff]   ;;  %v9370_v53 = vld [vmem:[#allocation8 + $0x820] ss:$16 sps:$4 sm:$0xff]  }
 0x3bb   : > { %5570 = vmatprep.subr.bf16.mxu1 %v9297_v55  ;;  %v9373_v55 = vld [vmem:[#allocation8 + $0x828] ss:$16 sps:$4 sm:$0xff]  }
 0x3bd   : > { %5485 = vmatpush1.bf16.msra.mxu0 %v9292_v28  ;;  %v9378_v28 = vld [vmem:[#allocation8 + $0x844] ss:$16 sps:$4 sm:$0xff]  }
 0x3be   : > { %5571 = vmatpush1.bf16.msra.mxu1 %v9295_v56  ;;  %5486 = vmatprep.subr.bf16.mxu0 %v9300_v57  ;;  %v9381_v56 = vld [vmem:[#allocation8 + $0x84c] ss:$16 sps:$4 sm:$0xff]   ;;  %v9376_v57 = vld [vmem:[#allocation8 + $0x840] ss:$16 sps:$4 sm:$0xff]  }
 0x3bf   : > { %5572 = vmatprep.subr.bf16.mxu1 %v9303_v58  ;;  %v9379_v58 = vld [vmem:[#allocation8 + $0x848] ss:$16 sps:$4 sm:$0xff]  }
 0x3c1   : > { %5487 = vmatpush1.bf16.msra.mxu0 %v9298_v59  ;;  %v9384_v59 = vld [vmem:[#allocation8 + $0x864] ss:$16 sps:$4 sm:$0xff]  }
 0x3c2   : > { %5573 = vmatpush1.bf16.msra.mxu1 %v9301_v61  ;;  %5488 = vmatprep.subr.bf16.mxu0 %v9306_v62  ;;  %v9382_v61 = vld [vmem:[#allocation8 + $0x860] ss:$16 sps:$4 sm:$0xff]   ;;  %v9385_v62 = vld [vmem:[#allocation8 + $0x868] ss:$16 sps:$4 sm:$0xff]  }
 0x3c3   : > { %5574 = vmatprep.subr.bf16.mxu1 %v9309_v0  ;;  %v9390_v0 = vld [vmem:[#allocation8 + $0x884] ss:$16 sps:$4 sm:$0xff]  }
 0x3c5   : > { %5489 = vmatpush1.bf16.msra.mxu0 %v9304_v5  ;;  %v9393_v5 = vld [vmem:[#allocation8 + $0x88c] ss:$16 sps:$4 sm:$0xff]  }
 0x3c6   : > { %5575 = vmatpush1.bf16.msra.mxu1 %v9307_v6  ;;  %5490 = vmatprep.subr.bf16.mxu0 %v9312_v7  ;;  %v9391_v6 = vld [vmem:[#allocation8 + $0x888] ss:$16 sps:$4 sm:$0xff]   ;;  %v9396_v7 = vld [vmem:[#allocation8 + $0x8a4] ss:$16 sps:$4 sm:$0xff]  }
 0x3c7   : > { %5576 = vmatprep.subr.bf16.mxu1 %v9315_v8  ;;  %v9399_v8 = vld [vmem:[#allocation8 + $0x8ac] ss:$16 sps:$4 sm:$0xff]  }
 0x3c9   : > { %5491 = vmatpush1.bf16.msra.mxu0 %v9310_v9  ;;  %v9394_v9 = vld [vmem:[#allocation8 + $0x8a0] ss:$16 sps:$4 sm:$0xff]  }
 0x3ca   : > { %5577 = vmatpush1.bf16.msra.mxu1 %v9313_v10  ;;  %5492 = vmatprep.subr.bf16.mxu0 %v9318_v12  ;;  %v9397_v10 = vld [vmem:[#allocation8 + $0x8a8] ss:$16 sps:$4 sm:$0xff]   ;;  %v9402_v12 = vld [vmem:[#allocation8 + $0x8c4] ss:$16 sps:$4 sm:$0xff]  }
 0x3cb   : > { %5578 = vmatprep.subr.bf16.mxu1 %v9321_v17  ;;  %v9405_v17 = vld [vmem:[#allocation8 + $0x8cc] ss:$16 sps:$4 sm:$0xff]  }
 0x3cd   : > { %5493 = vmatpush1.bf16.msra.mxu0 %v9316_v18  ;;  %v9400_v18 = vld [vmem:[#allocation8 + $0x8c0] ss:$16 sps:$4 sm:$0xff]  }
 0x3ce   : > { %5579 = vmatpush1.bf16.msra.mxu1 %v9319_v14  ;;  %5494 = vmatprep.subr.bf16.mxu0 %v9324_v19  ;;  %v9403_v14 = vld [vmem:[#allocation8 + $0x8c8] ss:$16 sps:$4 sm:$0xff]   ;;  %v9408_v19 = vld [vmem:[#allocation8 + $0x8e4] ss:$16 sps:$4 sm:$0xff]  }
 0x3cf   : > { %5580 = vmatprep.subr.bf16.mxu1 %v9327_v20  ;;  %v9411_v20 = vld [vmem:[#allocation8 + $0x8ec] ss:$16 sps:$4 sm:$0xff]  }
 0x3d1   : > { %5495 = vmatpush1.bf16.msra.mxu0 %v9322_v46  ;;  %v9406_v46 = vld [vmem:[#allocation8 + $0x8e0] ss:$16 sps:$4 sm:$0xff]  }
 0x3d2   : > { %5581 = vmatpush1.bf16.msra.mxu1 %v9325_v63  ;;  %5496 = vmatprep.subr.bf16.mxu0 %v9330_v22  ;;  %v9409_v63 = vld [vmem:[#allocation8 + $0x8e8] ss:$16 sps:$4 sm:$0xff]   ;;  %v9414_v22 = vld [vmem:[#allocation8 + $0x904] ss:$16 sps:$4 sm:$0xff]  }
 0x3d3   : > { %5582 = vmatprep.subr.bf16.mxu1 %v9333_v24  ;;  %v9417_v24 = vld [vmem:[#allocation8 + $0x90c] ss:$16 sps:$4 sm:$0xff]  }
 0x3d5   : > { %5497 = vmatpush1.bf16.msra.mxu0 %v9328_v26  ;;  %v9412_v26 = vld [vmem:[#allocation8 + $0x900] ss:$16 sps:$4 sm:$0xff]  }
 0x3d6   : > { %5583 = vmatpush1.bf16.msra.mxu1 %v9331_v47  ;;  %5498 = vmatprep.subr.bf16.mxu0 %v9336_v29  ;;  %v9415_v47 = vld [vmem:[#allocation8 + $0x908] ss:$16 sps:$4 sm:$0xff]   ;;  %v9420_v29 = vld [vmem:[#allocation8 + $0x924] ss:$16 sps:$4 sm:$0xff]  }
 0x3d7   : > { %5584 = vmatprep.subr.bf16.mxu1 %v9339_v37  ;;  %v9423_v37 = vld [vmem:[#allocation8 + $0x92c] ss:$16 sps:$4 sm:$0xff]  }
 0x3d9   : > { %5499 = vmatpush1.bf16.msra.mxu0 %v9334_v30  ;;  %v9418_v30 = vld [vmem:[#allocation8 + $0x920] ss:$16 sps:$4 sm:$0xff]  }
 0x3da   : > { %5585 = vmatpush1.bf16.msra.mxu1 %v9337_v31  ;;  %5500 = vmatprep.subr.bf16.mxu0 %v9342_v23  ;;  %v9421_v31 = vld [vmem:[#allocation8 + $0x928] ss:$16 sps:$4 sm:$0xff]   ;;  %v9426_v23 = vld [vmem:[#allocation8 + $0x944] ss:$16 sps:$4 sm:$0xff]  }
 0x3db   : > { %5586 = vmatprep.subr.bf16.mxu1 %v9345_v33  ;;  %v9429_v33 = vld [vmem:[#allocation8 + $0x94c] ss:$16 sps:$4 sm:$0xff]  }
 0x3dd   : > { %5501 = vmatpush1.bf16.msra.mxu0 %v9340_v34  ;;  %v9424_v34 = vld [vmem:[#allocation8 + $0x940] ss:$16 sps:$4 sm:$0xff]  }
 0x3de   : > { %5587 = vmatpush1.bf16.msra.mxu1 %v9343_v35  ;;  %5502 = vmatprep.subr.bf16.mxu0 %v9348_v36  ;;  %v9427_v35 = vld [vmem:[#allocation8 + $0x948] ss:$16 sps:$4 sm:$0xff]   ;;  %v9432_v36 = vld [vmem:[#allocation8 + $0x964] ss:$16 sps:$4 sm:$0xff]  }
 0x3df   : > { %5588 = vmatprep.subr.bf16.mxu1 %v9351_v25  ;;  %v9435_v25 = vld [vmem:[#allocation8 + $0x96c] ss:$16 sps:$4 sm:$0xff]  }
 0x3e1   : > { %5503 = vmatpush1.bf16.msra.mxu0 %v9346_v27  ;;  %v9430_v27 = vld [vmem:[#allocation8 + $0x960] ss:$16 sps:$4 sm:$0xff]  }
 0x3e2   : > { %5589 = vmatpush1.bf16.msra.mxu1 %v9349_v39  ;;  %5504 = vmatprep.subr.bf16.mxu0 %v9354_v41  ;;  %v9433_v39 = vld [vmem:[#allocation8 + $0x968] ss:$16 sps:$4 sm:$0xff]   ;;  %v9438_v41 = vld [vmem:[#allocation8 + $0x984] ss:$16 sps:$4 sm:$0xff]  }
 0x3e3   : > { %5590 = vmatprep.subr.bf16.mxu1 %v9357_v40  ;;  %v9441_v40 = vld [vmem:[#allocation8 + $0x98c] ss:$16 sps:$4 sm:$0xff]  }
 0x3e5   : > { %5505 = vmatpush1.bf16.msra.mxu0 %v9352_v38  ;;  %v9436_v38 = vld [vmem:[#allocation8 + $0x980] ss:$16 sps:$4 sm:$0xff]  }
 0x3e6   : > { %5591 = vmatpush1.bf16.msra.mxu1 %v9355_v11  ;;  %5506 = vmatprep.subr.bf16.mxu0 %v9360_v48  ;;  %v9439_v11 = vld [vmem:[#allocation8 + $0x988] ss:$16 sps:$4 sm:$0xff]   ;;  %v9444_v48 = vld [vmem:[#allocation8 + $0x9a4] ss:$16 sps:$4 sm:$0xff]  }
 0x3e7   : > { %5592 = vmatprep.subr.bf16.mxu1 %v9363_v42  ;;  %v9447_v42 = vld [vmem:[#allocation8 + $0x9ac] ss:$16 sps:$4 sm:$0xff]  }
 0x3e9   : > { %5507 = vmatpush1.bf16.msra.mxu0 %v9358_v43  ;;  %v9442_v43 = vld [vmem:[#allocation8 + $0x9a0] ss:$16 sps:$4 sm:$0xff]  }
 0x3ea   : > { %5593 = vmatpush1.bf16.msra.mxu1 %v9361_v44  ;;  %6402 = vmatprep.subr.bf16.mxu0 %v9366_v13  ;;  %v9445_v44 = vld [vmem:[#allocation8 + $0x9a8] ss:$16 sps:$4 sm:$0xff]   ;;  %v9450_v13 = vld [vmem:[#allocation8 + $0x9c4] ss:$16 sps:$4 sm:$0xff]  }
 0x3eb   : > { %6488 = vmatprep.subr.bf16.mxu1 %v9369_v45  ;;  %v9453_v45 = vld [vmem:[#allocation8 + $0x9cc] ss:$16 sps:$4 sm:$0xff]  }
 0x3ec   : > { %5509 = vmatmul.mubr.bf16.vlgmr.msra.gmra.mrb[4].mxu0 %v10276_v16 }
 0x3ed   : > { %5595 = vmatmul.mubr.bf16.vlgmr.msra.gmra.mrb[4].mxu1 %v10276_v16  ;;  %6403 = vmatpush1.bf16.msra.mxu0 %v9364_v49  ;;  %v9387_v16 = vld [vmem:[#allocation8 + $0x86c] ss:$16 sps:$4 sm:$0xff]   ;;  %v9448_v49 = vld [vmem:[#allocation8 + $0x9c0] ss:$16 sps:$4 sm:$0xff]  }
 0x3ee   : > { %6434 = vmatprep.mubr.bf16.mxu0 %v10290_v1  ;;  %6489 = vmatpush1.bf16.msra.mxu1 %v9367_v15  ;;  %v9451_v15 = vld [vmem:[#allocation8 + $0x9c8] ss:$16 sps:$4 sm:$0xff]  }
 0x3ef   : > { %6520 = vmatprep.mubr.bf16.mxu1 %v10290_v1  ;;  %6404 = vmatprep.subr.bf16.mxu0 %v9372_v50  ;;  %v9388_v1 = vld [vmem:[#allocation8 + $0x880] ss:$16 sps:$4 sm:$0xff]   ;;  %v9456_v50 = vld [vmem:[#allocation8 + $0x9e4] ss:$16 sps:$4 sm:$0xff]  }
 0x3f0   : > { %6490 = vmatprep.subr.bf16.mxu1 %v9375_v60  ;;  %v9459_v60 = vld [vmem:[#allocation8 + $0x9ec] ss:$16 sps:$4 sm:$0xff]  }
 0x3f1   : > { %6405 = vmatpush1.bf16.msra.mxu0 %v9370_v53  ;;  %v9454_v53 = vld [vmem:[#allocation8 + $0x9e0] ss:$16 sps:$4 sm:$0xff]  }
 0x3f2   : > { %6491 = vmatpush1.bf16.msra.mxu1 %v9373_v55  ;;  %6406 = vmatprep.subr.bf16.mxu0 %v9378_v28  ;;  %v9457_v55 = vld [vmem:[#allocation8 + $0x9e8] ss:$16 sps:$4 sm:$0xff]   ;;  %v9462_v28 = vld [vmem:[#allocation8 + $0xa04] ss:$16 sps:$4 sm:$0xff]  }
 0x3f3   : > { %6492 = vmatprep.subr.bf16.mxu1 %v9381_v56  ;;  %v9465_v56 = vld [vmem:[#allocation8 + $0xa0c] ss:$16 sps:$4 sm:$0xff]  }
 0x3f5   : > { %6407 = vmatpush1.bf16.msra.mxu0 %v9376_v57  ;;  %v9460_v57 = vld [vmem:[#allocation8 + $0xa00] ss:$16 sps:$4 sm:$0xff]  }
 0x3f6   : > { %6493 = vmatpush1.bf16.msra.mxu1 %v9379_v58  ;;  %6408 = vmatprep.subr.bf16.mxu0 %v9384_v59  ;;  %v9463_v58 = vld [vmem:[#allocation8 + $0xa08] ss:$16 sps:$4 sm:$0xff]   ;;  %v9468_v59 = vld [vmem:[#allocation8 + $0xa24] ss:$16 sps:$4 sm:$0xff]  }
 0x3f7   : > { %6494 = vmatprep.subr.bf16.mxu1 %v9387_v16  ;;  %v9471_v16 = vld [vmem:[#allocation8 + $0xa2c] ss:$16 sps:$4 sm:$0xff]  }
 0x3f9   : > { %6409 = vmatpush1.bf16.msra.mxu0 %v9382_v61  ;;  %v9466_v61 = vld [vmem:[#allocation8 + $0xa20] ss:$16 sps:$4 sm:$0xff]  }
 0x3fa   : > { %6495 = vmatpush1.bf16.msra.mxu1 %v9385_v62  ;;  %6410 = vmatprep.subr.bf16.mxu0 %v9390_v0  ;;  %v9469_v62 = vld [vmem:[#allocation8 + $0xa28] ss:$16 sps:$4 sm:$0xff]   ;;  %v9474_v0 = vld [vmem:[#allocation8 + $0xa44] ss:$16 sps:$4 sm:$0xff]  }
 0x3fb   : > { %6496 = vmatprep.subr.bf16.mxu1 %v9393_v5  ;;  %v9477_v5 = vld [vmem:[#allocation8 + $0xa4c] ss:$16 sps:$4 sm:$0xff]  }
 0x3fd   : > { %6411 = vmatpush1.bf16.msra.mxu0 %v9388_v1  ;;  %v9472_v1 = vld [vmem:[#allocation8 + $0xa40] ss:$16 sps:$4 sm:$0xff]  }
 0x3fe   : > { %6497 = vmatpush1.bf16.msra.mxu1 %v9391_v6  ;;  %6412 = vmatprep.subr.bf16.mxu0 %v9396_v7  ;;  %v9475_v6 = vld [vmem:[#allocation8 + $0xa48] ss:$16 sps:$4 sm:$0xff]   ;;  %v9480_v7 = vld [vmem:[#allocation8 + $0xa64] ss:$16 sps:$4 sm:$0xff]  }
 0x3ff   : > { %6498 = vmatprep.subr.bf16.mxu1 %v9399_v8  ;;  %v9478_v8 = vld [vmem:[#allocation8 + $0xa60] ss:$16 sps:$4 sm:$0xff]  }
 0x401   : > { %6413 = vmatpush1.bf16.msra.mxu0 %v9394_v9  ;;  %v9481_v9 = vld [vmem:[#allocation8 + $0xa68] ss:$16 sps:$4 sm:$0xff]  }
 0x402   : > { %6499 = vmatpush1.bf16.msra.mxu1 %v9397_v10  ;;  %6414 = vmatprep.subr.bf16.mxu0 %v9402_v12  ;;  %v9486_v10 = vld [vmem:[#allocation8 + $0xa84] ss:$16 sps:$4 sm:$0xff]   ;;  %v9489_v12 = vld [vmem:[#allocation8 + $0xa8c] ss:$16 sps:$4 sm:$0xff]  }
 0x403   : > { %6500 = vmatprep.subr.bf16.mxu1 %v9405_v17  ;;  %v9487_v17 = vld [vmem:[#allocation8 + $0xa88] ss:$16 sps:$4 sm:$0xff]  }
 0x405   : > { %6415 = vmatpush1.bf16.msra.mxu0 %v9400_v18  ;;  %v9492_v18 = vld [vmem:[#allocation8 + $0xaa4] ss:$16 sps:$4 sm:$0xff]  }
 0x406   : > { %6501 = vmatpush1.bf16.msra.mxu1 %v9403_v14  ;;  %6416 = vmatprep.subr.bf16.mxu0 %v9408_v19  ;;  %v9495_v14 = vld [vmem:[#allocation8 + $0xaac] ss:$16 sps:$4 sm:$0xff]   ;;  %v9490_v19 = vld [vmem:[#allocation8 + $0xaa0] ss:$16 sps:$4 sm:$0xff]  }
 0x407   : > { %6502 = vmatprep.subr.bf16.mxu1 %v9411_v20  ;;  %v9493_v20 = vld [vmem:[#allocation8 + $0xaa8] ss:$16 sps:$4 sm:$0xff]  }
 0x409   : > { %6417 = vmatpush1.bf16.msra.mxu0 %v9406_v46  ;;  %v9498_v46 = vld [vmem:[#allocation8 + $0xac4] ss:$16 sps:$4 sm:$0xff]  }
 0x40a   : > { %6503 = vmatpush1.bf16.msra.mxu1 %v9409_v63  ;;  %6418 = vmatprep.subr.bf16.mxu0 %v9414_v22  ;;  %v9501_v63 = vld [vmem:[#allocation8 + $0xacc] ss:$16 sps:$4 sm:$0xff]   ;;  %v9496_v22 = vld [vmem:[#allocation8 + $0xac0] ss:$16 sps:$4 sm:$0xff]  }
 0x40b   : > { %6504 = vmatprep.subr.bf16.mxu1 %v9417_v24  ;;  %v9499_v24 = vld [vmem:[#allocation8 + $0xac8] ss:$16 sps:$4 sm:$0xff]  }
 0x40d   : > { %6419 = vmatpush1.bf16.msra.mxu0 %v9412_v26  ;;  %v9504_v26 = vld [vmem:[#allocation8 + $0xae4] ss:$16 sps:$4 sm:$0xff]  }
 0x40e   : > { %6505 = vmatpush1.bf16.msra.mxu1 %v9415_v47  ;;  %6420 = vmatprep.subr.bf16.mxu0 %v9420_v29  ;;  %v9507_v47 = vld [vmem:[#allocation8 + $0xaec] ss:$16 sps:$4 sm:$0xff]   ;;  %v9502_v29 = vld [vmem:[#allocation8 + $0xae0] ss:$16 sps:$4 sm:$0xff]  }
 0x40f   : > { %6506 = vmatprep.subr.bf16.mxu1 %v9423_v37  ;;  %v9505_v37 = vld [vmem:[#allocation8 + $0xae8] ss:$16 sps:$4 sm:$0xff]  }
 0x411   : > { %6421 = vmatpush1.bf16.msra.mxu0 %v9418_v30  ;;  %v9510_v30 = vld [vmem:[#allocation8 + $0xb04] ss:$16 sps:$4 sm:$0xff]  }
 0x412   : > { %6507 = vmatpush1.bf16.msra.mxu1 %v9421_v31  ;;  %6422 = vmatprep.subr.bf16.mxu0 %v9426_v23  ;;  %v9513_v31 = vld [vmem:[#allocation8 + $0xb0c] ss:$16 sps:$4 sm:$0xff]   ;;  %v9508_v23 = vld [vmem:[#allocation8 + $0xb00] ss:$16 sps:$4 sm:$0xff]  }
 0x413   : > { %6508 = vmatprep.subr.bf16.mxu1 %v9429_v33  ;;  %v9511_v33 = vld [vmem:[#allocation8 + $0xb08] ss:$16 sps:$4 sm:$0xff]  }
 0x415   : > { %6423 = vmatpush1.bf16.msra.mxu0 %v9424_v34  ;;  %v9516_v34 = vld [vmem:[#allocation8 + $0xb24] ss:$16 sps:$4 sm:$0xff]  }
 0x416   : > { %6509 = vmatpush1.bf16.msra.mxu1 %v9427_v35  ;;  %6424 = vmatprep.subr.bf16.mxu0 %v9432_v36  ;;  %v9519_v35 = vld [vmem:[#allocation8 + $0xb2c] ss:$16 sps:$4 sm:$0xff]   ;;  %v9514_v36 = vld [vmem:[#allocation8 + $0xb20] ss:$16 sps:$4 sm:$0xff]  }
 0x417   : > { %6510 = vmatprep.subr.bf16.mxu1 %v9435_v25  ;;  %v9517_v25 = vld [vmem:[#allocation8 + $0xb28] ss:$16 sps:$4 sm:$0xff]  }
 0x419   : > { %6425 = vmatpush1.bf16.msra.mxu0 %v9430_v27  ;;  %v9522_v27 = vld [vmem:[#allocation8 + $0xb44] ss:$16 sps:$4 sm:$0xff]  }
 0x41a   : > { %6511 = vmatpush1.bf16.msra.mxu1 %v9433_v39  ;;  %6426 = vmatprep.subr.bf16.mxu0 %v9438_v41  ;;  %v9525_v39 = vld [vmem:[#allocation8 + $0xb4c] ss:$16 sps:$4 sm:$0xff]   ;;  %v9520_v41 = vld [vmem:[#allocation8 + $0xb40] ss:$16 sps:$4 sm:$0xff]  }
 0x41b   : > { %6512 = vmatprep.subr.bf16.mxu1 %v9441_v40  ;;  %v9523_v40 = vld [vmem:[#allocation8 + $0xb48] ss:$16 sps:$4 sm:$0xff]  }
 0x41d   : > { %6427 = vmatpush1.bf16.msra.mxu0 %v9436_v38  ;;  %v9528_v38 = vld [vmem:[#allocation8 + $0xb64] ss:$16 sps:$4 sm:$0xff]  }
 0x41e   : > { %6513 = vmatpush1.bf16.msra.mxu1 %v9439_v11  ;;  %6428 = vmatprep.subr.bf16.mxu0 %v9444_v48  ;;  %v9531_v11 = vld [vmem:[#allocation8 + $0xb6c] ss:$16 sps:$4 sm:$0xff]   ;;  %v9526_v48 = vld [vmem:[#allocation8 + $0xb60] ss:$16 sps:$4 sm:$0xff]  }
 0x41f   : > { %6514 = vmatprep.subr.bf16.mxu1 %v9447_v42  ;;  %v9529_v42 = vld [vmem:[#allocation8 + $0xb68] ss:$16 sps:$4 sm:$0xff]  }
 0x421   : > { %6429 = vmatpush1.bf16.msra.mxu0 %v9442_v43  ;;  %v9534_v43 = vld [vmem:[#allocation8 + $0xb84] ss:$16 sps:$4 sm:$0xff]  }
 0x422   : > { %6515 = vmatpush1.bf16.msra.mxu1 %v9445_v44  ;;  %6430 = vmatprep.subr.bf16.mxu0 %v9450_v13  ;;  %v9537_v44 = vld [vmem:[#allocation8 + $0xb8c] ss:$16 sps:$4 sm:$0xff]   ;;  %v9532_v13 = vld [vmem:[#allocation8 + $0xb80] ss:$16 sps:$4 sm:$0xff]  }
 0x423   : > { %6516 = vmatprep.subr.bf16.mxu1 %v9453_v45  ;;  %v9535_v45 = vld [vmem:[#allocation8 + $0xb88] ss:$16 sps:$4 sm:$0xff]  }
 0x425   : > { %6431 = vmatpush1.bf16.msra.mxu0 %v9448_v49  ;;  %v9540_v49 = vld [vmem:[#allocation8 + $0xba4] ss:$16 sps:$4 sm:$0xff]  }
 0x426   : > { %6517 = vmatpush1.bf16.msra.mxu1 %v9451_v15  ;;  %6432 = vmatprep.subr.bf16.mxu0 %v9456_v50  ;;  %v9543_v15 = vld [vmem:[#allocation8 + $0xbac] ss:$16 sps:$4 sm:$0xff]   ;;  %v9538_v50 = vld [vmem:[#allocation8 + $0xba0] ss:$16 sps:$4 sm:$0xff]  }
 0x427   : > { %6518 = vmatprep.subr.bf16.mxu1 %v9459_v60  ;;  %v9541_v60 = vld [vmem:[#allocation8 + $0xba8] ss:$16 sps:$4 sm:$0xff]  }
 0x429   : > { %6433 = vmatpush1.bf16.msra.mxu0 %v9454_v53  ;;  %v9546_v53 = vld [vmem:[#allocation8 + $0xbc4] ss:$16 sps:$4 sm:$0xff]  }
 0x42a   : > { %6519 = vmatpush1.bf16.msra.mxu1 %v9457_v55  ;;  %6445 = vmatprep.subr.bf16.mxu0 %v9462_v28  ;;  %v9549_v55 = vld [vmem:[#allocation8 + $0xbcc] ss:$16 sps:$4 sm:$0xff]   ;;  %v9544_v28 = vld [vmem:[#allocation8 + $0xbc0] ss:$16 sps:$4 sm:$0xff]  }
 0x42b   : > { %6531 = vmatprep.subr.bf16.mxu1 %v9465_v56  ;;  %v9547_v56 = vld [vmem:[#allocation8 + $0xbc8] ss:$16 sps:$4 sm:$0xff]  }
 0x42c   : > { %6435 = vmatmul.mubr.bf16.vlgmr.msra.gmra.mrb[4].mxu0 %v10293_v2 }
 0x42d   : > { %6521 = vmatmul.mubr.bf16.vlgmr.msra.gmra.mrb[4].mxu1 %v10293_v2  ;;  %6446 = vmatpush1.bf16.msra.mxu0 %v9460_v57  ;;  %v9483_v2 = vld [vmem:[#allocation8 + $0xa6c] ss:$16 sps:$4 sm:$0xff]   ;;  %v9552_v57 = vld [vmem:[#allocation8 + $0xbe4] ss:$16 sps:$4 sm:$0xff]  }
 0x42e   : > { %6477 = vmatprep.mubr.bf16.mxu0 %v10296_v3  ;;  %6532 = vmatpush1.bf16.msra.mxu1 %v9463_v58  ;;  %v9555_v58 = vld [vmem:[#allocation8 + $0xbec] ss:$16 sps:$4 sm:$0xff]  }
 0x42f   : > { %6563 = vmatprep.mubr.bf16.mxu1 %v10296_v3  ;;  %6447 = vmatprep.subr.bf16.mxu0 %v9468_v59  ;;  %v9484_v3 = vld [vmem:[#allocation8 + $0xa80] ss:$16 sps:$4 sm:$0xff]   ;;  %v6690_v59 = vld [vmem:[%s10582_s7 + $0x80] sm:$0xff] }
 0x430   : > { %6533 = vmatprep.subr.bf16.mxu1 %v9471_v16  ;;  %v6691_v16 = vld [vmem:[%s10582_s7 + $0x88] sm:$0xff] }
 0x431   : > { %6448 = vmatpush1.bf16.msra.mxu0 %v9466_v61  ;;  %v6722_v61 = vld [vmem:[%s10582_s7 + $0x180] sm:$0xff] }
 0x432   : > { %6534 = vmatpush1.bf16.msra.mxu1 %v9469_v62  ;;  %6449 = vmatprep.subr.bf16.mxu0 %v9474_v0  ;;  %v6723_v62 = vld [vmem:[%s10582_s7 + $0x188] sm:$0xff] }
 0x433   : > { %6535 = vmatprep.subr.bf16.mxu1 %v9477_v5  ;;  %v9550_v0 = vld [vmem:[#allocation8 + $0xbe0] ss:$16 sps:$4 sm:$0xff]   ;;  %v9553_v5 = vld [vmem:[#allocation8 + $0xbe8] ss:$16 sps:$4 sm:$0xff]  }
 0x435   : > { %6450 = vmatpush1.bf16.msra.mxu0 %v9472_v1  ;;  %v8169_v1 = vpack.c.bf16 %v6691_v16, %v6690_v59  ;;  %v6714_v59 = vld [vmem:[%s10582_s7 + $0x140] sm:$0xff]  ;;  %v6715_v16 = vld [vmem:[%s10582_s7 + $0x148] sm:$0xff] }
 0x436   : > { %6536 = vmatpush1.bf16.msra.mxu1 %v9475_v6  ;;  %6451 = vmatprep.subr.bf16.mxu0 %v9480_v7  ;;  %v6674_v6 = vld [vmem:[%s10582_s7] sm:$0xff]  ;;  %v6675_v7 = vld [vmem:[%s10582_s7 + $0x8] sm:$0xff] }
 0x437   : > { %6537 = vmatprep.subr.bf16.mxu1 %v9483_v2  ;;  %v6706_v2 = vld [vmem:[%s10582_s7 + $0x100] sm:$0xff] }
 0x439   : > { %6452 = vmatpush1.bf16.msra.mxu0 %v9478_v8  ;;  %v8201_v8 = vpack.c.bf16 %v6723_v62, %v6722_v61  ;;  %v8219_v61 = vpack.c.bf16 %v6715_v16, %v6714_v59  ;;  %v6700_v62 = vld [vmem:[%s10582_s7 + $0xd0] sm:$0xff] }
 0x43a   : > { %6538 = vmatpush1.bf16.msra.mxu1 %v9481_v9  ;;  %6453 = vmatprep.subr.bf16.mxu0 %v9486_v10  ;;  %v6707_v9 = vld [vmem:[%s10582_s7 + $0x108] sm:$0xff]  ;;  %v6692_v10 = vld [vmem:[%s10582_s7 + $0x90] sm:$0xff] }
 0x43b   : > { %6539 = vmatprep.subr.bf16.mxu1 %v9489_v12  ;;  %v6693_v12 = vld [vmem:[%s10582_s7 + $0x98] sm:$0xff] }
 0x43d   : > { %6454 = vmatpush1.bf16.msra.mxu0 %v9484_v3  ;;  %v6724_v3 = vld [vmem:[%s10582_s7 + $0x190] sm:$0xff] }
 0x43e   : > { %6540 = vmatpush1.bf16.msra.mxu1 %v9487_v17  ;;  %6455 = vmatprep.subr.bf16.mxu0 %v9492_v18  ;;  %v6725_v17 = vld [vmem:[%s10582_s7 + $0x198] sm:$0xff]  ;;  %v8171_v18 = vpack.c.bf16 %v6675_v7, %v6674_v6  ;;  %v6684_v7 = vld [vmem:[%s10582_s7 + $0x50] sm:$0xff] }
 0x43f   : > { %6541 = vmatprep.subr.bf16.mxu1 %v9495_v14  ;;  %v8203_v14 = vpack.c.bf16 %v6707_v9, %v6706_v2  ;;  %v6733_v6 = vld [vmem:[%s10582_s7 + $0x1d8] sm:$0xff] }
 0x440   : > { %v6685_v2 = vld [vmem:[%s10582_s7 + $0x58] sm:$0xff] }
 0x441   : > { %6456 = vmatpush1.bf16.msra.mxu0 %v9490_v19  ;;  %v8173_v19 = vpack.c.bf16 %v6693_v12, %v6692_v10  ;;  %v8191_v9 = vpack.c.bf16 %v6685_v2, %v6684_v7  ;;  %v6716_v10 = vld [vmem:[%s10582_s7 + $0x150] sm:$0xff]  ;;  %v6717_v12 = vld [vmem:[%s10582_s7 + $0x158] sm:$0xff] }
 0x442   : > { %6542 = vmatpush1.bf16.msra.mxu1 %v9493_v20  ;;  %6457 = vmatprep.subr.bf16.mxu0 %v9498_v46  ;;  %v6676_v20 = vld [vmem:[%s10582_s7 + $0x10] sm:$0xff]  ;;  %v6677_v46 = vld [vmem:[%s10582_s7 + $0x18] sm:$0xff] }
 0x443   : > { %6543 = vmatprep.subr.bf16.mxu1 %v9501_v63  ;;  %v8205_v63 = vpack.c.bf16 %v6725_v17, %v6724_v3  ;;  %v8223_v3 = vpack.c.bf16 %v6717_v12, %v6716_v10  ;;  %v6702_v17 = vld [vmem:[%s10582_s7 + $0xe0] sm:$0xff] }
 0x445   : > { %6458 = vmatpush1.bf16.msra.mxu0 %v9496_v22  ;;  %v6708_v22 = vld [vmem:[%s10582_s7 + $0x110] sm:$0xff] }
 0x446   : > { %6544 = vmatpush1.bf16.msra.mxu1 %v9499_v24  ;;  %6459 = vmatprep.subr.bf16.mxu0 %v9504_v26  ;;  %v6709_v24 = vld [vmem:[%s10582_s7 + $0x118] sm:$0xff]  ;;  %v8175_v26 = vpack.c.bf16 %v6677_v46, %v6676_v20  ;;  %v6735_v20 = vld [vmem:[%s10582_s7 + $0x1e8] sm:$0xff]  ;;  %v6686_v46 = vld [vmem:[%s10582_s7 + $0x60] sm:$0xff] }
 0x447   : > { %6545 = vmatprep.subr.bf16.mxu1 %v9507_v47  ;;  %v8207_v47 = vpack.c.bf16 %v6709_v24, %v6708_v22 }
 0x449   : > { %6460 = vmatpush1.bf16.msra.mxu0 %v9502_v29  ;;  %v6694_v29 = vld [vmem:[%s10582_s7 + $0xa0] sm:$0xff] }
 0x44a   : > { %6546 = vmatpush1.bf16.msra.mxu1 %v9505_v37  ;;  %6461 = vmatprep.subr.bf16.mxu0 %v9510_v30  ;;  %v6695_v37 = vld [vmem:[%s10582_s7 + $0xa8] sm:$0xff] }
 0x44b   : > { %6547 = vmatprep.subr.bf16.mxu1 %v9513_v31  ;;  %v8177_v30 = vpack.c.bf16 %v6695_v37, %v6694_v29  ;;  %v6727_v31 = vld [vmem:[%s10582_s7 + $0x1a8] sm:$0xff]  ;;  %v6704_v29 = vld [vmem:[%s10582_s7 + $0xf0] sm:$0xff] }
 0x44d   : > { %6462 = vmatpush1.bf16.msra.mxu0 %v9508_v23  ;;  %v6678_v23 = vld [vmem:[%s10582_s7 + $0x20] sm:$0xff] }
 0x44e   : > { %6548 = vmatpush1.bf16.msra.mxu1 %v9511_v33  ;;  %6463 = vmatprep.subr.bf16.mxu0 %v9516_v34  ;;  %v6679_v34 = vld [vmem:[%s10582_s7 + $0x28] sm:$0xff] }
 0x44f   : > { %6549 = vmatprep.subr.bf16.mxu1 %v9519_v35  ;;  %v6710_v35 = vld [vmem:[%s10582_s7 + $0x120] sm:$0xff] }
 0x451   : > { %6464 = vmatpush1.bf16.msra.mxu0 %v9514_v36  ;;  %v6711_v36 = vld [vmem:[%s10582_s7 + $0x128] sm:$0xff] }
 0x452   : > { %6550 = vmatpush1.bf16.msra.mxu1 %v9517_v25  ;;  %6465 = vmatprep.subr.bf16.mxu0 %v9522_v27  ;;  %v8179_v25 = vpack.c.bf16 %v6679_v34, %v6678_v23  ;;  %v8211_v27 = vpack.c.bf16 %v6711_v36, %v6710_v35  ;;  %v6688_v34 = vld [vmem:[%s10582_s7 + $0x70] sm:$0xff]  ;;  %v6689_v35 = vld [vmem:[%s10582_s7 + $0x78] sm:$0xff] }
 0x453   : > { %6551 = vmatprep.subr.bf16.mxu1 %v9525_v39  ;;  %v6696_v39 = vld [vmem:[%s10582_s7 + $0xb0] sm:$0xff] }
 0x454   : > { %v6720_v36 = vld [vmem:[%s10582_s7 + $0x170] sm:$0xff] }
 0x455   : > { %6466 = vmatpush1.bf16.msra.mxu0 %v9520_v41  ;;  %v6697_v41 = vld [vmem:[%s10582_s7 + $0xb8] sm:$0xff] }
 0x456   : > { %6552 = vmatpush1.bf16.msra.mxu1 %v9523_v40  ;;  %6467 = vmatprep.subr.bf16.mxu0 %v9528_v38  ;;  %v6728_v40 = vld [vmem:[%s10582_s7 + $0x1b0] sm:$0xff]  ;;  %v8181_v38 = vpack.c.bf16 %v6697_v41, %v6696_v39  ;;  %v6582_v41 = vld [vmem:[#allocation10] sm:$0xf] }
 0x457   : > { %6553 = vmatprep.subr.bf16.mxu1 %v9531_v11  ;;  %v6729_v11 = vld [vmem:[%s10582_s7 + $0x1b8] sm:$0xff] }
 0x459   : > { %6468 = vmatpush1.bf16.msra.mxu0 %v9526_v48  ;;  %v6680_v48 = vld [vmem:[%s10582_s7 + $0x30] sm:$0xff] }
 0x45a   : > { %6554 = vmatpush1.bf16.msra.mxu1 %v9529_v42  ;;  %6469 = vmatprep.subr.bf16.mxu0 %v9534_v43  ;;  %v6681_v42 = vld [vmem:[%s10582_s7 + $0x38] sm:$0xff]  ;;  %v8213_v43 = vpack.c.bf16 %v6729_v11, %v6728_v40  ;;  %v6587_v40 = vrot.slane %v6582_v41, %v10239_v51  ;;  %v6595_v11 = vrot.slane %v6582_v41, %v10242_v52 }
 0x45b   : > { %6555 = vmatprep.subr.bf16.mxu1 %v9537_v44  ;;  %v8183_v44 = vpack.c.bf16 %v6681_v42, %v6680_v48  ;;  %v6591_v48 = vrot.slane %v6582_v41, %v10245_v32  ;;  %v6599_v42 = vrot.slane %v6582_v41, %v10248_v54 }
 0x45d   : > { %6470 = vmatpush1.bf16.msra.mxu0 %v9532_v13  ;;  %v6712_v13 = vld [vmem:[%s10582_s7 + $0x130] sm:$0xff] }
 0x45e   : > { %6556 = vmatpush1.bf16.msra.mxu1 %v9535_v45  ;;  %6471 = vmatprep.subr.bf16.mxu0 %v9540_v49  ;;  %v6713_v45 = vld [vmem:[%s10582_s7 + $0x138] sm:$0xff] }
 0x45f   : > { %6557 = vmatprep.subr.bf16.mxu1 %v9543_v15  ;;  %v8215_v49 = vpack.c.bf16 %v6713_v45, %v6712_v13  ;;  %v6698_v15 = vld [vmem:[%s10582_s7 + $0xc0] sm:$0xff] }
 0x461   : > { %6472 = vmatpush1.bf16.msra.mxu0 %v9538_v50  ;;  %v6699_v50 = vld [vmem:[%s10582_s7 + $0xc8] sm:$0xff] }
 0x462   : > { %6558 = vmatpush1.bf16.msra.mxu1 %v9541_v60  ;;  %6473 = vmatprep.subr.bf16.mxu0 %v9546_v53  ;;  %v6730_v60 = vld [vmem:[%s10582_s7 + $0x1c0] sm:$0xff]  ;;  %v8185_v53 = vpack.c.bf16 %v6699_v50, %v6698_v15 }
 0x463   : > { %6559 = vmatprep.subr.bf16.mxu1 %v9549_v55  ;;  %v6731_v55 = vld [vmem:[%s10582_s7 + $0x1c8] sm:$0xff] }
 0x465   : > { %6474 = vmatpush1.bf16.msra.mxu0 %v9544_v28  ;;  %v6682_v28 = vld [vmem:[%s10582_s7 + $0x40] sm:$0xff] }
 0x466   : > { %6560 = vmatpush1.bf16.msra.mxu1 %v9547_v56  ;;  %6475 = vmatprep.subr.bf16.mxu0 %v9552_v57  ;;  %v6683_v56 = vld [vmem:[%s10582_s7 + $0x48] sm:$0xff]  ;;  %v8217_v57 = vpack.c.bf16 %v6731_v55, %v6730_v60 }
 0x467   : > { %6561 = vmatprep.subr.bf16.mxu1 %v9555_v58  ;;  %v8187_v58 = vpack.c.bf16 %v6683_v56, %v6682_v28 }
 0x469   : > { %6476 = vmatpush1.bf16.msra.mxu0 %v9550_v0  ;;  %v6701_v0 = vld [vmem:[%s10582_s7 + $0xd8] sm:$0xff] }
 0x46a   : > { %6562 = vmatpush1.bf16.msra.mxu1 %v9553_v5  ;;  %8170 = vmatprep.subr.bf16.mxu0 %v8169_v1  ;;  %v6732_v5 = vld [vmem:[%s10582_s7 + $0x1d0] sm:$0xff]  ;;  %v8189_v1 = vpack.c.bf16 %v6701_v0, %v6700_v62 }
 0x46b   : > { %8202 = vmatprep.subr.bf16.mxu1 %v8201_v8  ;;  %v8221_v8 = vpack.c.bf16 %v6733_v6, %v6732_v5 }
 0x46c   : > { %6478 = vmatmul.mubr.bf16.vlgmr.msra.gmra.mrb[4].mxu0 %v10299_v4 }
 0x46d   : > { %6564 = vmatmul.mubr.bf16.vlgmr.msra.gmra.mrb[4].mxu1 %v10299_v4  ;;  %8172 = vmatpush3.bf16.msra.mxu0 %v8171_v18  ;;  %v6726_v4 = vld [vmem:[%s10582_s7 + $0x1a0] sm:$0xff]  ;;  %v6703_v18 = vld [vmem:[%s10582_s7 + $0xe8] sm:$0xff] }
 0x46e   : > { %8204 = vmatpush3.bf16.msra.mxu1 %v8203_v14  ;;  %8174 = vmatprep.subr.bf16.mxu0 %v8173_v19  ;;  %v8209_v33 = vpack.c.bf16 %v6727_v31, %v6726_v4  ;;  %v6734_v14 = vld [vmem:[%s10582_s7 + $0x1e0] sm:$0xff]  ;;  %v8193_v19 = vpack.c.bf16 %v6703_v18, %v6702_v17  ;;  %v6736_v4 = vld [vmem:[%s10582_s7 + $0x1f0] sm:$0xff]  ;;  %v6737_v31 = vld [vmem:[%s10582_s7 + $0x1f8] sm:$0xff] }
 0x46f   : > { %8206 = vmatprep.subr.bf16.mxu1 %v8205_v63  ;;  %v6687_v63 = vld [vmem:[%s10582_s7 + $0x68] sm:$0xff]  ;;  %v8225_v22 = vpack.c.bf16 %v6735_v20, %v6734_v14 }
 0x470   : > { %v8195_v24 = vpack.c.bf16 %v6687_v63, %v6686_v46 }
 0x471   : > { %8176 = vmatpush3.bf16.msra.mxu0 %v8175_v26  ;;  %v6718_v26 = vld [vmem:[%s10582_s7 + $0x160] sm:$0xff] }
 0x472   : > { %8208 = vmatpush3.bf16.msra.mxu1 %v8207_v47  ;;  %8178 = vmatprep.subr.bf16.mxu0 %v8177_v30  ;;  %v6719_v47 = vld [vmem:[%s10582_s7 + $0x168] sm:$0xff]  ;;  %v6705_v30 = vld [vmem:[%s10582_s7 + $0xf8] sm:$0xff] }
 0x473   : > { %8210 = vmatprep.subr.bf16.mxu1 %v8209_v33  ;;  %v8227_v37 = vpack.c.bf16 %v6719_v47, %v6718_v26  ;;  %v8197_v23 = vpack.c.bf16 %v6705_v30, %v6704_v29  ;;  %v8229_v33 = vpack.c.bf16 %v6737_v31, %v6736_v4 }
 0x475   : > { %8180 = vmatpush3.bf16.msra.mxu0 %v8179_v25  ;;  %v6721_v25 = vld [vmem:[%s10582_s7 + $0x178] sm:$0xff] }
 0x476   : > { %8212 = vmatpush3.bf16.msra.mxu1 %v8211_v27  ;;  %8182 = vmatprep.subr.bf16.mxu0 %v8181_v38  ;;  %v8199_v27 = vpack.c.bf16 %v6689_v35, %v6688_v34  ;;  %v8231_v39 = vpack.c.bf16 %v6721_v25, %v6720_v36  ;;  %v6612_v38 = vld [vmem:[#allocation11] sm:$0xf] }
 0x477   : > { %8214 = vmatprep.subr.bf16.mxu1 %v8213_v43  ;;  %v6617_v13 = vrot.slane %v6612_v38, %v10239_v51  ;;  %v6625_v50 = vrot.slane %v6612_v38, %v10242_v52 }
 0x479   : > { %8184 = vmatpush3.bf16.msra.mxu0 %v8183_v44 }
 0x47a   : > { %8216 = vmatpush3.bf16.msra.mxu1 %v8215_v49  ;;  %8186 = vmatprep.subr.bf16.mxu0 %v8185_v53  ;;  %v6621_v53 = vrot.slane %v6612_v38, %v10245_v32 }
 0x47b   : > { %8218 = vmatprep.subr.bf16.mxu1 %v8217_v57  ;;  %v6629_v57 = vrot.slane %v6612_v38, %v10248_v54 }
 0x47d   : > { %8188 = vmatpush3.bf16.msra.mxu0 %v8187_v58 }
 0x47e   : > { %8220 = vmatpush3.bf16.msra.mxu1 %v8219_v61  ;;  %8190 = vmatprep.subr.bf16.mxu0 %v8189_v1 }
 0x47f   : > { %8222 = vmatprep.subr.bf16.mxu1 %v8221_v8 }
 0x481   : > { %8192 = vmatpush3.bf16.msra.mxu0 %v8191_v9 }
 0x482   : > { %8224 = vmatpush3.bf16.msra.mxu1 %v8223_v3  ;;  %8194 = vmatprep.subr.bf16.mxu0 %v8193_v19 }
 0x483   : > { %8226 = vmatprep.subr.bf16.mxu1 %v8225_v22 }
 0x485   : > { %8196 = vmatpush3.bf16.msra.mxu0 %v8195_v24 }
 0x486   : > { %8228 = vmatpush3.bf16.msra.mxu1 %v8227_v37  ;;  %8198 = vmatprep.subr.bf16.mxu0 %v8197_v23 }
 0x487   : > { %8230 = vmatprep.subr.bf16.mxu1 %v8229_v33 }
 0x489   : > { %8200 = vmatpush3.bf16.msra.mxu0 %v8199_v27 }
 0x48a   : > { %8232 = vmatpush3.bf16.msra.mxu1 %v8231_v39 }
 0x53f   : > { %v6479_v43 = vpop.f32.mrb[4].mxu0 }
 0x540   : > { %v6604_v44 = vmul.f32 %v6587_v40, %v6479_v43  ;;  %v6565_v45 = vpop.f32.mrb[4].mxu1  ;;  %v6481_v49 = vpop.f32.mrb[5].mxu0 }
 0x541   : > { %v6606_v15 = vmul.f32 %v6595_v11, %v6565_v45  ;;  %v6605_v60 = vmul.f32 %v6591_v48, %v6481_v49  ;;  %v6567_v55 = vpop.f32.mrb[5].mxu1  ;;  %v6483_v28 = vpop.f32.mrb[6].mxu0 }
 0x542   : > { %v6607_v56 = vmul.f32 %v6599_v42, %v6567_v55  ;;  %v6608_v58 = vmul.f32 %v6587_v40, %v6483_v28  ;;  %v6569_v59 = vpop.f32.mrb[6].mxu1  ;;  %v6485_v16 = vpop.f32.mrb[7].mxu0  ;;  %v10522_v5 = vadd.f32 %v6617_v13, %v6604_v44  ;;  %v6879_v44 = vld [vmem:[#allocation13] sm:$0xff] }
 0x543   : > { %v6610_v61 = vmul.f32 %v6595_v11, %v6569_v59  ;;  %v6609_v62 = vmul.f32 %v6591_v48, %v6485_v16  ;;  %v6571_v0 = vpop.f32.mrb[7].mxu1  ;;  %v10526_v52 = vadd.f32 %v6625_v50, %v6606_v15  ;;  %v10528_v7 = vadd.f32 %v6621_v53, %v6605_v60 }
 0x544   : > { %v10524_v1 = vadd.f32 %v6617_v13, %v6608_v58  ;;  %v6611_v6 = vmul.f32 %v6599_v42, %v6571_v0  ;;  %v10534_v54 = vadd.f32 %v6629_v57, %v6607_v56  ;;  %v9811_v48 = vmov 1983009808  }
 0x545   : > { %v10530_v32 = vadd.f32 %v6625_v50, %v6610_v61  ;;  %v10532_v2 = vadd.f32 %v6621_v53, %v6609_v62  ;;  %v6883_v42 = vunpack.c.l.s4 %v9811_v48  ;;  %v6881_v45 = vcombine.high %v6879_v44, %v6879_v44 }
 0x546   : > { %v6642_v8 = vadd.f32 %v10524_v1, %v10522_v5  ;;  %v10538_v9 = vadd.f32 %v6629_v57, %v6611_v6  ;;  %v9812_v53 = vmov 0.0  }
 0x547   : > { %v6656_v10 = vadd.f32 %v10530_v32, %v10526_v52  ;;  %v6649_v12 = vadd.f32 %v10532_v2, %v10528_v7  ;;  %v6884_v43 = vunpack.c.0.s8 %v6883_v42 }
 0x548   : > { %v6643_v3 = vrot.slane %v6642_v8, 4  ;;  %v6663_v17 = vadd.f32 %v10538_v9, %v10534_v54 }
 0x549   : > { %v6657_v18 = vrot.slane %v6656_v10, 4  ;;  %v6650_v14 = vrot.slane %v6649_v12, 4  ;;  %v6887_v13 = vsub.s32 %v6884_v43, %v10236_v21 }
 0x54a   : > { %v6644_v19 = vadd.f32 %v6643_v3, %v6642_v8  ;;  %v6664_v20 = vrot.slane %v6663_v17, 4 }
 0x54b   : > { %v6658_v46 = vadd.f32 %v6657_v18, %v6656_v10  ;;  %v6651_v63 = vadd.f32 %v6650_v14, %v6649_v12  ;;  %v6888_v49 = vrot.slane %v6879_v44, %v6887_v13  ;;  %v6895_v15 = vrot.slane %v6881_v45, %v6887_v13  ;;  %v9580_v45 = vld [vmem:[%s10112_s27 + $0x18] sm:$0xff] }
 0x54c   : > { %v6645_v22 = vrot.slane %v6644_v19, 2  ;;  %v6665_v24 = vadd.f32 %v6664_v20, %v6663_v17 }
 0x54d   : > { %v6659_v26 = vrot.slane %v6658_v46, 2  ;;  %v6652_v47 = vrot.slane %v6651_v63, 2  ;;  %v6896_v50 = vcombine.high %v6888_v49, %v6888_v49  ;;  %v6897_v60 = vcombine.high %v6895_v15, %v6895_v15 }
 0x54e   : > { %v6646_v29 = vadd.f32 %v6645_v22, %v6644_v19  ;;  %v6666_v37 = vrot.slane %v6665_v24, 2 }
 0x54f   : > { %v6660_v30 = vadd.f32 %v6659_v26, %v6658_v46  ;;  %v6653_v4 = vadd.f32 %v6652_v47, %v6651_v63  ;;  %8077 = vmatprep.subr.msk.mxu0 %vm6902_vm5, %v6896_v50  ;;  %8080 = vmatprep.subr.msk.mxu1 %vm6902_vm5, %v6897_v60 }
 0x550   : > { %v6667_v31 = vadd.f32 %v6666_v37, %v6665_v24  ;;  %v6647_v23 = vrot.slane %v6646_v29, 1 }
 0x551   : > { %v6654_v33 = vrot.slane %v6653_v4, 1  ;;  %v6661_v34 = vrot.slane %v6660_v30, 1 }
 0x552   : > { %v6668_v35 = vrot.slane %v6667_v31, 1  ;;  %v6648_v36 = vadd.f32 %v6647_v23, %v6646_v29 }
 0x553   : > { %v6655_v25 = vadd.f32 %v6654_v33, %v6653_v4  ;;  %v6662_v27 = vadd.f32 %v6661_v34, %v6660_v30 }
 0x554   : > { %v6669_v39 = vadd.f32 %v6668_v35, %v6667_v31  ;;  %v6670_v38 = vmul.f32 0.00390625, %v6648_v36  ;;  %v9574_v36 = vld [vmem:[%s10112_s27] sm:$0xff] }
 0x555   : > { %v6671_v41 = vmul.f32 0.00390625, %v6655_v25  ;;  %v6672_v11 = vmul.f32 0.00390625, %v6662_v27  ;;  %v9575_v27 = vld [vmem:[%s10112_s27 + $0x20] sm:$0xff] }
 0x556   : > { %v6673_v40 = vmul.f32 0.00390625, %v6669_v39 }
 0x557   : > { %6802 = vmatprep.mubr.f32.mxu0 %v6671_v41 }
 0x558   : > { %6872 = vmatprep.mubr.f32.mxu1 %v6673_v40  ;;  %6803 = vmatmul.mubr.f32.vlgmr.msra.gmra.mrb[8].mxu0 %v6670_v38 }
 0x559   : > { %6873 = vmatmul.mubr.f32.vlgmr.msra.gmra.mrb[8].mxu1 %v6672_v11  ;;  %6975 = vmatprep.mubr.f32.mxu0 %v9812_v53 }
 0x55a   : > { %7046 = vmatprep.mubr.f32.mxu1 %v9812_v53  ;;  %8078 = vmatpush1.msk.msra.mxu0 %vm6902_vm5, %v6888_v49 }
 0x55b   : > { %8081 = vmatpush1.msk.msra.mxu1 %vm6902_vm5, %v6895_v15  ;;  %v9581_v15 = vld [vmem:[%s10112_s27 + $0x38] sm:$0xff] }
 0x62b   : > { %v8131_v55 = vpop.f32.mrb[8].mxu0 }
 0x62c   : > { %v8166_v28 = vpop.f32.mrb[8].mxu1  ;;  %v8132_v56 = vpop.f32.mrb[9].mxu0 }
 0x62d   : > { %v8133_v57 = vadd.f32 %v8132_v56, %v8131_v55  ;;  %v8167_v58 = vpop.f32.mrb[9].mxu1 }
 0x62e   : > { %v8168_v59 = vadd.f32 %v8167_v58, %v8166_v28 }
 0x630   : > { %v6875_v21 = vadd.f32 %v8168_v59, %v8133_v57 }
 0x632   : > { %v6878_v16 = vmax.f32 %v6875_v21, 0.0 }
 0x634   : > { %8079 = vmatmul.mubr.msk.f32.vlgmr.msra.gmra.mrb[10].mxu0 %vm6898_vm6, %v6878_v16  ;;  %8082 = vmatmul.mubr.msk.f32.vlgmr.msra.gmra.mrb[10].mxu1 %vm6898_vm6, %v6878_v16 }
 0x707   : > { %v6977_v61 = vpop.f32.mrb[10].mxu0  ;;  %v7048_v62 = vpop.f32.mrb[10].mxu1 }
 0x708   : > { %v8083_v0 = vmul.f32 -1.442695, %v6977_v61  ;;  %v8085_v6 = vmul.f32 -1.442695, %v7048_v62  ;;  %v6979_v8 = vpop.f32.mrb[11].mxu0  ;;  %v7050_v10 = vpop.f32.mrb[11].mxu1 }
 0x709   : > { %v8084_v12 = vmul.f32 -1.442695, %v6979_v8  ;;  %v8086_v3 = vmul.f32 -1.442695, %v7050_v10 }
 0x70a   : > { %9557 = vpow2.f32 %v8083_v0 }
 0x70b   : > { %9559 = vpow2.f32 %v8085_v6 }
 0x70c   : > { %9561 = vpow2.f32 %v8084_v12 }
 0x70d   : > { %9563 = vpow2.f32 %v8086_v3 }
 0x714   : > { %v9558_v17 = vpop.eup %9557 }
 0x715   : > { %v9560_v18 = vpop.eup %9559  ;;  %v7065_v14 = vadd.f32 1.0, %v9558_v17 }
 0x716   : > { %v9562_v19 = vpop.eup %9561  ;;  %v7067_v20 = vadd.f32 1.0, %v9560_v18 }
 0x717   : > { %v9564_v46 = vpop.eup %9563  ;;  %9565 = vrcp.f32 %v7065_v14  ;;  %v7066_v63 = vadd.f32 1.0, %v9562_v19 }
 0x718   : > { %9567 = vrcp.f32 %v7067_v20  ;;  %v7068_v22 = vadd.f32 1.0, %v9564_v46 }
 0x719   : > { %9569 = vrcp.f32 %v7066_v63 }
 0x71a   : > { %9571 = vrcp.f32 %v7068_v22 }
 0x721   : > { %v9566_v24 = vpop.eup %9565 }
 0x722   : > { %v9568_v26 = vpop.eup %9567  ;;  %v7080_v47 = vrot.slane %v9566_v24, %v10239_v51 }
 0x723   : > { %v9570_v29 = vpop.eup %9569  ;;  %v7088_v37 = vrot.slane %v9568_v26, %v10239_v51 }
 0x724   : > { %v9572_v30 = vpop.eup %9571  ;;  %v7093_v4 = vmul.f32 %v7080_v47, %v10522_v5  ;;  %v7097_v31 = vmul.f32 %v7080_v47, %v10524_v1  ;;  %v7084_v23 = vrot.slane %v9570_v29, %v10239_v51  ;;  %v9576_v1 = vld [vmem:[%s10112_s27 + $0x10] sm:$0xff] }
 0x725   : > { %v7095_v33 = vmul.f32 %v7088_v37, %v10526_v52  ;;  %v7099_v34 = vmul.f32 %v7088_v37, %v10530_v32  ;;  %v7092_v35 = vrot.slane %v9572_v30, %v10239_v51  ;;  %v9577_v51 = vld [vmem:[%s10112_s27 + $0x30] sm:$0xff] }
 0x726   : > { %v7101_v25 = vadd.f32 %v9574_v36, %v7093_v4  ;;  %v7105_v39 = vadd.f32 %v9575_v27, %v7097_v31  ;;  %v7094_v41 = vmul.f32 %v7084_v23, %v10528_v7  ;;  %v7098_v5 = vmul.f32 %v7084_v23, %v10532_v2  ;;  %v9578_v7 = vld [vmem:[%s10112_s27 + $0x8] sm:$0xff] }
 0x727   : > { %v7103_v52 = vadd.f32 %v9576_v1, %v7095_v33  ;;  %v7107_v32 = vadd.f32 %v9577_v51, %v7099_v34  ;;  %v7096_v40 = vmul.f32 %v7092_v35, %v10534_v54  ;;  %v7100_v38 = vmul.f32 %v7092_v35, %v10538_v9  ;;  %v9579_v2 = vld [vmem:[%s10112_s27 + $0x28] sm:$0xff] }
 0x728   : > { %v7109_v11 = vmax.f32 %v7101_v25, 0.0  ;;  %v7113_v48 = vmax.f32 %v7105_v39, 0.0  ;;  %v7102_v42 = vadd.f32 %v9578_v7, %v7094_v41  ;;  %v7106_v43 = vadd.f32 %v9579_v2, %v7098_v5 }
 0x729   : > { %v7111_v44 = vmax.f32 %v7103_v52, 0.0  ;;  %v7115_v13 = vmax.f32 %v7107_v32, 0.0  ;;  %v7104_v49 = vadd.f32 %v9580_v45, %v7096_v40  ;;  %v7108_v50 = vadd.f32 %v9581_v15, %v7100_v38 }
 0x72a   : > { %7117 = vst [vmem:[%s431_s23] sm:$0xff] %v7109_v11  ;;  %v7110_v60 = vmax.f32 %v7102_v42, 0.0  ;;  %v7114_v53 = vmax.f32 %v7106_v43, 0.0  ;;  %7121 = vst [vmem:[%s431_s23 + $0x20] sm:$0xff] %v7113_v48 }
 0x72b   : > { %7119 = vst [vmem:[%s431_s23 + $0x10] sm:$0xff] %v7111_v44  ;;  %v7112_v54 = vmax.f32 %v7104_v49, 0.0  ;;  %v7116_v55 = vmax.f32 %v7108_v50, 0.0  ;;  %7123 = vst [vmem:[%s431_s23 + $0x30] sm:$0xff] %v7115_v13 }
 0x72c   : > { %7118 = vst [vmem:[%s431_s23 + $0x8] sm:$0xff] %v7110_v60  ;;  %7122 = vst [vmem:[%s431_s23 + $0x28] sm:$0xff] %v7114_v53 }
 0x72d   : > { %7120 = vst [vmem:[%s431_s23 + $0x18] sm:$0xff] %v7112_v54  ;;  %7124 = vst [vmem:[%s431_s23 + $0x38] sm:$0xff] %v7116_v55 }
 0x72e PF: > { %s23_s30 = sadd.s32 1, %s9800_s30  }
 0x72f   : > { %p20_p7 = scmp.ge.s32.totalorder %s23_s30, 4  }
 0x731   :  { %22 = sbr.rel (!%p20_p7) target bundleno = 4 (0x4), region = 119 }
 0x738   :  { %7149 = vsyncpa [#allocation4], 1 }
 0x739   :  { %7151 = vsyncpa [#allocation4 + $0x1], 1 }
 0x73a   :  { %7152 = vsyncpa [#allocation6], 1 }
 0x73b   :  { %7153 = vsyncpa [#allocation9], 1 }
 0x73c   :  { %7154 = vsyncpa [#allocation12], 1 }

</bundles_post_ra>
